<compile_context>
chip_gen: v6e
topology: v6e:2x2x1
jax: 0.10.0
libtpu: 0.0.40
codegen_flags: <defaults>
</compile_context>

<pallas_src>
import math
from functools import partial

import jax
import jax.numpy as jnp
from jax.experimental import pallas as pl
from jax.experimental.pallas import tpu as pltpu


NEG_INF = -1e9  # finite "-inf": avoids NaN for fully-masked softmax rows


# ---------------------------------------------------------------------------
# In-kernel helpers (operate on values loaded inside a Pallas kernel body)
# ---------------------------------------------------------------------------

def _dot(x, w):
    """MXU matmul: bf16 inputs, f32 accumulate."""
    return jnp.dot(x.astype(jnp.bfloat16), w.astype(jnp.bfloat16),
                   preferred_element_type=jnp.float32)


def _layernorm(x, g, b, eps=1e-5):
    mean = jnp.mean(x, axis=-1, keepdims=True)
    var = jnp.mean(jnp.square(x - mean), axis=-1, keepdims=True)
    return (x - mean) * jax.lax.rsqrt(var + eps) * g + b


def _mha(q3, k3, v3, nhead, bias):
    """q3: (B,Tq,D), k3/v3: (B,Tk,D), bias: additive (B,1|Tq,Tk) or None.
    Heads are split along the lane dim in VMEM (no HBM transposes).
    Returns (ctx (B,Tq,D) f32, head-averaged probs (B,Tq,Tk) f32)."""
    _, _, d = q3.shape
    dh = d // nhead
    scale = 1.0 / math.sqrt(dh)
    ctx_heads = []
    p_sum = None
    for h in range(nhead):
        lo, hi = h * dh, (h + 1) * dh
        s = jnp.einsum("bqd,bkd->bqk",
                       q3[:, :, lo:hi].astype(jnp.bfloat16),
                       k3[:, :, lo:hi].astype(jnp.bfloat16),
                       preferred_element_type=jnp.float32) * scale
        if bias is not None:
            s = s + bias
        s = s - jnp.max(s, axis=-1, keepdims=True)
        e = jnp.exp(s)
        p = e * pl.reciprocal(jnp.sum(e, axis=-1, keepdims=True), approx=True)
        p_sum = p if p_sum is None else p_sum + p
        ctx_heads.append(jnp.einsum("bqk,bkd->bqd",
                                    p.astype(jnp.bfloat16),
                                    v3[:, :, lo:hi].astype(jnp.bfloat16),
                                    preferred_element_type=jnp.float32))
    ctx = jnp.concatenate(ctx_heads, axis=-1)
    return ctx, p_sum * (1.0 / nhead)


# ---------------------------------------------------------------------------
# Fused encoder stack kernel (grid over layers, activation resident in VMEM)
# ---------------------------------------------------------------------------

def _encoder_kernel(x_in_ref, src_ids_ref, encg_ref, encb_ref,
                    wqkv_ref, bqkv_ref, wo_ref, bo_ref,
                    n1g_ref, n1b_ref, n2g_ref, n2b_ref,
                    w1_ref, b1_ref, w2_ref, b2_ref,
                    out_ref, x_sc, *, nhead, num_layers, b, s, d):
    l = pl.program_id(0)

    @pl.when(l == 0)
    def _init():
        x_sc[...] = x_in_ref[...].reshape(b * s, d)

    x = x_sc[...]                                                     # (B*S, D) f32
    # key-padding bias built in-kernel from token ids: (B,1,S)
    pad_bias = jnp.where(src_ids_ref[...] == 0, NEG_INF, 0.0).astype(jnp.float32)

    # ---- self-attention (fused QKV projection) ----
    qkv = _dot(x, wqkv_ref[0]) + bqkv_ref[0]                          # (B*S, 3D)
    q3 = qkv[:, 0 * d:1 * d].reshape(b, s, d)
    k3 = qkv[:, 1 * d:2 * d].reshape(b, s, d)
    v3 = qkv[:, 2 * d:3 * d].reshape(b, s, d)
    ctx, _ = _mha(q3, k3, v3, nhead, pad_bias)
    attn_out = _dot(ctx.reshape(b * s, d), wo_ref[0]) + bo_ref[0]
    x = _layernorm(x + attn_out, n1g_ref[0], n1b_ref[0])              # post-norm

    # ---- feed-forward (relu) ----
    h = jnp.maximum(_dot(x, w1_ref[0]) + b1_ref[0], 0.0)
    x = _layernorm(x + _dot(h, w2_ref[0]) + b2_ref[0], n2g_ref[0], n2b_ref[0])

    x_sc[...] = x

    @pl.when(l == num_layers - 1)
    def _finalize():
        out_ref[...] = _layernorm(x, encg_ref[...], encb_ref[...]).reshape(b, s, d)


# ---------------------------------------------------------------------------
# Fused decoder stack kernel (grid over layers)
# ---------------------------------------------------------------------------

def _decoder_kernel(y_in_ref, mem_ref, tgt_ids_ref, decg_ref, decb_ref,
                    sa_wqkv_ref, sa_bqkv_ref, sa_wo_ref, sa_bo_ref,
                    ca_wq_ref, ca_bq_ref, ca_wkv_ref, ca_bkv_ref, ca_wo_ref, ca_bo_ref,
                    n1g_ref, n1b_ref, n2g_ref, n2b_ref, n3g_ref, n3b_ref,
                    w1_ref, b1_ref, w2_ref, b2_ref,
                    dec_out_ref, attn_out_ref, y_sc,
                    *, nhead, num_layers, b, s, t, d):
    l = pl.program_id(0)

    @pl.when(l == 0)
    def _init():
        y_sc[...] = y_in_ref[...].reshape(b * t, d)

    y = y_sc[...]                                                     # (B*T, D)

    # causal + tgt key-padding additive bias, built in-kernel
    row = jax.lax.broadcasted_iota(jnp.int32, (t, t), 0)
    col = jax.lax.broadcasted_iota(jnp.int32, (t, t), 1)
    causal = jnp.where(col > row, NEG_INF, 0.0).astype(jnp.float32)   # (T,T)
    pad_bias = jnp.where(tgt_ids_ref[...] == 0, NEG_INF, 0.0).astype(jnp.float32)  # (B,1,T)
    self_bias = causal[None, :, :] + pad_bias                         # (B,T,T)

    # ---- masked self-attention ----
    qkv = _dot(y, sa_wqkv_ref[0]) + sa_bqkv_ref[0]
    q3 = qkv[:, 0 * d:1 * d].reshape(b, t, d)
    k3 = qkv[:, 1 * d:2 * d].reshape(b, t, d)
    v3 = qkv[:, 2 * d:3 * d].reshape(b, t, d)
    ctx, _ = _mha(q3, k3, v3, nhead, self_bias)
    sa_out = _dot(ctx.reshape(b * t, d), sa_wo_ref[0]) + sa_bo_ref[0]
    y = _layernorm(y + sa_out, n1g_ref[0], n1b_ref[0])

    # ---- cross-attention (memory_key_padding_mask=None in the reference forward) ----
    mem = mem_ref[...].reshape(b * s, d)
    q = _dot(y, ca_wq_ref[0]) + ca_bq_ref[0]
    kv = _dot(mem, ca_wkv_ref[0]) + ca_bkv_ref[0]
    q3 = q.reshape(b, t, d)
    k3 = kv[:, 0 * d:1 * d].reshape(b, s, d)
    v3 = kv[:, 1 * d:2 * d].reshape(b, s, d)
    ctx, attn_avg = _mha(q3, k3, v3, nhead, None)
    ca_out = _dot(ctx.reshape(b * t, d), ca_wo_ref[0]) + ca_bo_ref[0]
    y = _layernorm(y + ca_out, n2g_ref[0], n2b_ref[0])

    # ---- feed-forward (relu) ----
    h = jnp.maximum(_dot(y, w1_ref[0]) + b1_ref[0], 0.0)
    y = _layernorm(y + _dot(h, w2_ref[0]) + b2_ref[0], n3g_ref[0], n3b_ref[0])

    y_sc[...] = y

    @pl.when(l == num_layers - 1)
    def _finalize():
        # Only the last layer's head-averaged cross-attention is consumed
        # (copy_att_layer == -1), so it is the only one written to HBM.
        dec_out_ref[...] = _layernorm(y, decg_ref[...], decb_ref[...]).reshape(b, t, d)
        attn_out_ref[...] = attn_avg


# ---------------------------------------------------------------------------
# Fused head kernel: lin_vocab + copy mechanism + log-prob combine
# ---------------------------------------------------------------------------

def _head_kernel(dec_ref, enc_ref, attn_ref, temb_ref, src_ids_ref,
                 wv_ref, bv_ref, wpg_ref, bpg_ref, out_ref,
                 *, b, s, t, d, vs, vt):
    dec = dec_ref[...]            # (B,T,D) decoder output (post final norm)
    enc = enc_ref[...]            # (B,S,D) encoder output
    attn = attn_ref[...]          # (B,T,S) head-averaged cross-attention
    temb = temb_ref[...]          # (B,T,D) tgt embeddings + pos enc

    # context vectors: attention-weighted encoder states (f32 to keep prob mass exact)
    context = jnp.einsum("bts,bsd->btd", attn, enc,
                         preferred_element_type=jnp.float32)

    # p_gen = sigmoid(Linear([context; dec_hs; tgt_emb_pos])) as a lane reduction
    total = jnp.concatenate([context, dec, temb], axis=-1).reshape(b * t, 3 * d)
    p_gen = jax.nn.sigmoid(jnp.sum(total * wpg_ref[...], axis=-1, keepdims=True)
                           + bpg_ref[...])                             # (B*T, 1)

    # vocabulary distribution via stable log-softmax
    logits = _dot(dec.reshape(b * t, d), wv_ref[...]) + bv_ref[...]    # (B*T, Vt)
    m = jnp.max(logits, axis=-1, keepdims=True)
    lse = jnp.log(jnp.sum(jnp.exp(logits - m), axis=-1, keepdims=True)) + m
    p_vocab = jnp.exp(logits - lse)

    # copy distribution: scatter attention mass to tgt-vocab ids src_id + (Vt - Vs)
    # (replaces the one-hot(src, Vs) + src->tgt conversion-matrix matmul)
    vocab_ids = jax.lax.broadcasted_iota(jnp.int32, (b, s, vt), 2)
    one_hot = (src_ids_ref[...] + (vt - vs) == vocab_ids).astype(jnp.float32)  # (B,S,Vt)
    p_copy = jnp.einsum("bts,bsv->btv", attn, one_hot,
                        preferred_element_type=jnp.float32).reshape(b * t, vt)

    p = p_vocab * p_gen + p_copy * (1.0 - p_gen)
    out_ref[...] = jnp.log(p)


# ---------------------------------------------------------------------------
# BlockSpec helpers
# ---------------------------------------------------------------------------

def _const_spec(shape):           # constant block across the layer grid
    zero = (0,) * len(shape)
    return pl.BlockSpec(shape, lambda l, _z=zero: _z)


def _layer_spec(stacked_shape):   # one layer's slice of a stacked weight
    tail = (0,) * (len(stacked_shape) - 1)
    return pl.BlockSpec((1,) + tuple(stacked_shape[1:]),
                        lambda l, _t=tail: (l,) + _t)


def _full_spec(shape):            # whole array, no grid
    zero = (0,) * len(shape)
    return pl.BlockSpec(shape, lambda _z=zero: _z)


# ---------------------------------------------------------------------------
# pallas_call wrappers
# ---------------------------------------------------------------------------

def run_encoder(p, x_in, src_ids_b1s, cfg):
    L = cfg["num_encoder_layers"]
    d, nhead = cfg["d_model"], cfg["nhead"]
    b, s, _ = x_in.shape
    kernel = partial(_encoder_kernel, nhead=nhead, num_layers=L, b=b, s=s, d=d)
    in_specs = [
        _const_spec((b, s, d)), _const_spec((b, 1, s)),
        _const_spec((1, d)), _const_spec((1, d)),
        _layer_spec(p["wqkv"].shape), _layer_spec(p["bqkv"].shape),
        _layer_spec(p["wo"].shape), _layer_spec(p["bo"].shape),
        _layer_spec(p["n1g"].shape), _layer_spec(p["n1b"].shape),
        _layer_spec(p["n2g"].shape), _layer_spec(p["n2b"].shape),
        _layer_spec(p["w1"].shape), _layer_spec(p["b1"].shape),
        _layer_spec(p["w2"].shape), _layer_spec(p["b2"].shape),
    ]
    return pl.pallas_call(
        kernel,
        out_shape=jax.ShapeDtypeStruct((b, s, d), jnp.float32),
        grid_spec=pltpu.PrefetchScalarGridSpec(
            num_scalar_prefetch=0, grid=(L,),
            in_specs=in_specs,
            out_specs=pl.BlockSpec((b, s, d), lambda l: (0, 0, 0)),
            scratch_shapes=[pltpu.VMEM((b * s, d), jnp.float32)],
        ),
        compiler_params=pltpu.CompilerParams(dimension_semantics=("arbitrary",)),
    )(x_in, src_ids_b1s, p["enc_norm_g"], p["enc_norm_b"],
      p["wqkv"], p["bqkv"], p["wo"], p["bo"],
      p["n1g"], p["n1b"], p["n2g"], p["n2b"],
      p["w1"], p["b1"], p["w2"], p["b2"])


def run_decoder(p, y_in, enc_hs, tgt_ids_b1t, cfg):
    L = cfg["num_decoder_layers"]
    d, nhead = cfg["d_model"], cfg["nhead"]
    b, t, _ = y_in.shape
    s = enc_hs.shape[1]
    kernel = partial(_decoder_kernel, nhead=nhead, num_layers=L, b=b, s=s, t=t, d=d)
    in_specs = [
        _const_spec((b, t, d)), _const_spec((b, s, d)), _const_spec((b, 1, t)),
        _const_spec((1, d)), _const_spec((1, d)),
        _layer_spec(p["sa_wqkv"].shape), _layer_spec(p["sa_bqkv"].shape),
        _layer_spec(p["sa_wo"].shape), _layer_spec(p["sa_bo"].shape),
        _layer_spec(p["ca_wq"].shape), _layer_spec(p["ca_bq"].shape),
        _layer_spec(p["ca_wkv"].shape), _layer_spec(p["ca_bkv"].shape),
        _layer_spec(p["ca_wo"].shape), _layer_spec(p["ca_bo"].shape),
        _layer_spec(p["n1g"].shape), _layer_spec(p["n1b"].shape),
        _layer_spec(p["n2g"].shape), _layer_spec(p["n2b"].shape),
        _layer_spec(p["n3g"].shape), _layer_spec(p["n3b"].shape),
        _layer_spec(p["w1"].shape), _layer_spec(p["b1"].shape),
        _layer_spec(p["w2"].shape), _layer_spec(p["b2"].shape),
    ]
    dec_hs, attn = pl.pallas_call(
        kernel,
        out_shape=(jax.ShapeDtypeStruct((b, t, d), jnp.float32),
                   jax.ShapeDtypeStruct((b, t, s), jnp.float32)),
        grid_spec=pltpu.PrefetchScalarGridSpec(
            num_scalar_prefetch=0, grid=(L,),
            in_specs=in_specs,
            out_specs=(pl.BlockSpec((b, t, d), lambda l: (0, 0, 0)),
                       pl.BlockSpec((b, t, s), lambda l: (0, 0, 0))),
            scratch_shapes=[pltpu.VMEM((b * t, d), jnp.float32)],
        ),
        compiler_params=pltpu.CompilerParams(dimension_semantics=("arbitrary",)),
    )(y_in, enc_hs, tgt_ids_b1t, p["dec_norm_g"], p["dec_norm_b"],
      p["sa_wqkv"], p["sa_bqkv"], p["sa_wo"], p["sa_bo"],
      p["ca_wq"], p["ca_bq"], p["ca_wkv"], p["ca_bkv"], p["ca_wo"], p["ca_bo"],
      p["n1g"], p["n1b"], p["n2g"], p["n2b"], p["n3g"], p["n3b"],
      p["w1"], p["b1"], p["w2"], p["b2"])
    return dec_hs, attn


def run_head(p, dec_hs, enc_hs, attn, tgt_emb, src_ids_bs1, cfg):
    d, vs, vt = cfg["d_model"], cfg["vocabsrc_size"], cfg["vocabtgt_size"]
    b, t, _ = dec_hs.shape
    s = enc_hs.shape[1]
    kernel = partial(_head_kernel, b=b, s=s, t=t, d=d, vs=vs, vt=vt)
    out = pl.pallas_call(
        kernel,
        out_shape=jax.ShapeDtypeStruct((b * t, vt), jnp.float32),
        in_specs=[_full_spec((b, t, d)), _full_spec((b, s, d)), _full_spec((b, t, s)),
                  _full_spec((b, t, d)), _full_spec((b, s, 1)),
                  _full_spec((d, vt)), _full_spec((1, vt)),
                  _full_spec((1, 3 * d)), _full_spec((1, 1))],
        out_specs=_full_spec((b * t, vt)),
    )(dec_hs, enc_hs, attn, tgt_emb, src_ids_bs1,
      p["lin_vocab_w"], p["lin_vocab_b"], p["pgen_w"], p["pgen_b"])
    return out.reshape(b, t, vt).transpose(1, 0, 2)   # (T, B, Vt)


# ---------------------------------------------------------------------------
# Full forward pass (JAX glue: embedding gather, pos enc, final transpose)
# ---------------------------------------------------------------------------

def sinusoidal_pos(length, d_model):
    pos = jnp.arange(length, dtype=jnp.float32)[:, None]
    div = jnp.exp(jnp.arange(0, d_model, 2, dtype=jnp.float32)
                  * (-math.log(10000.0) / d_model))
    phase = pos * div
    pe = jnp.zeros((length, d_model), jnp.float32)
    pe = pe.at[:, 0::2].set(jnp.sin(phase))
    pe = pe.at[:, 1::2].set(jnp.cos(phase))
    return pe


def transformer_forward(params, cfg, src, char, tgt, edge_path_seqs):
    # char / edge_path_seqs unused: withcharemb=False, tgt_pos_enc_type='seq'.
    d = cfg["d_model"]
    s, _ = src.shape
    t = tgt.shape[0]
    src_bm = src.T.astype(jnp.int32)     # (B,S) batch-major
    tgt_bm = tgt.T.astype(jnp.int32)     # (B,T)

    # TODO(synk): embedding gather kept in plain JAX (dynamic vocab gather has no clean
    # single-block Pallas equivalent at this scale); dropout p=0 is identity.
    x_in = jnp.take(params["encoder_src"], src_bm, axis=0) + sinusoidal_pos(s, d)[None]
    y_in = jnp.take(params["encoder_tgt"], tgt_bm, axis=0) + sinusoidal_pos(t, d)[None]

    enc_hs = run_encoder(params["enc"], x_in, src_bm[:, None, :], cfg)
    dec_hs, attn = run_decoder(params["dec"], y_in, enc_hs, tgt_bm[:, None, :], cfg)
    return run_head(params["head"], dec_hs, enc_hs, attn, y_in, src_bm[:, :, None], cfg)


# ---------------------------------------------------------------------------
# Deterministic parameter initialization (stacked per-layer weights)
# ---------------------------------------------------------------------------

def init_params(key, cfg):
    d, ff = cfg["d_model"], cfg["dim_feedforward"]
    vs, vt = cfg["vocabsrc_size"], cfg["vocabtgt_size"]
    le, ld = cfg["num_encoder_layers"], cfg["num_decoder_layers"]
    keys = iter(jax.random.split(key, 64))

    def w(shape, scale=0.02):     # MXU weights stored in bf16
        return (scale * jax.random.normal(next(keys), shape, jnp.float32)).astype(jnp.bfloat16)

    def zeros(shape):
        return jnp.zeros(shape, jnp.float32)

    def ones(shape):
        return jnp.ones(shape, jnp.float32)

    enc = dict(
        wqkv=w((le, d, 3 * d)), bqkv=zeros((le, 1, 3 * d)),
        wo=w((le, d, d)), bo=zeros((le, 1, d)),
        n1g=ones((le, 1, d)), n1b=zeros((le, 1, d)),
        n2g=ones((le, 1, d)), n2b=zeros((le, 1, d)),
        w1=w((le, d, ff)), b1=zeros((le, 1, ff)),
        w2=w((le, ff, d)), b2=zeros((le, 1, d)),
        enc_norm_g=ones((1, d)), enc_norm_b=zeros((1, d)),
    )
    dec = dict(
        sa_wqkv=w((ld, d, 3 * d)), sa_bqkv=zeros((ld, 1, 3 * d)),
        sa_wo=w((ld, d, d)), sa_bo=zeros((ld, 1, d)),
        ca_wq=w((ld, d, d)), ca_bq=zeros((ld, 1, d)),
        ca_wkv=w((ld, d, 2 * d)), ca_bkv=zeros((ld, 1, 2 * d)),
        ca_wo=w((ld, d, d)), ca_bo=zeros((ld, 1, d)),
        n1g=ones((ld, 1, d)), n1b=zeros((ld, 1, d)),
        n2g=ones((ld, 1, d)), n2b=zeros((ld, 1, d)),
        n3g=ones((ld, 1, d)), n3b=zeros((ld, 1, d)),
        w1=w((ld, d, ff)), b1=zeros((ld, 1, ff)),
        w2=w((ld, ff, d)), b2=zeros((ld, 1, d)),
        dec_norm_g=ones((1, d)), dec_norm_b=zeros((1, d)),
    )
    head = dict(
        lin_vocab_w=w((d, vt)), lin_vocab_b=zeros((1, vt)),
        pgen_w=0.02 * jax.random.normal(next(keys), (1, 3 * d), jnp.float32),
        pgen_b=zeros((1, 1)),
    )
    return dict(
        encoder_src=jax.random.normal(next(keys), (vs, d), jnp.float32),
        encoder_tgt=jax.random.normal(next(keys), (vt, d), jnp.float32),
        enc=enc, dec=dec, head=head,
    )


# ---------------------------------------------------------------------------
# Main
# ---------------------------------------------------------------------------

if __name__ == "__main__":
    cfg = dict(
        d_model=32, nhead=4, num_encoder_layers=2, num_decoder_layers=2,
        dim_feedforward=64, vocabsrc_size=24, vocabtgt_size=32,
        vocab_pad_id=0, max_path_depth=4, tgt_pos_enc_type="seq",
        enable_copy=True,
    )
    assert cfg["d_model"] % cfg["max_path_depth"] == 0  # check_hyperparameters

    key = jax.random.PRNGKey(0)
    kp, ksrc, ktgt = jax.random.split(key, 3)
    params = init_params(kp, cfg)

    S, T, B, P, C = 8, 8, 2, cfg["max_path_depth"], 6
    # token ids >= 1 so there are no padding positions in the toy inputs
    src = jax.random.randint(ksrc, (S, B), 1, cfg["vocabsrc_size"], dtype=jnp.int32)
    tgt = jax.random.randint(ktgt, (T, B), 1, cfg["vocabtgt_size"], dtype=jnp.int32)
    char = jnp.zeros((S, B, C), jnp.int32)             # unused: withcharemb=False
    edge_path_seqs = jnp.zeros((T, B, P), jnp.int32)   # unused: tgt_pos_enc_type='seq'

    @jax.jit
    def fwd(src_, char_, tgt_, eps_):
        return transformer_forward(params, cfg, src_, char_, tgt_, eps_)

    out = jax.block_until_ready(fwd(src, char, tgt, edge_path_seqs))

    assert out.shape == (T, B, cfg["vocabtgt_size"])
    assert bool(jnp.all(jnp.isfinite(out)))
    # log-probabilities (small slack for approx-reciprocal softmax / bf16 matmuls)
    assert bool(jnp.all(out <= 1e-2))
    print("KERNEL_OK")
</pallas_src>

<mosaic_0001>
module attributes {stable_mosaic.version = 11 : i64} {
  func.func @_encoder_kernel(%arg0: i32, %arg1: memref<2x8x32xf32, #tpu.memory_space<vmem>>, %arg2: memref<2x1x8xi32, #tpu.memory_space<vmem>>, %arg3: memref<1x32xf32, #tpu.memory_space<vmem>>, %arg4: memref<1x32xf32, #tpu.memory_space<vmem>>, %arg5: memref<1x32x96xbf16, #tpu.memory_space<vmem>>, %arg6: memref<1x1x96xf32, #tpu.memory_space<vmem>>, %arg7: memref<1x32x32xbf16, #tpu.memory_space<vmem>>, %arg8: memref<1x1x32xf32, #tpu.memory_space<vmem>>, %arg9: memref<1x1x32xf32, #tpu.memory_space<vmem>>, %arg10: memref<1x1x32xf32, #tpu.memory_space<vmem>>, %arg11: memref<1x1x32xf32, #tpu.memory_space<vmem>>, %arg12: memref<1x1x32xf32, #tpu.memory_space<vmem>>, %arg13: memref<1x32x64xbf16, #tpu.memory_space<vmem>>, %arg14: memref<1x1x64xf32, #tpu.memory_space<vmem>>, %arg15: memref<1x64x32xbf16, #tpu.memory_space<vmem>>, %arg16: memref<1x1x32xf32, #tpu.memory_space<vmem>>, %arg17: memref<2x8x32xf32, #tpu.memory_space<vmem>>, %arg18: memref<16x32xf32, #tpu.memory_space<vmem>>) attributes {dimension_semantics = [#tpu.dimension_semantics<arbitrary>], iteration_bounds = array<i64: 2>, scalar_prefetch = 0 : i64, scratch_operands = 1 : i64, tpu.core_type = #tpu.core_type<tc>, window_params = [{pipeline_mode = #tpu.pipeline_mode<synchronous>, transform_indices = @transform_0, window_bounds = array<i64: 2, 8, 32>}, {pipeline_mode = #tpu.pipeline_mode<synchronous>, transform_indices = @transform_1, window_bounds = array<i64: 2, 1, 8>}, {pipeline_mode = #tpu.pipeline_mode<synchronous>, transform_indices = @transform_2, window_bounds = array<i64: 1, 32>}, {pipeline_mode = #tpu.pipeline_mode<synchronous>, transform_indices = @transform_3, window_bounds = array<i64: 1, 32>}, {transform_indices = @transform_4, window_bounds = array<i64: 1, 32, 96>}, {transform_indices = @transform_5, window_bounds = array<i64: 1, 1, 96>}, {transform_indices = @transform_6, window_bounds = array<i64: 1, 32, 32>}, {transform_indices = @transform_7, window_bounds = array<i64: 1, 1, 32>}, {transform_indices = @transform_8, window_bounds = array<i64: 1, 1, 32>}, {transform_indices = @transform_9, window_bounds = array<i64: 1, 1, 32>}, {transform_indices = @transform_10, window_bounds = array<i64: 1, 1, 32>}, {transform_indices = @transform_11, window_bounds = array<i64: 1, 1, 32>}, {transform_indices = @transform_12, window_bounds = array<i64: 1, 32, 64>}, {transform_indices = @transform_13, window_bounds = array<i64: 1, 1, 64>}, {transform_indices = @transform_14, window_bounds = array<i64: 1, 64, 32>}, {transform_indices = @transform_15, window_bounds = array<i64: 1, 1, 32>}, {pipeline_mode = #tpu.pipeline_mode<synchronous>, transform_indices = @transform_16, window_bounds = array<i64: 2, 8, 32>}]} {
    %c0_i32 = arith.constant 0 : i32
    %0 = arith.cmpi eq, %arg0, %c0_i32 : i32
    %1 = arith.extui %0 : i1 to i32
    %c0_i32_0 = arith.constant 0 : i32
    %2 = arith.cmpi ne, %1, %c0_i32_0 : i32
    scf.if %2 {
      %c0_81 = arith.constant 0 : index
      %c0_82 = arith.constant 0 : index
      %c0_83 = arith.constant 0 : index
      %202 = vector.load %arg1[%c0_81, %c0_82, %c0_83] : memref<2x8x32xf32, #tpu.memory_space<vmem>>, vector<2x8x32xf32>
      %203 = vector.shape_cast %202 : vector<2x8x32xf32> to vector<16x32xf32>
      %c0_84 = arith.constant 0 : index
      %c0_85 = arith.constant 0 : index
      %204 = vector.load %arg18[%c0_84, %c0_85] : memref<16x32xf32, #tpu.memory_space<vmem>>, vector<16x32xf32>
      tpu.vector_store %arg18[%c0_84, %c0_85], %203 {strides = array<i32>} : memref<16x32xf32, #tpu.memory_space<vmem>>, vector<16x32xf32>,
    } else {
    }
    %c0 = arith.constant 0 : index
    %c0_1 = arith.constant 0 : index
    %3 = vector.load %arg18[%c0, %c0_1] : memref<16x32xf32, #tpu.memory_space<vmem>>, vector<16x32xf32>
    %c0_2 = arith.constant 0 : index
    %c0_3 = arith.constant 0 : index
    %c0_4 = arith.constant 0 : index
    %4 = vector.load %arg2[%c0_2, %c0_3, %c0_4] : memref<2x1x8xi32, #tpu.memory_space<vmem>>, vector<2x1x8xi32>
    %c0_i32_5 = arith.constant 0 : i32
    %5 = vector.broadcast %c0_i32_5 : i32 to vector<2x1x8xi32>
    %6 = arith.cmpi eq, %4, %5 : vector<2x1x8xi32>
    %cst = arith.constant -1.000000e+09 : f32
    %cst_6 = arith.constant 0.000000e+00 : f32
    %7 = vector.broadcast %cst : f32 to vector<2x1x8xf32>
    %8 = vector.broadcast %cst_6 : f32 to vector<2x1x8xf32>
    %9 = arith.select %6, %7, %8 : vector<2x1x8xi1>, vector<2x1x8xf32>
    %c0_7 = arith.constant 0 : index
    %c0_8 = arith.constant 0 : index
    %c0_9 = arith.constant 0 : index
    %10 = vector.load %arg5[%c0_7, %c0_8, %c0_9] : memref<1x32x96xbf16, #tpu.memory_space<vmem>>, vector<1x32x96xbf16>
    %11 = vector.shape_cast %10 : vector<1x32x96xbf16> to vector<32x96xbf16>
    %12 = arith.truncf %3 : vector<16x32xf32> to vector<16x32xbf16>
    %cst_10 = arith.constant dense<0.000000e+00> : vector<16x96xf32>
    %13 = tpu.matmul %12, %11, %cst_10 {dimension_numbers = #tpu.dot_dimension_numbers<[1], [0], [0], [1], [0, 0, 1, 1], [], []>} : vector<16x32xbf16>, vector<32x96xbf16>, vector<16x96xf32> -> vector<16x96xf32>
    %c0_11 = arith.constant 0 : index
    %c0_12 = arith.constant 0 : index
    %c0_13 = arith.constant 0 : index
    %14 = vector.load %arg6[%c0_11, %c0_12, %c0_13] : memref<1x1x96xf32, #tpu.memory_space<vmem>>, vector<1x1x96xf32>
    %15 = vector.shape_cast %14 : vector<1x1x96xf32> to vector<1x96xf32>
    %16 = vector.broadcast %15 : vector<1x96xf32> to vector<16x96xf32>
    %17 = arith.addf %13, %16 : vector<16x96xf32>
    %18 = vector.extract_strided_slice %17 {offsets = [0, 0], sizes = [16, 32], strides = [1, 1]} : vector<16x96xf32> to vector<16x32xf32>
    %19 = vector.shape_cast %18 : vector<16x32xf32> to vector<2x8x32xf32>
    %20 = vector.extract_strided_slice %17 {offsets = [0, 32], sizes = [16, 32], strides = [1, 1]} : vector<16x96xf32> to vector<16x32xf32>
    %21 = vector.shape_cast %20 : vector<16x32xf32> to vector<2x8x32xf32>
    %22 = vector.extract_strided_slice %17 {offsets = [0, 64], sizes = [16, 32], strides = [1, 1]} : vector<16x96xf32> to vector<16x32xf32>
    %23 = vector.shape_cast %22 : vector<16x32xf32> to vector<2x8x32xf32>
    %24 = vector.extract_strided_slice %19 {offsets = [0, 0, 0], sizes = [2, 8, 8], strides = [1, 1, 1]} : vector<2x8x32xf32> to vector<2x8x8xf32>
    %25 = arith.truncf %24 : vector<2x8x8xf32> to vector<2x8x8xbf16>
    %26 = vector.extract_strided_slice %21 {offsets = [0, 0, 0], sizes = [2, 8, 8], strides = [1, 1, 1]} : vector<2x8x32xf32> to vector<2x8x8xf32>
    %27 = arith.truncf %26 : vector<2x8x8xf32> to vector<2x8x8xbf16>
    "tpu.trace_start"() <{level = 10 : i32, message = "bqd,bkd->bqk"}> : () -> ()
    %cst_14 = arith.constant dense<0.000000e+00> : vector<2x8x8xf32>
    %28 = tpu.matmul %25, %27, %cst_14 {dimension_numbers = #tpu.dot_dimension_numbers<[2], [2], [1], [1], [0, 0, 0, 1, 1, 1], [0], [0]>} : vector<2x8x8xbf16>, vector<2x8x8xbf16>, vector<2x8x8xf32> -> vector<2x8x8xf32>
    "tpu.trace_stop"() : () -> ()
    %cst_15 = arith.constant 0.353553385 : f32
    %29 = vector.broadcast %cst_15 : f32 to vector<2x8x8xf32>
    %30 = arith.mulf %28, %29 : vector<2x8x8xf32>
    %31 = vector.broadcast %9 : vector<2x1x8xf32> to vector<2x8x8xf32>
    %32 = arith.addf %30, %31 : vector<2x8x8xf32>
    %cst_16 = arith.constant dense<0xFF800000> : vector<2x8xf32>
    %33 = vector.multi_reduction <maximumf>, %32, %cst_16 [2] : vector<2x8x8xf32> to vector<2x8xf32>
    %34 = vector.shape_cast %33 : vector<2x8xf32> to vector<2x8x1xf32>
    %35 = vector.broadcast %34 : vector<2x8x1xf32> to vector<2x8x8xf32>
    %36 = arith.subf %32, %35 : vector<2x8x8xf32>
    %37 = math.exp %36 : vector<2x8x8xf32>
    %cst_17 = arith.constant dense<0.000000e+00> : vector<2x8xf32>
    %38 = vector.multi_reduction <add>, %37, %cst_17 [2] : vector<2x8x8xf32> to vector<2x8xf32>
    %39 = vector.shape_cast %38 : vector<2x8xf32> to vector<2x8x1xf32>
    %40 = tpu.reciprocal %39 {approx = true} : vector<2x8x1xf32> -> vector<2x8x1xf32>
    %41 = vector.broadcast %40 : vector<2x8x1xf32> to vector<2x8x8xf32>
    %42 = arith.mulf %37, %41 : vector<2x8x8xf32>
    %43 = arith.truncf %42 : vector<2x8x8xf32> to vector<2x8x8xbf16>
    %44 = vector.extract_strided_slice %23 {offsets = [0, 0, 0], sizes = [2, 8, 8], strides = [1, 1, 1]} : vector<2x8x32xf32> to vector<2x8x8xf32>
    %45 = arith.truncf %44 : vector<2x8x8xf32> to vector<2x8x8xbf16>
    "tpu.trace_start"() <{level = 10 : i32, message = "bqk,bkd->bqd"}> : () -> ()
    %cst_18 = arith.constant dense<0.000000e+00> : vector<2x8x8xf32>
    %46 = tpu.matmul %43, %45, %cst_18 {dimension_numbers = #tpu.dot_dimension_numbers<[2], [1], [1], [2], [0, 0, 0, 1, 1, 2], [0], [0]>} : vector<2x8x8xbf16>, vector<2x8x8xbf16>, vector<2x8x8xf32> -> vector<2x8x8xf32>
    "tpu.trace_stop"() : () -> ()
    %47 = vector.extract_strided_slice %19 {offsets = [0, 0, 8], sizes = [2, 8, 8], strides = [1, 1, 1]} : vector<2x8x32xf32> to vector<2x8x8xf32>
    %48 = arith.truncf %47 : vector<2x8x8xf32> to vector<2x8x8xbf16>
    %49 = vector.extract_strided_slice %21 {offsets = [0, 0, 8], sizes = [2, 8, 8], strides = [1, 1, 1]} : vector<2x8x32xf32> to vector<2x8x8xf32>
    %50 = arith.truncf %49 : vector<2x8x8xf32> to vector<2x8x8xbf16>
    "tpu.trace_start"() <{level = 10 : i32, message = "bqd,bkd->bqk"}> : () -> ()
    %cst_19 = arith.constant dense<0.000000e+00> : vector<2x8x8xf32>
    %51 = tpu.matmul %48, %50, %cst_19 {dimension_numbers = #tpu.dot_dimension_numbers<[2], [2], [1], [1], [0, 0, 0, 1, 1, 1], [0], [0]>} : vector<2x8x8xbf16>, vector<2x8x8xbf16>, vector<2x8x8xf32> -> vector<2x8x8xf32>
    "tpu.trace_stop"() : () -> ()
    %cst_20 = arith.constant 0.353553385 : f32
    %52 = vector.broadcast %cst_20 : f32 to vector<2x8x8xf32>
    %53 = arith.mulf %51, %52 : vector<2x8x8xf32>
    %54 = vector.broadcast %9 : vector<2x1x8xf32> to vector<2x8x8xf32>
    %55 = arith.addf %53, %54 : vector<2x8x8xf32>
    %cst_21 = arith.constant dense<0xFF800000> : vector<2x8xf32>
    %56 = vector.multi_reduction <maximumf>, %55, %cst_21 [2] : vector<2x8x8xf32> to vector<2x8xf32>
    %57 = vector.shape_cast %56 : vector<2x8xf32> to vector<2x8x1xf32>
    %58 = vector.broadcast %57 : vector<2x8x1xf32> to vector<2x8x8xf32>
    %59 = arith.subf %55, %58 : vector<2x8x8xf32>
    %60 = math.exp %59 : vector<2x8x8xf32>
    %cst_22 = arith.constant dense<0.000000e+00> : vector<2x8xf32>
    %61 = vector.multi_reduction <add>, %60, %cst_22 [2] : vector<2x8x8xf32> to vector<2x8xf32>
    %62 = vector.shape_cast %61 : vector<2x8xf32> to vector<2x8x1xf32>
    %63 = tpu.reciprocal %62 {approx = true} : vector<2x8x1xf32> -> vector<2x8x1xf32>
    %64 = vector.broadcast %63 : vector<2x8x1xf32> to vector<2x8x8xf32>
    %65 = arith.mulf %60, %64 : vector<2x8x8xf32>
    %66 = arith.truncf %65 : vector<2x8x8xf32> to vector<2x8x8xbf16>
    %67 = vector.extract_strided_slice %23 {offsets = [0, 0, 8], sizes = [2, 8, 8], strides = [1, 1, 1]} : vector<2x8x32xf32> to vector<2x8x8xf32>
    %68 = arith.truncf %67 : vector<2x8x8xf32> to vector<2x8x8xbf16>
    "tpu.trace_start"() <{level = 10 : i32, message = "bqk,bkd->bqd"}> : () -> ()
    %cst_23 = arith.constant dense<0.000000e+00> : vector<2x8x8xf32>
    %69 = tpu.matmul %66, %68, %cst_23 {dimension_numbers = #tpu.dot_dimension_numbers<[2], [1], [1], [2], [0, 0, 0, 1, 1, 2], [0], [0]>} : vector<2x8x8xbf16>, vector<2x8x8xbf16>, vector<2x8x8xf32> -> vector<2x8x8xf32>
    "tpu.trace_stop"() : () -> ()
    %70 = vector.extract_strided_slice %19 {offsets = [0, 0, 16], sizes = [2, 8, 8], strides = [1, 1, 1]} : vector<2x8x32xf32> to vector<2x8x8xf32>
    %71 = arith.truncf %70 : vector<2x8x8xf32> to vector<2x8x8xbf16>
    %72 = vector.extract_strided_slice %21 {offsets = [0, 0, 16], sizes = [2, 8, 8], strides = [1, 1, 1]} : vector<2x8x32xf32> to vector<2x8x8xf32>
    %73 = arith.truncf %72 : vector<2x8x8xf32> to vector<2x8x8xbf16>
    "tpu.trace_start"() <{level = 10 : i32, message = "bqd,bkd->bqk"}> : () -> ()
    %cst_24 = arith.constant dense<0.000000e+00> : vector<2x8x8xf32>
    %74 = tpu.matmul %71, %73, %cst_24 {dimension_numbers = #tpu.dot_dimension_numbers<[2], [2], [1], [1], [0, 0, 0, 1, 1, 1], [0], [0]>} : vector<2x8x8xbf16>, vector<2x8x8xbf16>, vector<2x8x8xf32> -> vector<2x8x8xf32>
    "tpu.trace_stop"() : () -> ()
    %cst_25 = arith.constant 0.353553385 : f32
    %75 = vector.broadcast %cst_25 : f32 to vector<2x8x8xf32>
    %76 = arith.mulf %74, %75 : vector<2x8x8xf32>
    %77 = vector.broadcast %9 : vector<2x1x8xf32> to vector<2x8x8xf32>
    %78 = arith.addf %76, %77 : vector<2x8x8xf32>
    %cst_26 = arith.constant dense<0xFF800000> : vector<2x8xf32>
    %79 = vector.multi_reduction <maximumf>, %78, %cst_26 [2] : vector<2x8x8xf32> to vector<2x8xf32>
    %80 = vector.shape_cast %79 : vector<2x8xf32> to vector<2x8x1xf32>
    %81 = vector.broadcast %80 : vector<2x8x1xf32> to vector<2x8x8xf32>
    %82 = arith.subf %78, %81 : vector<2x8x8xf32>
    %83 = math.exp %82 : vector<2x8x8xf32>
    %cst_27 = arith.constant dense<0.000000e+00> : vector<2x8xf32>
    %84 = vector.multi_reduction <add>, %83, %cst_27 [2] : vector<2x8x8xf32> to vector<2x8xf32>
    %85 = vector.shape_cast %84 : vector<2x8xf32> to vector<2x8x1xf32>
    %86 = tpu.reciprocal %85 {approx = true} : vector<2x8x1xf32> -> vector<2x8x1xf32>
    %87 = vector.broadcast %86 : vector<2x8x1xf32> to vector<2x8x8xf32>
    %88 = arith.mulf %83, %87 : vector<2x8x8xf32>
    %89 = arith.truncf %88 : vector<2x8x8xf32> to vector<2x8x8xbf16>
    %90 = vector.extract_strided_slice %23 {offsets = [0, 0, 16], sizes = [2, 8, 8], strides = [1, 1, 1]} : vector<2x8x32xf32> to vector<2x8x8xf32>
    %91 = arith.truncf %90 : vector<2x8x8xf32> to vector<2x8x8xbf16>
    "tpu.trace_start"() <{level = 10 : i32, message = "bqk,bkd->bqd"}> : () -> ()
    %cst_28 = arith.constant dense<0.000000e+00> : vector<2x8x8xf32>
    %92 = tpu.matmul %89, %91, %cst_28 {dimension_numbers = #tpu.dot_dimension_numbers<[2], [1], [1], [2], [0, 0, 0, 1, 1, 2], [0], [0]>} : vector<2x8x8xbf16>, vector<2x8x8xbf16>, vector<2x8x8xf32> -> vector<2x8x8xf32>
    "tpu.trace_stop"() : () -> ()
    %93 = vector.extract_strided_slice %19 {offsets = [0, 0, 24], sizes = [2, 8, 8], strides = [1, 1, 1]} : vector<2x8x32xf32> to vector<2x8x8xf32>
    %94 = arith.truncf %93 : vector<2x8x8xf32> to vector<2x8x8xbf16>
    %95 = vector.extract_strided_slice %21 {offsets = [0, 0, 24], sizes = [2, 8, 8], strides = [1, 1, 1]} : vector<2x8x32xf32> to vector<2x8x8xf32>
    %96 = arith.truncf %95 : vector<2x8x8xf32> to vector<2x8x8xbf16>
    "tpu.trace_start"() <{level = 10 : i32, message = "bqd,bkd->bqk"}> : () -> ()
    %cst_29 = arith.constant dense<0.000000e+00> : vector<2x8x8xf32>
    %97 = tpu.matmul %94, %96, %cst_29 {dimension_numbers = #tpu.dot_dimension_numbers<[2], [2], [1], [1], [0, 0, 0, 1, 1, 1], [0], [0]>} : vector<2x8x8xbf16>, vector<2x8x8xbf16>, vector<2x8x8xf32> -> vector<2x8x8xf32>
    "tpu.trace_stop"() : () -> ()
    %cst_30 = arith.constant 0.353553385 : f32
    %98 = vector.broadcast %cst_30 : f32 to vector<2x8x8xf32>
    %99 = arith.mulf %97, %98 : vector<2x8x8xf32>
    %100 = vector.broadcast %9 : vector<2x1x8xf32> to vector<2x8x8xf32>
    %101 = arith.addf %99, %100 : vector<2x8x8xf32>
    %cst_31 = arith.constant dense<0xFF800000> : vector<2x8xf32>
    %102 = vector.multi_reduction <maximumf>, %101, %cst_31 [2] : vector<2x8x8xf32> to vector<2x8xf32>
    %103 = vector.shape_cast %102 : vector<2x8xf32> to vector<2x8x1xf32>
    %104 = vector.broadcast %103 : vector<2x8x1xf32> to vector<2x8x8xf32>
    %105 = arith.subf %101, %104 : vector<2x8x8xf32>
    %106 = math.exp %105 : vector<2x8x8xf32>
    %cst_32 = arith.constant dense<0.000000e+00> : vector<2x8xf32>
    %107 = vector.multi_reduction <add>, %106, %cst_32 [2] : vector<2x8x8xf32> to vector<2x8xf32>
    %108 = vector.shape_cast %107 : vector<2x8xf32> to vector<2x8x1xf32>
    %109 = tpu.reciprocal %108 {approx = true} : vector<2x8x1xf32> -> vector<2x8x1xf32>
    %110 = vector.broadcast %109 : vector<2x8x1xf32> to vector<2x8x8xf32>
    %111 = arith.mulf %106, %110 : vector<2x8x8xf32>
    %112 = arith.truncf %111 : vector<2x8x8xf32> to vector<2x8x8xbf16>
    %113 = vector.extract_strided_slice %23 {offsets = [0, 0, 24], sizes = [2, 8, 8], strides = [1, 1, 1]} : vector<2x8x32xf32> to vector<2x8x8xf32>
    %114 = arith.truncf %113 : vector<2x8x8xf32> to vector<2x8x8xbf16>
    "tpu.trace_start"() <{level = 10 : i32, message = "bqk,bkd->bqd"}> : () -> ()
    %cst_33 = arith.constant dense<0.000000e+00> : vector<2x8x8xf32>
    %115 = tpu.matmul %112, %114, %cst_33 {dimension_numbers = #tpu.dot_dimension_numbers<[2], [1], [1], [2], [0, 0, 0, 1, 1, 2], [0], [0]>} : vector<2x8x8xbf16>, vector<2x8x8xbf16>, vector<2x8x8xf32> -> vector<2x8x8xf32>
    "tpu.trace_stop"() : () -> ()
    %116 = tpu.concatenate %46, %69, %92, %115 in 2 : vector<2x8x8xf32>, vector<2x8x8xf32>, vector<2x8x8xf32>, vector<2x8x8xf32> -> vector<2x8x32xf32>
    %117 = vector.shape_cast %116 : vector<2x8x32xf32> to vector<16x32xf32>
    %c0_34 = arith.constant 0 : index
    %c0_35 = arith.constant 0 : index
    %c0_36 = arith.constant 0 : index
    %118 = vector.load %arg7[%c0_34, %c0_35, %c0_36] : memref<1x32x32xbf16, #tpu.memory_space<vmem>>, vector<1x32x32xbf16>
    %119 = vector.shape_cast %118 : vector<1x32x32xbf16> to vector<32x32xbf16>
    %120 = arith.truncf %117 : vector<16x32xf32> to vector<16x32xbf16>
    %cst_37 = arith.constant dense<0.000000e+00> : vector<16x32xf32>
    %121 = tpu.matmul %120, %119, %cst_37 {dimension_numbers = #tpu.dot_dimension_numbers<[1], [0], [0], [1], [0, 0, 1, 1], [], []>} : vector<16x32xbf16>, vector<32x32xbf16>, vector<16x32xf32> -> vector<16x32xf32>
    %c0_38 = arith.constant 0 : index
    %c0_39 = arith.constant 0 : index
    %c0_40 = arith.constant 0 : index
    %122 = vector.load %arg8[%c0_38, %c0_39, %c0_40] : memref<1x1x32xf32, #tpu.memory_space<vmem>>, vector<1x1x32xf32>
    %123 = vector.shape_cast %122 : vector<1x1x32xf32> to vector<1x32xf32>
    %124 = vector.broadcast %123 : vector<1x32xf32> to vector<16x32xf32>
    %125 = arith.addf %121, %124 : vector<16x32xf32>
    %126 = arith.addf %3, %125 : vector<16x32xf32>
    %c0_41 = arith.constant 0 : index
    %c0_42 = arith.constant 0 : index
    %c0_43 = arith.constant 0 : index
    %127 = vector.load %arg9[%c0_41, %c0_42, %c0_43] : memref<1x1x32xf32, #tpu.memory_space<vmem>>, vector<1x1x32xf32>
    %128 = vector.shape_cast %127 : vector<1x1x32xf32> to vector<1x32xf32>
    %c0_44 = arith.constant 0 : index
    %c0_45 = arith.constant 0 : index
    %c0_46 = arith.constant 0 : index
    %129 = vector.load %arg10[%c0_44, %c0_45, %c0_46] : memref<1x1x32xf32, #tpu.memory_space<vmem>>, vector<1x1x32xf32>
    %130 = vector.shape_cast %129 : vector<1x1x32xf32> to vector<1x32xf32>
    %cst_47 = arith.constant dense<0.000000e+00> : vector<16xf32>
    %131 = vector.multi_reduction <add>, %126, %cst_47 [1] : vector<16x32xf32> to vector<16xf32>
    %132 = vector.shape_cast %131 : vector<16xf32> to vector<16x1xf32>
    %cst_48 = arith.constant 3.200000e+01 : f32
    %133 = vector.broadcast %cst_48 : f32 to vector<16x1xf32>
    %134 = arith.divf %132, %133 : vector<16x1xf32>
    %135 = vector.broadcast %134 : vector<16x1xf32> to vector<16x32xf32>
    %136 = arith.subf %126, %135 : vector<16x32xf32>
    %137 = arith.mulf %136, %136 : vector<16x32xf32>
    %cst_49 = arith.constant dense<0.000000e+00> : vector<16xf32>
    %138 = vector.multi_reduction <add>, %137, %cst_49 [1] : vector<16x32xf32> to vector<16xf32>
    %139 = vector.shape_cast %138 : vector<16xf32> to vector<16x1xf32>
    %cst_50 = arith.constant 3.200000e+01 : f32
    %140 = vector.broadcast %cst_50 : f32 to vector<16x1xf32>
    %141 = arith.divf %139, %140 : vector<16x1xf32>
    %142 = vector.broadcast %134 : vector<16x1xf32> to vector<16x32xf32>
    %143 = arith.subf %126, %142 : vector<16x32xf32>
    %cst_51 = arith.constant 9.99999974E-6 : f32
    %144 = vector.broadcast %cst_51 : f32 to vector<16x1xf32>
    %145 = arith.addf %141, %144 : vector<16x1xf32>
    %146 = math.rsqrt %145 : vector<16x1xf32>
    %147 = vector.broadcast %146 : vector<16x1xf32> to vector<16x32xf32>
    %148 = arith.mulf %143, %147 : vector<16x32xf32>
    %149 = vector.broadcast %128 : vector<1x32xf32> to vector<16x32xf32>
    %150 = arith.mulf %148, %149 : vector<16x32xf32>
    %151 = vector.broadcast %130 : vector<1x32xf32> to vector<16x32xf32>
    %152 = arith.addf %150, %151 : vector<16x32xf32>
    %c0_52 = arith.constant 0 : index
    %c0_53 = arith.constant 0 : index
    %c0_54 = arith.constant 0 : index
    %153 = vector.load %arg13[%c0_52, %c0_53, %c0_54] : memref<1x32x64xbf16, #tpu.memory_space<vmem>>, vector<1x32x64xbf16>
    %154 = vector.shape_cast %153 : vector<1x32x64xbf16> to vector<32x64xbf16>
    %155 = arith.truncf %152 : vector<16x32xf32> to vector<16x32xbf16>
    %cst_55 = arith.constant dense<0.000000e+00> : vector<16x64xf32>
    %156 = tpu.matmul %155, %154, %cst_55 {dimension_numbers = #tpu.dot_dimension_numbers<[1], [0], [0], [1], [0, 0, 1, 1], [], []>} : vector<16x32xbf16>, vector<32x64xbf16>, vector<16x64xf32> -> vector<16x64xf32>
    %c0_56 = arith.constant 0 : index
    %c0_57 = arith.constant 0 : index
    %c0_58 = arith.constant 0 : index
    %157 = vector.load %arg14[%c0_56, %c0_57, %c0_58] : memref<1x1x64xf32, #tpu.memory_space<vmem>>, vector<1x1x64xf32>
    %158 = vector.shape_cast %157 : vector<1x1x64xf32> to vector<1x64xf32>
    %159 = vector.broadcast %158 : vector<1x64xf32> to vector<16x64xf32>
    %160 = arith.addf %156, %159 : vector<16x64xf32>
    %cst_59 = arith.constant 0.000000e+00 : f32
    %161 = vector.broadcast %cst_59 : f32 to vector<16x64xf32>
    %162 = arith.maximumf %160, %161 : vector<16x64xf32>
    %c0_60 = arith.constant 0 : index
    %c0_61 = arith.constant 0 : index
    %c0_62 = arith.constant 0 : index
    %163 = vector.load %arg15[%c0_60, %c0_61, %c0_62] : memref<1x64x32xbf16, #tpu.memory_space<vmem>>, vector<1x64x32xbf16>
    %164 = vector.shape_cast %163 : vector<1x64x32xbf16> to vector<64x32xbf16>
    %165 = arith.truncf %162 : vector<16x64xf32> to vector<16x64xbf16>
    %cst_63 = arith.constant dense<0.000000e+00> : vector<16x32xf32>
    %166 = tpu.matmul %165, %164, %cst_63 {dimension_numbers = #tpu.dot_dimension_numbers<[1], [0], [0], [1], [0, 0, 1, 1], [], []>} : vector<16x64xbf16>, vector<64x32xbf16>, vector<16x32xf32> -> vector<16x32xf32>
    %167 = arith.addf %152, %166 : vector<16x32xf32>
    %c0_64 = arith.constant 0 : index
    %c0_65 = arith.constant 0 : index
    %c0_66 = arith.constant 0 : index
    %168 = vector.load %arg16[%c0_64, %c0_65, %c0_66] : memref<1x1x32xf32, #tpu.memory_space<vmem>>, vector<1x1x32xf32>
    %169 = vector.shape_cast %168 : vector<1x1x32xf32> to vector<1x32xf32>
    %170 = vector.broadcast %169 : vector<1x32xf32> to vector<16x32xf32>
    %171 = arith.addf %167, %170 : vector<16x32xf32>
    %c0_67 = arith.constant 0 : index
    %c0_68 = arith.constant 0 : index
    %c0_69 = arith.constant 0 : index
    %172 = vector.load %arg11[%c0_67, %c0_68, %c0_69] : memref<1x1x32xf32, #tpu.memory_space<vmem>>, vector<1x1x32xf32>
    %173 = vector.shape_cast %172 : vector<1x1x32xf32> to vector<1x32xf32>
    %c0_70 = arith.constant 0 : index
    %c0_71 = arith.constant 0 : index
    %c0_72 = arith.constant 0 : index
    %174 = vector.load %arg12[%c0_70, %c0_71, %c0_72] : memref<1x1x32xf32, #tpu.memory_space<vmem>>, vector<1x1x32xf32>
    %175 = vector.shape_cast %174 : vector<1x1x32xf32> to vector<1x32xf32>
    %cst_73 = arith.constant dense<0.000000e+00> : vector<16xf32>
    %176 = vector.multi_reduction <add>, %171, %cst_73 [1] : vector<16x32xf32> to vector<16xf32>
    %177 = vector.shape_cast %176 : vector<16xf32> to vector<16x1xf32>
    %cst_74 = arith.constant 3.200000e+01 : f32
    %178 = vector.broadcast %cst_74 : f32 to vector<16x1xf32>
    %179 = arith.divf %177, %178 : vector<16x1xf32>
    %180 = vector.broadcast %179 : vector<16x1xf32> to vector<16x32xf32>
    %181 = arith.subf %171, %180 : vector<16x32xf32>
    %182 = arith.mulf %181, %181 : vector<16x32xf32>
    %cst_75 = arith.constant dense<0.000000e+00> : vector<16xf32>
    %183 = vector.multi_reduction <add>, %182, %cst_75 [1] : vector<16x32xf32> to vector<16xf32>
    %184 = vector.shape_cast %183 : vector<16xf32> to vector<16x1xf32>
    %cst_76 = arith.constant 3.200000e+01 : f32
    %185 = vector.broadcast %cst_76 : f32 to vector<16x1xf32>
    %186 = arith.divf %184, %185 : vector<16x1xf32>
    %187 = vector.broadcast %179 : vector<16x1xf32> to vector<16x32xf32>
    %188 = arith.subf %171, %187 : vector<16x32xf32>
    %cst_77 = arith.constant 9.99999974E-6 : f32
    %189 = vector.broadcast %cst_77 : f32 to vector<16x1xf32>
    %190 = arith.addf %186, %189 : vector<16x1xf32>
    %191 = math.rsqrt %190 : vector<16x1xf32>
    %192 = vector.broadcast %191 : vector<16x1xf32> to vector<16x32xf32>
    %193 = arith.mulf %188, %192 : vector<16x32xf32>
    %194 = vector.broadcast %173 : vector<1x32xf32> to vector<16x32xf32>
    %195 = arith.mulf %193, %194 : vector<16x32xf32>
    %196 = vector.broadcast %175 : vector<1x32xf32> to vector<16x32xf32>
    %197 = arith.addf %195, %196 : vector<16x32xf32>
    %c0_78 = arith.constant 0 : index
    %c0_79 = arith.constant 0 : index
    %198 = vector.load %arg18[%c0_78, %c0_79] : memref<16x32xf32, #tpu.memory_space<vmem>>, vector<16x32xf32>
    tpu.vector_store %arg18[%c0_78, %c0_79], %197 {strides = array<i32>} : memref<16x32xf32, #tpu.memory_space<vmem>>, vector<16x32xf32>,
    %c1_i32 = arith.constant 1 : i32
    %199 = arith.cmpi eq, %arg0, %c1_i32 : i32
    %200 = arith.extui %199 : i1 to i32
    %c0_i32_80 = arith.constant 0 : i32
    %201 = arith.cmpi ne, %200, %c0_i32_80 : i32
    scf.if %201 {
      %c0_81 = arith.constant 0 : index
      %c0_82 = arith.constant 0 : index
      %202 = vector.load %arg3[%c0_81, %c0_82] : memref<1x32xf32, #tpu.memory_space<vmem>>, vector<1x32xf32>
      %c0_83 = arith.constant 0 : index
      %c0_84 = arith.constant 0 : index
      %203 = vector.load %arg4[%c0_83, %c0_84] : memref<1x32xf32, #tpu.memory_space<vmem>>, vector<1x32xf32>
      %cst_85 = arith.constant dense<0.000000e+00> : vector<16xf32>
      %204 = vector.multi_reduction <add>, %197, %cst_85 [1] : vector<16x32xf32> to vector<16xf32>
      %205 = vector.shape_cast %204 : vector<16xf32> to vector<16x1xf32>
      %cst_86 = arith.constant 3.200000e+01 : f32
      %206 = vector.broadcast %cst_86 : f32 to vector<16x1xf32>
      %207 = arith.divf %205, %206 : vector<16x1xf32>
      %208 = vector.broadcast %207 : vector<16x1xf32> to vector<16x32xf32>
      %209 = arith.subf %197, %208 : vector<16x32xf32>
      %210 = arith.mulf %209, %209 : vector<16x32xf32>
      %cst_87 = arith.constant dense<0.000000e+00> : vector<16xf32>
      %211 = vector.multi_reduction <add>, %210, %cst_87 [1] : vector<16x32xf32> to vector<16xf32>
      %212 = vector.shape_cast %211 : vector<16xf32> to vector<16x1xf32>
      %cst_88 = arith.constant 3.200000e+01 : f32
      %213 = vector.broadcast %cst_88 : f32 to vector<16x1xf32>
      %214 = arith.divf %212, %213 : vector<16x1xf32>
      %215 = vector.broadcast %207 : vector<16x1xf32> to vector<16x32xf32>
      %216 = arith.subf %197, %215 : vector<16x32xf32>
      %cst_89 = arith.constant 9.99999974E-6 : f32
      %217 = vector.broadcast %cst_89 : f32 to vector<16x1xf32>
      %218 = arith.addf %214, %217 : vector<16x1xf32>
      %219 = math.rsqrt %218 : vector<16x1xf32>
      %220 = vector.broadcast %219 : vector<16x1xf32> to vector<16x32xf32>
      %221 = arith.mulf %216, %220 : vector<16x32xf32>
      %222 = vector.broadcast %202 : vector<1x32xf32> to vector<16x32xf32>
      %223 = arith.mulf %221, %222 : vector<16x32xf32>
      %224 = vector.broadcast %203 : vector<1x32xf32> to vector<16x32xf32>
      %225 = arith.addf %223, %224 : vector<16x32xf32>
      %226 = vector.shape_cast %225 : vector<16x32xf32> to vector<2x8x32xf32>
      %c0_90 = arith.constant 0 : index
      %c0_91 = arith.constant 0 : index
      %c0_92 = arith.constant 0 : index
      %227 = vector.load %arg17[%c0_90, %c0_91, %c0_92] : memref<2x8x32xf32, #tpu.memory_space<vmem>>, vector<2x8x32xf32>
      tpu.vector_store %arg17[%c0_90, %c0_91, %c0_92], %226 {strides = array<i32>} : memref<2x8x32xf32, #tpu.memory_space<vmem>>, vector<2x8x32xf32>,
    } else {
    }
    return
  }
  func.func @transform_0(%arg0: i32) -> (i32, i32, i32) {
    %c0_i32 = arith.constant 0 : i32
    %c0_i32_0 = arith.constant 0 : i32
    %c0_i32_1 = arith.constant 0 : i32
    %c0_i32_2 = arith.constant 0 : i32
    return %c0_i32, %c0_i32_0, %c0_i32_1 : i32, i32, i32
  }
  func.func @transform_1(%arg0: i32) -> (i32, i32, i32) {
    %c0_i32 = arith.constant 0 : i32
    %c0_i32_0 = arith.constant 0 : i32
    %c0_i32_1 = arith.constant 0 : i32
    %c0_i32_2 = arith.constant 0 : i32
    return %c0_i32, %c0_i32_0, %c0_i32_1 : i32, i32, i32
  }
  func.func @transform_2(%arg0: i32) -> (i32, i32) {
    %c0_i32 = arith.constant 0 : i32
    %c0_i32_0 = arith.constant 0 : i32
    %c0_i32_1 = arith.constant 0 : i32
    return %c0_i32, %c0_i32_0 : i32, i32
  }
  func.func @transform_3(%arg0: i32) -> (i32, i32) {
    %c0_i32 = arith.constant 0 : i32
    %c0_i32_0 = arith.constant 0 : i32
    %c0_i32_1 = arith.constant 0 : i32
    return %c0_i32, %c0_i32_0 : i32, i32
  }
  func.func @transform_4(%arg0: i32) -> (i32, i32, i32) {
    %c0_i32 = arith.constant 0 : i32
    %c0_i32_0 = arith.constant 0 : i32
    %c0_i32_1 = arith.constant 0 : i32
    return %arg0, %c0_i32, %c0_i32_0 : i32, i32, i32
  }
  func.func @transform_5(%arg0: i32) -> (i32, i32, i32) {
    %c0_i32 = arith.constant 0 : i32
    %c0_i32_0 = arith.constant 0 : i32
    %c0_i32_1 = arith.constant 0 : i32
    return %arg0, %c0_i32, %c0_i32_0 : i32, i32, i32
  }
  func.func @transform_6(%arg0: i32) -> (i32, i32, i32) {
    %c0_i32 = arith.constant 0 : i32
    %c0_i32_0 = arith.constant 0 : i32
    %c0_i32_1 = arith.constant 0 : i32
    return %arg0, %c0_i32, %c0_i32_0 : i32, i32, i32
  }
  func.func @transform_7(%arg0: i32) -> (i32, i32, i32) {
    %c0_i32 = arith.constant 0 : i32
    %c0_i32_0 = arith.constant 0 : i32
    %c0_i32_1 = arith.constant 0 : i32
    return %arg0, %c0_i32, %c0_i32_0 : i32, i32, i32
  }
  func.func @transform_8(%arg0: i32) -> (i32, i32, i32) {
    %c0_i32 = arith.constant 0 : i32
    %c0_i32_0 = arith.constant 0 : i32
    %c0_i32_1 = arith.constant 0 : i32
    return %arg0, %c0_i32, %c0_i32_0 : i32, i32, i32
  }
  func.func @transform_9(%arg0: i32) -> (i32, i32, i32) {
    %c0_i32 = arith.constant 0 : i32
    %c0_i32_0 = arith.constant 0 : i32
    %c0_i32_1 = arith.constant 0 : i32
    return %arg0, %c0_i32, %c0_i32_0 : i32, i32, i32
  }
  func.func @transform_10(%arg0: i32) -> (i32, i32, i32) {
    %c0_i32 = arith.constant 0 : i32
    %c0_i32_0 = arith.constant 0 : i32
    %c0_i32_1 = arith.constant 0 : i32
    return %arg0, %c0_i32, %c0_i32_0 : i32, i32, i32
  }
  func.func @transform_11(%arg0: i32) -> (i32, i32, i32) {
    %c0_i32 = arith.constant 0 : i32
    %c0_i32_0 = arith.constant 0 : i32
    %c0_i32_1 = arith.constant 0 : i32
    return %arg0, %c0_i32, %c0_i32_0 : i32, i32, i32
  }
  func.func @transform_12(%arg0: i32) -> (i32, i32, i32) {
    %c0_i32 = arith.constant 0 : i32
    %c0_i32_0 = arith.constant 0 : i32
    %c0_i32_1 = arith.constant 0 : i32
    return %arg0, %c0_i32, %c0_i32_0 : i32, i32, i32
  }
  func.func @transform_13(%arg0: i32) -> (i32, i32, i32) {
    %c0_i32 = arith.constant 0 : i32
    %c0_i32_0 = arith.constant 0 : i32
    %c0_i32_1 = arith.constant 0 : i32
    return %arg0, %c0_i32, %c0_i32_0 : i32, i32, i32
  }
  func.func @transform_14(%arg0: i32) -> (i32, i32, i32) {
    %c0_i32 = arith.constant 0 : i32
    %c0_i32_0 = arith.constant 0 : i32
    %c0_i32_1 = arith.constant 0 : i32
    return %arg0, %c0_i32, %c0_i32_0 : i32, i32, i32
  }
  func.func @transform_15(%arg0: i32) -> (i32, i32, i32) {
    %c0_i32 = arith.constant 0 : i32
    %c0_i32_0 = arith.constant 0 : i32
    %c0_i32_1 = arith.constant 0 : i32
    return %arg0, %c0_i32, %c0_i32_0 : i32, i32, i32
  }
  func.func @transform_16(%arg0: i32) -> (i32, i32, i32) {
    %c0_i32 = arith.constant 0 : i32
    %c0_i32_0 = arith.constant 0 : i32
    %c0_i32_1 = arith.constant 0 : i32
    %c0_i32_2 = arith.constant 0 : i32
    return %c0_i32, %c0_i32_0, %c0_i32_1 : i32, i32, i32
  }
}

module attributes {stable_mosaic.version = 11 : i64} {
  func.func @_head_kernel(%arg0: memref<2x8x32xf32, #tpu.memory_space<vmem>>, %arg1: memref<2x8x32xf32, #tpu.memory_space<vmem>>, %arg2: memref<2x8x8xf32, #tpu.memory_space<vmem>>, %arg3: memref<2x8x32xf32, #tpu.memory_space<vmem>>, %arg4: memref<2x8x1xi32, #tpu.memory_space<vmem>>, %arg5: memref<32x32xbf16, #tpu.memory_space<vmem>>, %arg6: memref<1x32xf32, #tpu.memory_space<vmem>>, %arg7: memref<1x96xf32, #tpu.memory_space<vmem>>, %arg8: memref<1x1xf32, #tpu.memory_space<vmem>>, %arg9: memref<16x32xf32, #tpu.memory_space<vmem>>) attributes {dimension_semantics = [], scalar_prefetch = 0 : i64, scratch_operands = 0 : i64, tpu.core_type = #tpu.core_type<tc>} {
    %c0 = arith.constant 0 : index
    %c0_0 = arith.constant 0 : index
    %c0_1 = arith.constant 0 : index
    %0 = vector.load %arg0[%c0, %c0_0, %c0_1] : memref<2x8x32xf32, #tpu.memory_space<vmem>>, vector<2x8x32xf32>
    %c0_2 = arith.constant 0 : index
    %c0_3 = arith.constant 0 : index
    %c0_4 = arith.constant 0 : index
    %1 = vector.load %arg1[%c0_2, %c0_3, %c0_4] : memref<2x8x32xf32, #tpu.memory_space<vmem>>, vector<2x8x32xf32>
    %c0_5 = arith.constant 0 : index
    %c0_6 = arith.constant 0 : index
    %c0_7 = arith.constant 0 : index
    %2 = vector.load %arg2[%c0_5, %c0_6, %c0_7] : memref<2x8x8xf32, #tpu.memory_space<vmem>>, vector<2x8x8xf32>
    %c0_8 = arith.constant 0 : index
    %c0_9 = arith.constant 0 : index
    %c0_10 = arith.constant 0 : index
    %3 = vector.load %arg3[%c0_8, %c0_9, %c0_10] : memref<2x8x32xf32, #tpu.memory_space<vmem>>, vector<2x8x32xf32>
    "tpu.trace_start"() <{level = 10 : i32, message = "bts,bsd->btd"}> : () -> ()
    %cst = arith.constant dense<0.000000e+00> : vector<2x8x32xf32>
    %4 = tpu.matmul %2, %1, %cst {dimension_numbers = #tpu.dot_dimension_numbers<[2], [1], [1], [2], [0, 0, 0, 1, 1, 2], [0], [0]>} : vector<2x8x8xf32>, vector<2x8x32xf32>, vector<2x8x32xf32> -> vector<2x8x32xf32>
    "tpu.trace_stop"() : () -> ()
    %5 = tpu.concatenate %4, %0, %3 in 2 : vector<2x8x32xf32>, vector<2x8x32xf32>, vector<2x8x32xf32> -> vector<2x8x96xf32>
    %6 = vector.shape_cast %5 : vector<2x8x96xf32> to vector<16x96xf32>
    %c0_11 = arith.constant 0 : index
    %c0_12 = arith.constant 0 : index
    %7 = vector.load %arg7[%c0_11, %c0_12] : memref<1x96xf32, #tpu.memory_space<vmem>>, vector<1x96xf32>
    %8 = vector.broadcast %7 : vector<1x96xf32> to vector<16x96xf32>
    %9 = arith.mulf %6, %8 : vector<16x96xf32>
    %cst_13 = arith.constant dense<0.000000e+00> : vector<16xf32>
    %10 = vector.multi_reduction <add>, %9, %cst_13 [1] : vector<16x96xf32> to vector<16xf32>
    %11 = vector.shape_cast %10 : vector<16xf32> to vector<16x1xf32>
    %c0_14 = arith.constant 0 : index
    %c0_15 = arith.constant 0 : index
    %12 = vector.load %arg8[%c0_14, %c0_15] : memref<1x1xf32, #tpu.memory_space<vmem>>, vector<1x1xf32>
    %13 = vector.broadcast %12 : vector<1x1xf32> to vector<16x1xf32>
    %14 = arith.addf %11, %13 : vector<16x1xf32>
    %15 = arith.negf %14 : vector<16x1xf32>
    %16 = math.exp %15 : vector<16x1xf32>
    %cst_16 = arith.constant 1.000000e+00 : f32
    %17 = vector.broadcast %cst_16 : f32 to vector<16x1xf32>
    %18 = arith.addf %17, %16 : vector<16x1xf32>
    %19 = arith.divf %17, %18 : vector<16x1xf32>
    %20 = vector.shape_cast %0 : vector<2x8x32xf32> to vector<16x32xf32>
    %c0_17 = arith.constant 0 : index
    %c0_18 = arith.constant 0 : index
    %21 = vector.load %arg5[%c0_17, %c0_18] : memref<32x32xbf16, #tpu.memory_space<vmem>>, vector<32x32xbf16>
    %22 = arith.truncf %20 : vector<16x32xf32> to vector<16x32xbf16>
    %cst_19 = arith.constant dense<0.000000e+00> : vector<16x32xf32>
    %23 = tpu.matmul %22, %21, %cst_19 {dimension_numbers = #tpu.dot_dimension_numbers<[1], [0], [0], [1], [0, 0, 1, 1], [], []>} : vector<16x32xbf16>, vector<32x32xbf16>, vector<16x32xf32> -> vector<16x32xf32>
    %c0_20 = arith.constant 0 : index
    %c0_21 = arith.constant 0 : index
    %24 = vector.load %arg6[%c0_20, %c0_21] : memref<1x32xf32, #tpu.memory_space<vmem>>, vector<1x32xf32>
    %25 = vector.broadcast %24 : vector<1x32xf32> to vector<16x32xf32>
    %26 = arith.addf %23, %25 : vector<16x32xf32>
    %cst_22 = arith.constant dense<0xFF800000> : vector<16xf32>
    %27 = vector.multi_reduction <maximumf>, %26, %cst_22 [1] : vector<16x32xf32> to vector<16xf32>
    %28 = vector.shape_cast %27 : vector<16xf32> to vector<16x1xf32>
    %29 = vector.broadcast %28 : vector<16x1xf32> to vector<16x32xf32>
    %30 = arith.subf %26, %29 : vector<16x32xf32>
    %31 = math.exp %30 : vector<16x32xf32>
    %cst_23 = arith.constant dense<0.000000e+00> : vector<16xf32>
    %32 = vector.multi_reduction <add>, %31, %cst_23 [1] : vector<16x32xf32> to vector<16xf32>
    %33 = vector.shape_cast %32 : vector<16xf32> to vector<16x1xf32>
    %34 = math.log %33 : vector<16x1xf32>
    %35 = arith.addf %34, %28 : vector<16x1xf32>
    %36 = vector.broadcast %35 : vector<16x1xf32> to vector<16x32xf32>
    %37 = arith.subf %26, %36 : vector<16x32xf32>
    %38 = math.exp %37 : vector<16x32xf32>
    %39 = tpu.iota {dimensions = array<i32: 2>} : vector<2x8x32xi32>
    %c0_24 = arith.constant 0 : index
    %c0_25 = arith.constant 0 : index
    %c0_26 = arith.constant 0 : index
    %40 = vector.load %arg4[%c0_24, %c0_25, %c0_26] : memref<2x8x1xi32, #tpu.memory_space<vmem>>, vector<2x8x1xi32>
    %c8_i32 = arith.constant 8 : i32
    %41 = vector.broadcast %c8_i32 : i32 to vector<2x8x1xi32>
    %42 = arith.addi %40, %41 : vector<2x8x1xi32>
    %43 = vector.broadcast %42 : vector<2x8x1xi32> to vector<2x8x32xi32>
    %44 = arith.cmpi eq, %43, %39 : vector<2x8x32xi32>
    %45 = arith.extui %44 : vector<2x8x32xi1> to vector<2x8x32xi32>
    %46 = arith.sitofp %45 : vector<2x8x32xi32> to vector<2x8x32xf32>
    "tpu.trace_start"() <{level = 10 : i32, message = "bts,bsv->btv"}> : () -> ()
    %cst_27 = arith.constant dense<0.000000e+00> : vector<2x8x32xf32>
    %47 = tpu.matmul %2, %46, %cst_27 {dimension_numbers = #tpu.dot_dimension_numbers<[2], [1], [1], [2], [0, 0, 0, 1, 1, 2], [0], [0]>} : vector<2x8x8xf32>, vector<2x8x32xf32>, vector<2x8x32xf32> -> vector<2x8x32xf32>
    "tpu.trace_stop"() : () -> ()
    %48 = vector.shape_cast %47 : vector<2x8x32xf32> to vector<16x32xf32>
    %49 = vector.broadcast %19 : vector<16x1xf32> to vector<16x32xf32>
    %50 = arith.mulf %38, %49 : vector<16x32xf32>
    %cst_28 = arith.constant 1.000000e+00 : f32
    %51 = vector.broadcast %cst_28 : f32 to vector<16x1xf32>
    %52 = arith.subf %51, %19 : vector<16x1xf32>
    %53 = vector.broadcast %52 : vector<16x1xf32> to vector<16x32xf32>
    %54 = arith.mulf %48, %53 : vector<16x32xf32>
    %55 = arith.addf %50, %54 : vector<16x32xf32>
    %56 = math.log %55 : vector<16x32xf32>
    %c0_29 = arith.constant 0 : index
    %c0_30 = arith.constant 0 : index
    %57 = vector.load %arg9[%c0_29, %c0_30] : memref<16x32xf32, #tpu.memory_space<vmem>>, vector<16x32xf32>
    tpu.vector_store %arg9[%c0_29, %c0_30], %56 {strides = array<i32>} : memref<16x32xf32, #tpu.memory_space<vmem>>, vector<16x32xf32>,
    return
  }
}

module attributes {stable_mosaic.version = 11 : i64} {
  func.func @_decoder_kernel(%arg0: i32, %arg1: memref<2x8x32xf32, #tpu.memory_space<vmem>>, %arg2: memref<2x8x32xf32, #tpu.memory_space<vmem>>, %arg3: memref<2x1x8xi32, #tpu.memory_space<vmem>>, %arg4: memref<1x32xf32, #tpu.memory_space<vmem>>, %arg5: memref<1x32xf32, #tpu.memory_space<vmem>>, %arg6: memref<1x32x96xbf16, #tpu.memory_space<vmem>>, %arg7: memref<1x1x96xf32, #tpu.memory_space<vmem>>, %arg8: memref<1x32x32xbf16, #tpu.memory_space<vmem>>, %arg9: memref<1x1x32xf32, #tpu.memory_space<vmem>>, %arg10: memref<1x32x32xbf16, #tpu.memory_space<vmem>>, %arg11: memref<1x1x32xf32, #tpu.memory_space<vmem>>, %arg12: memref<1x32x64xbf16, #tpu.memory_space<vmem>>, %arg13: memref<1x1x64xf32, #tpu.memory_space<vmem>>, %arg14: memref<1x32x32xbf16, #tpu.memory_space<vmem>>, %arg15: memref<1x1x32xf32, #tpu.memory_space<vmem>>, %arg16: memref<1x1x32xf32, #tpu.memory_space<vmem>>, %arg17: memref<1x1x32xf32, #tpu.memory_space<vmem>>, %arg18: memref<1x1x32xf32, #tpu.memory_space<vmem>>, %arg19: memref<1x1x32xf32, #tpu.memory_space<vmem>>, %arg20: memref<1x1x32xf32, #tpu.memory_space<vmem>>, %arg21: memref<1x1x32xf32, #tpu.memory_space<vmem>>, %arg22: memref<1x32x64xbf16, #tpu.memory_space<vmem>>, %arg23: memref<1x1x64xf32, #tpu.memory_space<vmem>>, %arg24: memref<1x64x32xbf16, #tpu.memory_space<vmem>>, %arg25: memref<1x1x32xf32, #tpu.memory_space<vmem>>, %arg26: memref<2x8x32xf32, #tpu.memory_space<vmem>>, %arg27: memref<2x8x8xf32, #tpu.memory_space<vmem>>, %arg28: memref<16x32xf32, #tpu.memory_space<vmem>>) attributes {dimension_semantics = [#tpu.dimension_semantics<arbitrary>], iteration_bounds = array<i64: 2>, scalar_prefetch = 0 : i64, scratch_operands = 1 : i64, tpu.core_type = #tpu.core_type<tc>, window_params = [{pipeline_mode = #tpu.pipeline_mode<synchronous>, transform_indices = @transform_0, window_bounds = array<i64: 2, 8, 32>}, {pipeline_mode = #tpu.pipeline_mode<synchronous>, transform_indices = @transform_1, window_bounds = array<i64: 2, 8, 32>}, {pipeline_mode = #tpu.pipeline_mode<synchronous>, transform_indices = @transform_2, window_bounds = array<i64: 2, 1, 8>}, {pipeline_mode = #tpu.pipeline_mode<synchronous>, transform_indices = @transform_3, window_bounds = array<i64: 1, 32>}, {pipeline_mode = #tpu.pipeline_mode<synchronous>, transform_indices = @transform_4, window_bounds = array<i64: 1, 32>}, {transform_indices = @transform_5, window_bounds = array<i64: 1, 32, 96>}, {transform_indices = @transform_6, window_bounds = array<i64: 1, 1, 96>}, {transform_indices = @transform_7, window_bounds = array<i64: 1, 32, 32>}, {transform_indices = @transform_8, window_bounds = array<i64: 1, 1, 32>}, {transform_indices = @transform_9, window_bounds = array<i64: 1, 32, 32>}, {transform_indices = @transform_10, window_bounds = array<i64: 1, 1, 32>}, {transform_indices = @transform_11, window_bounds = array<i64: 1, 32, 64>}, {transform_indices = @transform_12, window_bounds = array<i64: 1, 1, 64>}, {transform_indices = @transform_13, window_bounds = array<i64: 1, 32, 32>}, {transform_indices = @transform_14, window_bounds = array<i64: 1, 1, 32>}, {transform_indices = @transform_15, window_bounds = array<i64: 1, 1, 32>}, {transform_indices = @transform_16, window_bounds = array<i64: 1, 1, 32>}, {transform_indices = @transform_17, window_bounds = array<i64: 1, 1, 32>}, {transform_indices = @transform_18, window_bounds = array<i64: 1, 1, 32>}, {transform_indices = @transform_19, window_bounds = array<i64: 1, 1, 32>}, {transform_indices = @transform_20, window_bounds = array<i64: 1, 1, 32>}, {transform_indices = @transform_21, window_bounds = array<i64: 1, 32, 64>}, {transform_indices = @transform_22, window_bounds = array<i64: 1, 1, 64>}, {transform_indices = @transform_23, window_bounds = array<i64: 1, 64, 32>}, {transform_indices = @transform_24, window_bounds = array<i64: 1, 1, 32>}, {pipeline_mode = #tpu.pipeline_mode<synchronous>, transform_indices = @transform_25, window_bounds = array<i64: 2, 8, 32>}, {pipeline_mode = #tpu.pipeline_mode<synchronous>, transform_indices = @transform_26, window_bounds = array<i64: 2, 8, 8>}]} {
    %c0_i32 = arith.constant 0 : i32
    %0 = arith.cmpi eq, %arg0, %c0_i32 : i32
    %1 = arith.extui %0 : i1 to i32
    %c0_i32_0 = arith.constant 0 : i32
    %2 = arith.cmpi ne, %1, %c0_i32_0 : i32
    scf.if %2 {
      %c0_139 = arith.constant 0 : index
      %c0_140 = arith.constant 0 : index
      %c0_141 = arith.constant 0 : index
      %357 = vector.load %arg1[%c0_139, %c0_140, %c0_141] : memref<2x8x32xf32, #tpu.memory_space<vmem>>, vector<2x8x32xf32>
      %358 = vector.shape_cast %357 : vector<2x8x32xf32> to vector<16x32xf32>
      %c0_142 = arith.constant 0 : index
      %c0_143 = arith.constant 0 : index
      %359 = vector.load %arg28[%c0_142, %c0_143] : memref<16x32xf32, #tpu.memory_space<vmem>>, vector<16x32xf32>
      tpu.vector_store %arg28[%c0_142, %c0_143], %358 {strides = array<i32>} : memref<16x32xf32, #tpu.memory_space<vmem>>, vector<16x32xf32>,
    } else {
    }
    %c0 = arith.constant 0 : index
    %c0_1 = arith.constant 0 : index
    %3 = vector.load %arg28[%c0, %c0_1] : memref<16x32xf32, #tpu.memory_space<vmem>>, vector<16x32xf32>
    %4 = tpu.iota {dimensions = array<i32: 0>} : vector<8x8xi32>
    %5 = tpu.iota {dimensions = array<i32: 1>} : vector<8x8xi32>
    %6 = arith.cmpi sgt, %5, %4 : vector<8x8xi32>
    %cst = arith.constant -1.000000e+09 : f32
    %cst_2 = arith.constant 0.000000e+00 : f32
    %7 = vector.broadcast %cst : f32 to vector<8x8xf32>
    %8 = vector.broadcast %cst_2 : f32 to vector<8x8xf32>
    %9 = arith.select %6, %7, %8 : vector<8x8xi1>, vector<8x8xf32>
    %c0_3 = arith.constant 0 : index
    %c0_4 = arith.constant 0 : index
    %c0_5 = arith.constant 0 : index
    %10 = vector.load %arg3[%c0_3, %c0_4, %c0_5] : memref<2x1x8xi32, #tpu.memory_space<vmem>>, vector<2x1x8xi32>
    %c0_i32_6 = arith.constant 0 : i32
    %11 = vector.broadcast %c0_i32_6 : i32 to vector<2x1x8xi32>
    %12 = arith.cmpi eq, %10, %11 : vector<2x1x8xi32>
    %cst_7 = arith.constant -1.000000e+09 : f32
    %cst_8 = arith.constant 0.000000e+00 : f32
    %13 = vector.broadcast %cst_7 : f32 to vector<2x1x8xf32>
    %14 = vector.broadcast %cst_8 : f32 to vector<2x1x8xf32>
    %15 = arith.select %12, %13, %14 : vector<2x1x8xi1>, vector<2x1x8xf32>
    %16 = vector.shape_cast %9 : vector<8x8xf32> to vector<1x8x8xf32>
    %17 = vector.broadcast %16 : vector<1x8x8xf32> to vector<2x8x8xf32>
    %18 = vector.broadcast %15 : vector<2x1x8xf32> to vector<2x8x8xf32>
    %19 = arith.addf %17, %18 : vector<2x8x8xf32>
    %c0_9 = arith.constant 0 : index
    %c0_10 = arith.constant 0 : index
    %c0_11 = arith.constant 0 : index
    %20 = vector.load %arg6[%c0_9, %c0_10, %c0_11] : memref<1x32x96xbf16, #tpu.memory_space<vmem>>, vector<1x32x96xbf16>
    %21 = vector.shape_cast %20 : vector<1x32x96xbf16> to vector<32x96xbf16>
    %22 = arith.truncf %3 : vector<16x32xf32> to vector<16x32xbf16>
    %cst_12 = arith.constant dense<0.000000e+00> : vector<16x96xf32>
    %23 = tpu.matmul %22, %21, %cst_12 {dimension_numbers = #tpu.dot_dimension_numbers<[1], [0], [0], [1], [0, 0, 1, 1], [], []>} : vector<16x32xbf16>, vector<32x96xbf16>, vector<16x96xf32> -> vector<16x96xf32>
    %c0_13 = arith.constant 0 : index
    %c0_14 = arith.constant 0 : index
    %c0_15 = arith.constant 0 : index
    %24 = vector.load %arg7[%c0_13, %c0_14, %c0_15] : memref<1x1x96xf32, #tpu.memory_space<vmem>>, vector<1x1x96xf32>
    %25 = vector.shape_cast %24 : vector<1x1x96xf32> to vector<1x96xf32>
    %26 = vector.broadcast %25 : vector<1x96xf32> to vector<16x96xf32>
    %27 = arith.addf %23, %26 : vector<16x96xf32>
    %28 = vector.extract_strided_slice %27 {offsets = [0, 0], sizes = [16, 32], strides = [1, 1]} : vector<16x96xf32> to vector<16x32xf32>
    %29 = vector.shape_cast %28 : vector<16x32xf32> to vector<2x8x32xf32>
    %30 = vector.extract_strided_slice %27 {offsets = [0, 32], sizes = [16, 32], strides = [1, 1]} : vector<16x96xf32> to vector<16x32xf32>
    %31 = vector.shape_cast %30 : vector<16x32xf32> to vector<2x8x32xf32>
    %32 = vector.extract_strided_slice %27 {offsets = [0, 64], sizes = [16, 32], strides = [1, 1]} : vector<16x96xf32> to vector<16x32xf32>
    %33 = vector.shape_cast %32 : vector<16x32xf32> to vector<2x8x32xf32>
    %34 = vector.extract_strided_slice %29 {offsets = [0, 0, 0], sizes = [2, 8, 8], strides = [1, 1, 1]} : vector<2x8x32xf32> to vector<2x8x8xf32>
    %35 = arith.truncf %34 : vector<2x8x8xf32> to vector<2x8x8xbf16>
    %36 = vector.extract_strided_slice %31 {offsets = [0, 0, 0], sizes = [2, 8, 8], strides = [1, 1, 1]} : vector<2x8x32xf32> to vector<2x8x8xf32>
    %37 = arith.truncf %36 : vector<2x8x8xf32> to vector<2x8x8xbf16>
    "tpu.trace_start"() <{level = 10 : i32, message = "bqd,bkd->bqk"}> : () -> ()
    %cst_16 = arith.constant dense<0.000000e+00> : vector<2x8x8xf32>
    %38 = tpu.matmul %35, %37, %cst_16 {dimension_numbers = #tpu.dot_dimension_numbers<[2], [2], [1], [1], [0, 0, 0, 1, 1, 1], [0], [0]>} : vector<2x8x8xbf16>, vector<2x8x8xbf16>, vector<2x8x8xf32> -> vector<2x8x8xf32>
    "tpu.trace_stop"() : () -> ()
    %cst_17 = arith.constant 0.353553385 : f32
    %39 = vector.broadcast %cst_17 : f32 to vector<2x8x8xf32>
    %40 = arith.mulf %38, %39 : vector<2x8x8xf32>
    %41 = arith.addf %40, %19 : vector<2x8x8xf32>
    %cst_18 = arith.constant dense<0xFF800000> : vector<2x8xf32>
    %42 = vector.multi_reduction <maximumf>, %41, %cst_18 [2] : vector<2x8x8xf32> to vector<2x8xf32>
    %43 = vector.shape_cast %42 : vector<2x8xf32> to vector<2x8x1xf32>
    %44 = vector.broadcast %43 : vector<2x8x1xf32> to vector<2x8x8xf32>
    %45 = arith.subf %41, %44 : vector<2x8x8xf32>
    %46 = math.exp %45 : vector<2x8x8xf32>
    %cst_19 = arith.constant dense<0.000000e+00> : vector<2x8xf32>
    %47 = vector.multi_reduction <add>, %46, %cst_19 [2] : vector<2x8x8xf32> to vector<2x8xf32>
    %48 = vector.shape_cast %47 : vector<2x8xf32> to vector<2x8x1xf32>
    %49 = tpu.reciprocal %48 {approx = true} : vector<2x8x1xf32> -> vector<2x8x1xf32>
    %50 = vector.broadcast %49 : vector<2x8x1xf32> to vector<2x8x8xf32>
    %51 = arith.mulf %46, %50 : vector<2x8x8xf32>
    %52 = arith.truncf %51 : vector<2x8x8xf32> to vector<2x8x8xbf16>
    %53 = vector.extract_strided_slice %33 {offsets = [0, 0, 0], sizes = [2, 8, 8], strides = [1, 1, 1]} : vector<2x8x32xf32> to vector<2x8x8xf32>
    %54 = arith.truncf %53 : vector<2x8x8xf32> to vector<2x8x8xbf16>
    "tpu.trace_start"() <{level = 10 : i32, message = "bqk,bkd->bqd"}> : () -> ()
    %cst_20 = arith.constant dense<0.000000e+00> : vector<2x8x8xf32>
    %55 = tpu.matmul %52, %54, %cst_20 {dimension_numbers = #tpu.dot_dimension_numbers<[2], [1], [1], [2], [0, 0, 0, 1, 1, 2], [0], [0]>} : vector<2x8x8xbf16>, vector<2x8x8xbf16>, vector<2x8x8xf32> -> vector<2x8x8xf32>
    "tpu.trace_stop"() : () -> ()
    %56 = vector.extract_strided_slice %29 {offsets = [0, 0, 8], sizes = [2, 8, 8], strides = [1, 1, 1]} : vector<2x8x32xf32> to vector<2x8x8xf32>
    %57 = arith.truncf %56 : vector<2x8x8xf32> to vector<2x8x8xbf16>
    %58 = vector.extract_strided_slice %31 {offsets = [0, 0, 8], sizes = [2, 8, 8], strides = [1, 1, 1]} : vector<2x8x32xf32> to vector<2x8x8xf32>
    %59 = arith.truncf %58 : vector<2x8x8xf32> to vector<2x8x8xbf16>
    "tpu.trace_start"() <{level = 10 : i32, message = "bqd,bkd->bqk"}> : () -> ()
    %cst_21 = arith.constant dense<0.000000e+00> : vector<2x8x8xf32>
    %60 = tpu.matmul %57, %59, %cst_21 {dimension_numbers = #tpu.dot_dimension_numbers<[2], [2], [1], [1], [0, 0, 0, 1, 1, 1], [0], [0]>} : vector<2x8x8xbf16>, vector<2x8x8xbf16>, vector<2x8x8xf32> -> vector<2x8x8xf32>
    "tpu.trace_stop"() : () -> ()
    %cst_22 = arith.constant 0.353553385 : f32
    %61 = vector.broadcast %cst_22 : f32 to vector<2x8x8xf32>
    %62 = arith.mulf %60, %61 : vector<2x8x8xf32>
    %63 = arith.addf %62, %19 : vector<2x8x8xf32>
    %cst_23 = arith.constant dense<0xFF800000> : vector<2x8xf32>
    %64 = vector.multi_reduction <maximumf>, %63, %cst_23 [2] : vector<2x8x8xf32> to vector<2x8xf32>
    %65 = vector.shape_cast %64 : vector<2x8xf32> to vector<2x8x1xf32>
    %66 = vector.broadcast %65 : vector<2x8x1xf32> to vector<2x8x8xf32>
    %67 = arith.subf %63, %66 : vector<2x8x8xf32>
    %68 = math.exp %67 : vector<2x8x8xf32>
    %cst_24 = arith.constant dense<0.000000e+00> : vector<2x8xf32>
    %69 = vector.multi_reduction <add>, %68, %cst_24 [2] : vector<2x8x8xf32> to vector<2x8xf32>
    %70 = vector.shape_cast %69 : vector<2x8xf32> to vector<2x8x1xf32>
    %71 = tpu.reciprocal %70 {approx = true} : vector<2x8x1xf32> -> vector<2x8x1xf32>
    %72 = vector.broadcast %71 : vector<2x8x1xf32> to vector<2x8x8xf32>
    %73 = arith.mulf %68, %72 : vector<2x8x8xf32>
    %74 = arith.truncf %73 : vector<2x8x8xf32> to vector<2x8x8xbf16>
    %75 = vector.extract_strided_slice %33 {offsets = [0, 0, 8], sizes = [2, 8, 8], strides = [1, 1, 1]} : vector<2x8x32xf32> to vector<2x8x8xf32>
    %76 = arith.truncf %75 : vector<2x8x8xf32> to vector<2x8x8xbf16>
    "tpu.trace_start"() <{level = 10 : i32, message = "bqk,bkd->bqd"}> : () -> ()
    %cst_25 = arith.constant dense<0.000000e+00> : vector<2x8x8xf32>
    %77 = tpu.matmul %74, %76, %cst_25 {dimension_numbers = #tpu.dot_dimension_numbers<[2], [1], [1], [2], [0, 0, 0, 1, 1, 2], [0], [0]>} : vector<2x8x8xbf16>, vector<2x8x8xbf16>, vector<2x8x8xf32> -> vector<2x8x8xf32>
    "tpu.trace_stop"() : () -> ()
    %78 = vector.extract_strided_slice %29 {offsets = [0, 0, 16], sizes = [2, 8, 8], strides = [1, 1, 1]} : vector<2x8x32xf32> to vector<2x8x8xf32>
    %79 = arith.truncf %78 : vector<2x8x8xf32> to vector<2x8x8xbf16>
    %80 = vector.extract_strided_slice %31 {offsets = [0, 0, 16], sizes = [2, 8, 8], strides = [1, 1, 1]} : vector<2x8x32xf32> to vector<2x8x8xf32>
    %81 = arith.truncf %80 : vector<2x8x8xf32> to vector<2x8x8xbf16>
    "tpu.trace_start"() <{level = 10 : i32, message = "bqd,bkd->bqk"}> : () -> ()
    %cst_26 = arith.constant dense<0.000000e+00> : vector<2x8x8xf32>
    %82 = tpu.matmul %79, %81, %cst_26 {dimension_numbers = #tpu.dot_dimension_numbers<[2], [2], [1], [1], [0, 0, 0, 1, 1, 1], [0], [0]>} : vector<2x8x8xbf16>, vector<2x8x8xbf16>, vector<2x8x8xf32> -> vector<2x8x8xf32>
    "tpu.trace_stop"() : () -> ()
    %cst_27 = arith.constant 0.353553385 : f32
    %83 = vector.broadcast %cst_27 : f32 to vector<2x8x8xf32>
    %84 = arith.mulf %82, %83 : vector<2x8x8xf32>
    %85 = arith.addf %84, %19 : vector<2x8x8xf32>
    %cst_28 = arith.constant dense<0xFF800000> : vector<2x8xf32>
    %86 = vector.multi_reduction <maximumf>, %85, %cst_28 [2] : vector<2x8x8xf32> to vector<2x8xf32>
    %87 = vector.shape_cast %86 : vector<2x8xf32> to vector<2x8x1xf32>
    %88 = vector.broadcast %87 : vector<2x8x1xf32> to vector<2x8x8xf32>
    %89 = arith.subf %85, %88 : vector<2x8x8xf32>
    %90 = math.exp %89 : vector<2x8x8xf32>
    %cst_29 = arith.constant dense<0.000000e+00> : vector<2x8xf32>
    %91 = vector.multi_reduction <add>, %90, %cst_29 [2] : vector<2x8x8xf32> to vector<2x8xf32>
    %92 = vector.shape_cast %91 : vector<2x8xf32> to vector<2x8x1xf32>
    %93 = tpu.reciprocal %92 {approx = true} : vector<2x8x1xf32> -> vector<2x8x1xf32>
    %94 = vector.broadcast %93 : vector<2x8x1xf32> to vector<2x8x8xf32>
    %95 = arith.mulf %90, %94 : vector<2x8x8xf32>
    %96 = arith.truncf %95 : vector<2x8x8xf32> to vector<2x8x8xbf16>
    %97 = vector.extract_strided_slice %33 {offsets = [0, 0, 16], sizes = [2, 8, 8], strides = [1, 1, 1]} : vector<2x8x32xf32> to vector<2x8x8xf32>
    %98 = arith.truncf %97 : vector<2x8x8xf32> to vector<2x8x8xbf16>
    "tpu.trace_start"() <{level = 10 : i32, message = "bqk,bkd->bqd"}> : () -> ()
    %cst_30 = arith.constant dense<0.000000e+00> : vector<2x8x8xf32>
    %99 = tpu.matmul %96, %98, %cst_30 {dimension_numbers = #tpu.dot_dimension_numbers<[2], [1], [1], [2], [0, 0, 0, 1, 1, 2], [0], [0]>} : vector<2x8x8xbf16>, vector<2x8x8xbf16>, vector<2x8x8xf32> -> vector<2x8x8xf32>
    "tpu.trace_stop"() : () -> ()
    %100 = vector.extract_strided_slice %29 {offsets = [0, 0, 24], sizes = [2, 8, 8], strides = [1, 1, 1]} : vector<2x8x32xf32> to vector<2x8x8xf32>
    %101 = arith.truncf %100 : vector<2x8x8xf32> to vector<2x8x8xbf16>
    %102 = vector.extract_strided_slice %31 {offsets = [0, 0, 24], sizes = [2, 8, 8], strides = [1, 1, 1]} : vector<2x8x32xf32> to vector<2x8x8xf32>
    %103 = arith.truncf %102 : vector<2x8x8xf32> to vector<2x8x8xbf16>
    "tpu.trace_start"() <{level = 10 : i32, message = "bqd,bkd->bqk"}> : () -> ()
    %cst_31 = arith.constant dense<0.000000e+00> : vector<2x8x8xf32>
    %104 = tpu.matmul %101, %103, %cst_31 {dimension_numbers = #tpu.dot_dimension_numbers<[2], [2], [1], [1], [0, 0, 0, 1, 1, 1], [0], [0]>} : vector<2x8x8xbf16>, vector<2x8x8xbf16>, vector<2x8x8xf32> -> vector<2x8x8xf32>
    "tpu.trace_stop"() : () -> ()
    %cst_32 = arith.constant 0.353553385 : f32
    %105 = vector.broadcast %cst_32 : f32 to vector<2x8x8xf32>
    %106 = arith.mulf %104, %105 : vector<2x8x8xf32>
    %107 = arith.addf %106, %19 : vector<2x8x8xf32>
    %cst_33 = arith.constant dense<0xFF800000> : vector<2x8xf32>
    %108 = vector.multi_reduction <maximumf>, %107, %cst_33 [2] : vector<2x8x8xf32> to vector<2x8xf32>
    %109 = vector.shape_cast %108 : vector<2x8xf32> to vector<2x8x1xf32>
    %110 = vector.broadcast %109 : vector<2x8x1xf32> to vector<2x8x8xf32>
    %111 = arith.subf %107, %110 : vector<2x8x8xf32>
    %112 = math.exp %111 : vector<2x8x8xf32>
    %cst_34 = arith.constant dense<0.000000e+00> : vector<2x8xf32>
    %113 = vector.multi_reduction <add>, %112, %cst_34 [2] : vector<2x8x8xf32> to vector<2x8xf32>
    %114 = vector.shape_cast %113 : vector<2x8xf32> to vector<2x8x1xf32>
    %115 = tpu.reciprocal %114 {approx = true} : vector<2x8x1xf32> -> vector<2x8x1xf32>
    %116 = vector.broadcast %115 : vector<2x8x1xf32> to vector<2x8x8xf32>
    %117 = arith.mulf %112, %116 : vector<2x8x8xf32>
    %118 = arith.truncf %117 : vector<2x8x8xf32> to vector<2x8x8xbf16>
    %119 = vector.extract_strided_slice %33 {offsets = [0, 0, 24], sizes = [2, 8, 8], strides = [1, 1, 1]} : vector<2x8x32xf32> to vector<2x8x8xf32>
    %120 = arith.truncf %119 : vector<2x8x8xf32> to vector<2x8x8xbf16>
    "tpu.trace_start"() <{level = 10 : i32, message = "bqk,bkd->bqd"}> : () -> ()
    %cst_35 = arith.constant dense<0.000000e+00> : vector<2x8x8xf32>
    %121 = tpu.matmul %118, %120, %cst_35 {dimension_numbers = #tpu.dot_dimension_numbers<[2], [1], [1], [2], [0, 0, 0, 1, 1, 2], [0], [0]>} : vector<2x8x8xbf16>, vector<2x8x8xbf16>, vector<2x8x8xf32> -> vector<2x8x8xf32>
    "tpu.trace_stop"() : () -> ()
    %122 = tpu.concatenate %55, %77, %99, %121 in 2 : vector<2x8x8xf32>, vector<2x8x8xf32>, vector<2x8x8xf32>, vector<2x8x8xf32> -> vector<2x8x32xf32>
    %123 = vector.shape_cast %122 : vector<2x8x32xf32> to vector<16x32xf32>
    %c0_36 = arith.constant 0 : index
    %c0_37 = arith.constant 0 : index
    %c0_38 = arith.constant 0 : index
    %124 = vector.load %arg8[%c0_36, %c0_37, %c0_38] : memref<1x32x32xbf16, #tpu.memory_space<vmem>>, vector<1x32x32xbf16>
    %125 = vector.shape_cast %124 : vector<1x32x32xbf16> to vector<32x32xbf16>
    %126 = arith.truncf %123 : vector<16x32xf32> to vector<16x32xbf16>
    %cst_39 = arith.constant dense<0.000000e+00> : vector<16x32xf32>
    %127 = tpu.matmul %126, %125, %cst_39 {dimension_numbers = #tpu.dot_dimension_numbers<[1], [0], [0], [1], [0, 0, 1, 1], [], []>} : vector<16x32xbf16>, vector<32x32xbf16>, vector<16x32xf32> -> vector<16x32xf32>
    %c0_40 = arith.constant 0 : index
    %c0_41 = arith.constant 0 : index
    %c0_42 = arith.constant 0 : index
    %128 = vector.load %arg9[%c0_40, %c0_41, %c0_42] : memref<1x1x32xf32, #tpu.memory_space<vmem>>, vector<1x1x32xf32>
    %129 = vector.shape_cast %128 : vector<1x1x32xf32> to vector<1x32xf32>
    %130 = vector.broadcast %129 : vector<1x32xf32> to vector<16x32xf32>
    %131 = arith.addf %127, %130 : vector<16x32xf32>
    %132 = arith.addf %3, %131 : vector<16x32xf32>
    %c0_43 = arith.constant 0 : index
    %c0_44 = arith.constant 0 : index
    %c0_45 = arith.constant 0 : index
    %133 = vector.load %arg16[%c0_43, %c0_44, %c0_45] : memref<1x1x32xf32, #tpu.memory_space<vmem>>, vector<1x1x32xf32>
    %134 = vector.shape_cast %133 : vector<1x1x32xf32> to vector<1x32xf32>
    %c0_46 = arith.constant 0 : index
    %c0_47 = arith.constant 0 : index
    %c0_48 = arith.constant 0 : index
    %135 = vector.load %arg17[%c0_46, %c0_47, %c0_48] : memref<1x1x32xf32, #tpu.memory_space<vmem>>, vector<1x1x32xf32>
    %136 = vector.shape_cast %135 : vector<1x1x32xf32> to vector<1x32xf32>
    %cst_49 = arith.constant dense<0.000000e+00> : vector<16xf32>
    %137 = vector.multi_reduction <add>, %132, %cst_49 [1] : vector<16x32xf32> to vector<16xf32>
    %138 = vector.shape_cast %137 : vector<16xf32> to vector<16x1xf32>
    %cst_50 = arith.constant 3.200000e+01 : f32
    %139 = vector.broadcast %cst_50 : f32 to vector<16x1xf32>
    %140 = arith.divf %138, %139 : vector<16x1xf32>
    %141 = vector.broadcast %140 : vector<16x1xf32> to vector<16x32xf32>
    %142 = arith.subf %132, %141 : vector<16x32xf32>
    %143 = arith.mulf %142, %142 : vector<16x32xf32>
    %cst_51 = arith.constant dense<0.000000e+00> : vector<16xf32>
    %144 = vector.multi_reduction <add>, %143, %cst_51 [1] : vector<16x32xf32> to vector<16xf32>
    %145 = vector.shape_cast %144 : vector<16xf32> to vector<16x1xf32>
    %cst_52 = arith.constant 3.200000e+01 : f32
    %146 = vector.broadcast %cst_52 : f32 to vector<16x1xf32>
    %147 = arith.divf %145, %146 : vector<16x1xf32>
    %148 = vector.broadcast %140 : vector<16x1xf32> to vector<16x32xf32>
    %149 = arith.subf %132, %148 : vector<16x32xf32>
    %cst_53 = arith.constant 9.99999974E-6 : f32
    %150 = vector.broadcast %cst_53 : f32 to vector<16x1xf32>
    %151 = arith.addf %147, %150 : vector<16x1xf32>
    %152 = math.rsqrt %151 : vector<16x1xf32>
    %153 = vector.broadcast %152 : vector<16x1xf32> to vector<16x32xf32>
    %154 = arith.mulf %149, %153 : vector<16x32xf32>
    %155 = vector.broadcast %134 : vector<1x32xf32> to vector<16x32xf32>
    %156 = arith.mulf %154, %155 : vector<16x32xf32>
    %157 = vector.broadcast %136 : vector<1x32xf32> to vector<16x32xf32>
    %158 = arith.addf %156, %157 : vector<16x32xf32>
    %c0_54 = arith.constant 0 : index
    %c0_55 = arith.constant 0 : index
    %c0_56 = arith.constant 0 : index
    %159 = vector.load %arg2[%c0_54, %c0_55, %c0_56] : memref<2x8x32xf32, #tpu.memory_space<vmem>>, vector<2x8x32xf32>
    %160 = vector.shape_cast %159 : vector<2x8x32xf32> to vector<16x32xf32>
    %c0_57 = arith.constant 0 : index
    %c0_58 = arith.constant 0 : index
    %c0_59 = arith.constant 0 : index
    %161 = vector.load %arg10[%c0_57, %c0_58, %c0_59] : memref<1x32x32xbf16, #tpu.memory_space<vmem>>, vector<1x32x32xbf16>
    %162 = vector.shape_cast %161 : vector<1x32x32xbf16> to vector<32x32xbf16>
    %163 = arith.truncf %158 : vector<16x32xf32> to vector<16x32xbf16>
    %cst_60 = arith.constant dense<0.000000e+00> : vector<16x32xf32>
    %164 = tpu.matmul %163, %162, %cst_60 {dimension_numbers = #tpu.dot_dimension_numbers<[1], [0], [0], [1], [0, 0, 1, 1], [], []>} : vector<16x32xbf16>, vector<32x32xbf16>, vector<16x32xf32> -> vector<16x32xf32>
    %c0_61 = arith.constant 0 : index
    %c0_62 = arith.constant 0 : index
    %c0_63 = arith.constant 0 : index
    %165 = vector.load %arg11[%c0_61, %c0_62, %c0_63] : memref<1x1x32xf32, #tpu.memory_space<vmem>>, vector<1x1x32xf32>
    %166 = vector.shape_cast %165 : vector<1x1x32xf32> to vector<1x32xf32>
    %167 = vector.broadcast %166 : vector<1x32xf32> to vector<16x32xf32>
    %168 = arith.addf %164, %167 : vector<16x32xf32>
    %c0_64 = arith.constant 0 : index
    %c0_65 = arith.constant 0 : index
    %c0_66 = arith.constant 0 : index
    %169 = vector.load %arg12[%c0_64, %c0_65, %c0_66] : memref<1x32x64xbf16, #tpu.memory_space<vmem>>, vector<1x32x64xbf16>
    %170 = vector.shape_cast %169 : vector<1x32x64xbf16> to vector<32x64xbf16>
    %171 = arith.truncf %160 : vector<16x32xf32> to vector<16x32xbf16>
    %cst_67 = arith.constant dense<0.000000e+00> : vector<16x64xf32>
    %172 = tpu.matmul %171, %170, %cst_67 {dimension_numbers = #tpu.dot_dimension_numbers<[1], [0], [0], [1], [0, 0, 1, 1], [], []>} : vector<16x32xbf16>, vector<32x64xbf16>, vector<16x64xf32> -> vector<16x64xf32>
    %c0_68 = arith.constant 0 : index
    %c0_69 = arith.constant 0 : index
    %c0_70 = arith.constant 0 : index
    %173 = vector.load %arg13[%c0_68, %c0_69, %c0_70] : memref<1x1x64xf32, #tpu.memory_space<vmem>>, vector<1x1x64xf32>
    %174 = vector.shape_cast %173 : vector<1x1x64xf32> to vector<1x64xf32>
    %175 = vector.broadcast %174 : vector<1x64xf32> to vector<16x64xf32>
    %176 = arith.addf %172, %175 : vector<16x64xf32>
    %177 = vector.shape_cast %168 : vector<16x32xf32> to vector<2x8x32xf32>
    %178 = vector.extract_strided_slice %176 {offsets = [0, 0], sizes = [16, 32], strides = [1, 1]} : vector<16x64xf32> to vector<16x32xf32>
    %179 = vector.shape_cast %178 : vector<16x32xf32> to vector<2x8x32xf32>
    %180 = vector.extract_strided_slice %176 {offsets = [0, 32], sizes = [16, 32], strides = [1, 1]} : vector<16x64xf32> to vector<16x32xf32>
    %181 = vector.shape_cast %180 : vector<16x32xf32> to vector<2x8x32xf32>
    %182 = vector.extract_strided_slice %177 {offsets = [0, 0, 0], sizes = [2, 8, 8], strides = [1, 1, 1]} : vector<2x8x32xf32> to vector<2x8x8xf32>
    %183 = arith.truncf %182 : vector<2x8x8xf32> to vector<2x8x8xbf16>
    %184 = vector.extract_strided_slice %179 {offsets = [0, 0, 0], sizes = [2, 8, 8], strides = [1, 1, 1]} : vector<2x8x32xf32> to vector<2x8x8xf32>
    %185 = arith.truncf %184 : vector<2x8x8xf32> to vector<2x8x8xbf16>
    "tpu.trace_start"() <{level = 10 : i32, message = "bqd,bkd->bqk"}> : () -> ()
    %cst_71 = arith.constant dense<0.000000e+00> : vector<2x8x8xf32>
    %186 = tpu.matmul %183, %185, %cst_71 {dimension_numbers = #tpu.dot_dimension_numbers<[2], [2], [1], [1], [0, 0, 0, 1, 1, 1], [0], [0]>} : vector<2x8x8xbf16>, vector<2x8x8xbf16>, vector<2x8x8xf32> -> vector<2x8x8xf32>
    "tpu.trace_stop"() : () -> ()
    %cst_72 = arith.constant 0.353553385 : f32
    %187 = vector.broadcast %cst_72 : f32 to vector<2x8x8xf32>
    %188 = arith.mulf %186, %187 : vector<2x8x8xf32>
    %cst_73 = arith.constant dense<0xFF800000> : vector<2x8xf32>
    %189 = vector.multi_reduction <maximumf>, %188, %cst_73 [2] : vector<2x8x8xf32> to vector<2x8xf32>
    %190 = vector.shape_cast %189 : vector<2x8xf32> to vector<2x8x1xf32>
    %191 = vector.broadcast %190 : vector<2x8x1xf32> to vector<2x8x8xf32>
    %192 = arith.subf %188, %191 : vector<2x8x8xf32>
    %193 = math.exp %192 : vector<2x8x8xf32>
    %cst_74 = arith.constant dense<0.000000e+00> : vector<2x8xf32>
    %194 = vector.multi_reduction <add>, %193, %cst_74 [2] : vector<2x8x8xf32> to vector<2x8xf32>
    %195 = vector.shape_cast %194 : vector<2x8xf32> to vector<2x8x1xf32>
    %196 = tpu.reciprocal %195 {approx = true} : vector<2x8x1xf32> -> vector<2x8x1xf32>
    %197 = vector.broadcast %196 : vector<2x8x1xf32> to vector<2x8x8xf32>
    %198 = arith.mulf %193, %197 : vector<2x8x8xf32>
    %199 = arith.truncf %198 : vector<2x8x8xf32> to vector<2x8x8xbf16>
    %200 = vector.extract_strided_slice %181 {offsets = [0, 0, 0], sizes = [2, 8, 8], strides = [1, 1, 1]} : vector<2x8x32xf32> to vector<2x8x8xf32>
    %201 = arith.truncf %200 : vector<2x8x8xf32> to vector<2x8x8xbf16>
    "tpu.trace_start"() <{level = 10 : i32, message = "bqk,bkd->bqd"}> : () -> ()
    %cst_75 = arith.constant dense<0.000000e+00> : vector<2x8x8xf32>
    %202 = tpu.matmul %199, %201, %cst_75 {dimension_numbers = #tpu.dot_dimension_numbers<[2], [1], [1], [2], [0, 0, 0, 1, 1, 2], [0], [0]>} : vector<2x8x8xbf16>, vector<2x8x8xbf16>, vector<2x8x8xf32> -> vector<2x8x8xf32>
    "tpu.trace_stop"() : () -> ()
    %203 = vector.extract_strided_slice %177 {offsets = [0, 0, 8], sizes = [2, 8, 8], strides = [1, 1, 1]} : vector<2x8x32xf32> to vector<2x8x8xf32>
    %204 = arith.truncf %203 : vector<2x8x8xf32> to vector<2x8x8xbf16>
    %205 = vector.extract_strided_slice %179 {offsets = [0, 0, 8], sizes = [2, 8, 8], strides = [1, 1, 1]} : vector<2x8x32xf32> to vector<2x8x8xf32>
    %206 = arith.truncf %205 : vector<2x8x8xf32> to vector<2x8x8xbf16>
    "tpu.trace_start"() <{level = 10 : i32, message = "bqd,bkd->bqk"}> : () -> ()
    %cst_76 = arith.constant dense<0.000000e+00> : vector<2x8x8xf32>
    %207 = tpu.matmul %204, %206, %cst_76 {dimension_numbers = #tpu.dot_dimension_numbers<[2], [2], [1], [1], [0, 0, 0, 1, 1, 1], [0], [0]>} : vector<2x8x8xbf16>, vector<2x8x8xbf16>, vector<2x8x8xf32> -> vector<2x8x8xf32>
    "tpu.trace_stop"() : () -> ()
    %cst_77 = arith.constant 0.353553385 : f32
    %208 = vector.broadcast %cst_77 : f32 to vector<2x8x8xf32>
    %209 = arith.mulf %207, %208 : vector<2x8x8xf32>
    %cst_78 = arith.constant dense<0xFF800000> : vector<2x8xf32>
    %210 = vector.multi_reduction <maximumf>, %209, %cst_78 [2] : vector<2x8x8xf32> to vector<2x8xf32>
    %211 = vector.shape_cast %210 : vector<2x8xf32> to vector<2x8x1xf32>
    %212 = vector.broadcast %211 : vector<2x8x1xf32> to vector<2x8x8xf32>
    %213 = arith.subf %209, %212 : vector<2x8x8xf32>
    %214 = math.exp %213 : vector<2x8x8xf32>
    %cst_79 = arith.constant dense<0.000000e+00> : vector<2x8xf32>
    %215 = vector.multi_reduction <add>, %214, %cst_79 [2] : vector<2x8x8xf32> to vector<2x8xf32>
    %216 = vector.shape_cast %215 : vector<2x8xf32> to vector<2x8x1xf32>
    %217 = tpu.reciprocal %216 {approx = true} : vector<2x8x1xf32> -> vector<2x8x1xf32>
    %218 = vector.broadcast %217 : vector<2x8x1xf32> to vector<2x8x8xf32>
    %219 = arith.mulf %214, %218 : vector<2x8x8xf32>
    %220 = arith.addf %198, %219 : vector<2x8x8xf32>
    %221 = arith.truncf %219 : vector<2x8x8xf32> to vector<2x8x8xbf16>
    %222 = vector.extract_strided_slice %181 {offsets = [0, 0, 8], sizes = [2, 8, 8], strides = [1, 1, 1]} : vector<2x8x32xf32> to vector<2x8x8xf32>
    %223 = arith.truncf %222 : vector<2x8x8xf32> to vector<2x8x8xbf16>
    "tpu.trace_start"() <{level = 10 : i32, message = "bqk,bkd->bqd"}> : () -> ()
    %cst_80 = arith.constant dense<0.000000e+00> : vector<2x8x8xf32>
    %224 = tpu.matmul %221, %223, %cst_80 {dimension_numbers = #tpu.dot_dimension_numbers<[2], [1], [1], [2], [0, 0, 0, 1, 1, 2], [0], [0]>} : vector<2x8x8xbf16>, vector<2x8x8xbf16>, vector<2x8x8xf32> -> vector<2x8x8xf32>
    "tpu.trace_stop"() : () -> ()
    %225 = vector.extract_strided_slice %177 {offsets = [0, 0, 16], sizes = [2, 8, 8], strides = [1, 1, 1]} : vector<2x8x32xf32> to vector<2x8x8xf32>
    %226 = arith.truncf %225 : vector<2x8x8xf32> to vector<2x8x8xbf16>
    %227 = vector.extract_strided_slice %179 {offsets = [0, 0, 16], sizes = [2, 8, 8], strides = [1, 1, 1]} : vector<2x8x32xf32> to vector<2x8x8xf32>
    %228 = arith.truncf %227 : vector<2x8x8xf32> to vector<2x8x8xbf16>
    "tpu.trace_start"() <{level = 10 : i32, message = "bqd,bkd->bqk"}> : () -> ()
    %cst_81 = arith.constant dense<0.000000e+00> : vector<2x8x8xf32>
    %229 = tpu.matmul %226, %228, %cst_81 {dimension_numbers = #tpu.dot_dimension_numbers<[2], [2], [1], [1], [0, 0, 0, 1, 1, 1], [0], [0]>} : vector<2x8x8xbf16>, vector<2x8x8xbf16>, vector<2x8x8xf32> -> vector<2x8x8xf32>
    "tpu.trace_stop"() : () -> ()
    %cst_82 = arith.constant 0.353553385 : f32
    %230 = vector.broadcast %cst_82 : f32 to vector<2x8x8xf32>
    %231 = arith.mulf %229, %230 : vector<2x8x8xf32>
    %cst_83 = arith.constant dense<0xFF800000> : vector<2x8xf32>
    %232 = vector.multi_reduction <maximumf>, %231, %cst_83 [2] : vector<2x8x8xf32> to vector<2x8xf32>
    %233 = vector.shape_cast %232 : vector<2x8xf32> to vector<2x8x1xf32>
    %234 = vector.broadcast %233 : vector<2x8x1xf32> to vector<2x8x8xf32>
    %235 = arith.subf %231, %234 : vector<2x8x8xf32>
    %236 = math.exp %235 : vector<2x8x8xf32>
    %cst_84 = arith.constant dense<0.000000e+00> : vector<2x8xf32>
    %237 = vector.multi_reduction <add>, %236, %cst_84 [2] : vector<2x8x8xf32> to vector<2x8xf32>
    %238 = vector.shape_cast %237 : vector<2x8xf32> to vector<2x8x1xf32>
    %239 = tpu.reciprocal %238 {approx = true} : vector<2x8x1xf32> -> vector<2x8x1xf32>
    %240 = vector.broadcast %239 : vector<2x8x1xf32> to vector<2x8x8xf32>
    %241 = arith.mulf %236, %240 : vector<2x8x8xf32>
    %242 = arith.addf %220, %241 : vector<2x8x8xf32>
    %243 = arith.truncf %241 : vector<2x8x8xf32> to vector<2x8x8xbf16>
    %244 = vector.extract_strided_slice %181 {offsets = [0, 0, 16], sizes = [2, 8, 8], strides = [1, 1, 1]} : vector<2x8x32xf32> to vector<2x8x8xf32>
    %245 = arith.truncf %244 : vector<2x8x8xf32> to vector<2x8x8xbf16>
    "tpu.trace_start"() <{level = 10 : i32, message = "bqk,bkd->bqd"}> : () -> ()
    %cst_85 = arith.constant dense<0.000000e+00> : vector<2x8x8xf32>
    %246 = tpu.matmul %243, %245, %cst_85 {dimension_numbers = #tpu.dot_dimension_numbers<[2], [1], [1], [2], [0, 0, 0, 1, 1, 2], [0], [0]>} : vector<2x8x8xbf16>, vector<2x8x8xbf16>, vector<2x8x8xf32> -> vector<2x8x8xf32>
    "tpu.trace_stop"() : () -> ()
    %247 = vector.extract_strided_slice %177 {offsets = [0, 0, 24], sizes = [2, 8, 8], strides = [1, 1, 1]} : vector<2x8x32xf32> to vector<2x8x8xf32>
    %248 = arith.truncf %247 : vector<2x8x8xf32> to vector<2x8x8xbf16>
    %249 = vector.extract_strided_slice %179 {offsets = [0, 0, 24], sizes = [2, 8, 8], strides = [1, 1, 1]} : vector<2x8x32xf32> to vector<2x8x8xf32>
    %250 = arith.truncf %249 : vector<2x8x8xf32> to vector<2x8x8xbf16>
    "tpu.trace_start"() <{level = 10 : i32, message = "bqd,bkd->bqk"}> : () -> ()
    %cst_86 = arith.constant dense<0.000000e+00> : vector<2x8x8xf32>
    %251 = tpu.matmul %248, %250, %cst_86 {dimension_numbers = #tpu.dot_dimension_numbers<[2], [2], [1], [1], [0, 0, 0, 1, 1, 1], [0], [0]>} : vector<2x8x8xbf16>, vector<2x8x8xbf16>, vector<2x8x8xf32> -> vector<2x8x8xf32>
    "tpu.trace_stop"() : () -> ()
    %cst_87 = arith.constant 0.353553385 : f32
    %252 = vector.broadcast %cst_87 : f32 to vector<2x8x8xf32>
    %253 = arith.mulf %251, %252 : vector<2x8x8xf32>
    %cst_88 = arith.constant dense<0xFF800000> : vector<2x8xf32>
    %254 = vector.multi_reduction <maximumf>, %253, %cst_88 [2] : vector<2x8x8xf32> to vector<2x8xf32>
    %255 = vector.shape_cast %254 : vector<2x8xf32> to vector<2x8x1xf32>
    %256 = vector.broadcast %255 : vector<2x8x1xf32> to vector<2x8x8xf32>
    %257 = arith.subf %253, %256 : vector<2x8x8xf32>
    %258 = math.exp %257 : vector<2x8x8xf32>
    %cst_89 = arith.constant dense<0.000000e+00> : vector<2x8xf32>
    %259 = vector.multi_reduction <add>, %258, %cst_89 [2] : vector<2x8x8xf32> to vector<2x8xf32>
    %260 = vector.shape_cast %259 : vector<2x8xf32> to vector<2x8x1xf32>
    %261 = tpu.reciprocal %260 {approx = true} : vector<2x8x1xf32> -> vector<2x8x1xf32>
    %262 = vector.broadcast %261 : vector<2x8x1xf32> to vector<2x8x8xf32>
    %263 = arith.mulf %258, %262 : vector<2x8x8xf32>
    %264 = arith.addf %242, %263 : vector<2x8x8xf32>
    %265 = arith.truncf %263 : vector<2x8x8xf32> to vector<2x8x8xbf16>
    %266 = vector.extract_strided_slice %181 {offsets = [0, 0, 24], sizes = [2, 8, 8], strides = [1, 1, 1]} : vector<2x8x32xf32> to vector<2x8x8xf32>
    %267 = arith.truncf %266 : vector<2x8x8xf32> to vector<2x8x8xbf16>
    "tpu.trace_start"() <{level = 10 : i32, message = "bqk,bkd->bqd"}> : () -> ()
    %cst_90 = arith.constant dense<0.000000e+00> : vector<2x8x8xf32>
    %268 = tpu.matmul %265, %267, %cst_90 {dimension_numbers = #tpu.dot_dimension_numbers<[2], [1], [1], [2], [0, 0, 0, 1, 1, 2], [0], [0]>} : vector<2x8x8xbf16>, vector<2x8x8xbf16>, vector<2x8x8xf32> -> vector<2x8x8xf32>
    "tpu.trace_stop"() : () -> ()
    %269 = tpu.concatenate %202, %224, %246, %268 in 2 : vector<2x8x8xf32>, vector<2x8x8xf32>, vector<2x8x8xf32>, vector<2x8x8xf32> -> vector<2x8x32xf32>
    %cst_91 = arith.constant 2.500000e-01 : f32
    %270 = vector.broadcast %cst_91 : f32 to vector<2x8x8xf32>
    %271 = arith.mulf %264, %270 : vector<2x8x8xf32>
    %272 = vector.shape_cast %269 : vector<2x8x32xf32> to vector<16x32xf32>
    %c0_92 = arith.constant 0 : index
    %c0_93 = arith.constant 0 : index
    %c0_94 = arith.constant 0 : index
    %273 = vector.load %arg14[%c0_92, %c0_93, %c0_94] : memref<1x32x32xbf16, #tpu.memory_space<vmem>>, vector<1x32x32xbf16>
    %274 = vector.shape_cast %273 : vector<1x32x32xbf16> to vector<32x32xbf16>
    %275 = arith.truncf %272 : vector<16x32xf32> to vector<16x32xbf16>
    %cst_95 = arith.constant dense<0.000000e+00> : vector<16x32xf32>
    %276 = tpu.matmul %275, %274, %cst_95 {dimension_numbers = #tpu.dot_dimension_numbers<[1], [0], [0], [1], [0, 0, 1, 1], [], []>} : vector<16x32xbf16>, vector<32x32xbf16>, vector<16x32xf32> -> vector<16x32xf32>
    %c0_96 = arith.constant 0 : index
    %c0_97 = arith.constant 0 : index
    %c0_98 = arith.constant 0 : index
    %277 = vector.load %arg15[%c0_96, %c0_97, %c0_98] : memref<1x1x32xf32, #tpu.memory_space<vmem>>, vector<1x1x32xf32>
    %278 = vector.shape_cast %277 : vector<1x1x32xf32> to vector<1x32xf32>
    %279 = vector.broadcast %278 : vector<1x32xf32> to vector<16x32xf32>
    %280 = arith.addf %276, %279 : vector<16x32xf32>
    %281 = arith.addf %158, %280 : vector<16x32xf32>
    %c0_99 = arith.constant 0 : index
    %c0_100 = arith.constant 0 : index
    %c0_101 = arith.constant 0 : index
    %282 = vector.load %arg18[%c0_99, %c0_100, %c0_101] : memref<1x1x32xf32, #tpu.memory_space<vmem>>, vector<1x1x32xf32>
    %283 = vector.shape_cast %282 : vector<1x1x32xf32> to vector<1x32xf32>
    %c0_102 = arith.constant 0 : index
    %c0_103 = arith.constant 0 : index
    %c0_104 = arith.constant 0 : index
    %284 = vector.load %arg19[%c0_102, %c0_103, %c0_104] : memref<1x1x32xf32, #tpu.memory_space<vmem>>, vector<1x1x32xf32>
    %285 = vector.shape_cast %284 : vector<1x1x32xf32> to vector<1x32xf32>
    %cst_105 = arith.constant dense<0.000000e+00> : vector<16xf32>
    %286 = vector.multi_reduction <add>, %281, %cst_105 [1] : vector<16x32xf32> to vector<16xf32>
    %287 = vector.shape_cast %286 : vector<16xf32> to vector<16x1xf32>
    %cst_106 = arith.constant 3.200000e+01 : f32
    %288 = vector.broadcast %cst_106 : f32 to vector<16x1xf32>
    %289 = arith.divf %287, %288 : vector<16x1xf32>
    %290 = vector.broadcast %289 : vector<16x1xf32> to vector<16x32xf32>
    %291 = arith.subf %281, %290 : vector<16x32xf32>
    %292 = arith.mulf %291, %291 : vector<16x32xf32>
    %cst_107 = arith.constant dense<0.000000e+00> : vector<16xf32>
    %293 = vector.multi_reduction <add>, %292, %cst_107 [1] : vector<16x32xf32> to vector<16xf32>
    %294 = vector.shape_cast %293 : vector<16xf32> to vector<16x1xf32>
    %cst_108 = arith.constant 3.200000e+01 : f32
    %295 = vector.broadcast %cst_108 : f32 to vector<16x1xf32>
    %296 = arith.divf %294, %295 : vector<16x1xf32>
    %297 = vector.broadcast %289 : vector<16x1xf32> to vector<16x32xf32>
    %298 = arith.subf %281, %297 : vector<16x32xf32>
    %cst_109 = arith.constant 9.99999974E-6 : f32
    %299 = vector.broadcast %cst_109 : f32 to vector<16x1xf32>
    %300 = arith.addf %296, %299 : vector<16x1xf32>
    %301 = math.rsqrt %300 : vector<16x1xf32>
    %302 = vector.broadcast %301 : vector<16x1xf32> to vector<16x32xf32>
    %303 = arith.mulf %298, %302 : vector<16x32xf32>
    %304 = vector.broadcast %283 : vector<1x32xf32> to vector<16x32xf32>
    %305 = arith.mulf %303, %304 : vector<16x32xf32>
    %306 = vector.broadcast %285 : vector<1x32xf32> to vector<16x32xf32>
    %307 = arith.addf %305, %306 : vector<16x32xf32>
    %c0_110 = arith.constant 0 : index
    %c0_111 = arith.constant 0 : index
    %c0_112 = arith.constant 0 : index
    %308 = vector.load %arg22[%c0_110, %c0_111, %c0_112] : memref<1x32x64xbf16, #tpu.memory_space<vmem>>, vector<1x32x64xbf16>
    %309 = vector.shape_cast %308 : vector<1x32x64xbf16> to vector<32x64xbf16>
    %310 = arith.truncf %307 : vector<16x32xf32> to vector<16x32xbf16>
    %cst_113 = arith.constant dense<0.000000e+00> : vector<16x64xf32>
    %311 = tpu.matmul %310, %309, %cst_113 {dimension_numbers = #tpu.dot_dimension_numbers<[1], [0], [0], [1], [0, 0, 1, 1], [], []>} : vector<16x32xbf16>, vector<32x64xbf16>, vector<16x64xf32> -> vector<16x64xf32>
    %c0_114 = arith.constant 0 : index
    %c0_115 = arith.constant 0 : index
    %c0_116 = arith.constant 0 : index
    %312 = vector.load %arg23[%c0_114, %c0_115, %c0_116] : memref<1x1x64xf32, #tpu.memory_space<vmem>>, vector<1x1x64xf32>
    %313 = vector.shape_cast %312 : vector<1x1x64xf32> to vector<1x64xf32>
    %314 = vector.broadcast %313 : vector<1x64xf32> to vector<16x64xf32>
    %315 = arith.addf %311, %314 : vector<16x64xf32>
    %cst_117 = arith.constant 0.000000e+00 : f32
    %316 = vector.broadcast %cst_117 : f32 to vector<16x64xf32>
    %317 = arith.maximumf %315, %316 : vector<16x64xf32>
    %c0_118 = arith.constant 0 : index
    %c0_119 = arith.constant 0 : index
    %c0_120 = arith.constant 0 : index
    %318 = vector.load %arg24[%c0_118, %c0_119, %c0_120] : memref<1x64x32xbf16, #tpu.memory_space<vmem>>, vector<1x64x32xbf16>
    %319 = vector.shape_cast %318 : vector<1x64x32xbf16> to vector<64x32xbf16>
    %320 = arith.truncf %317 : vector<16x64xf32> to vector<16x64xbf16>
    %cst_121 = arith.constant dense<0.000000e+00> : vector<16x32xf32>
    %321 = tpu.matmul %320, %319, %cst_121 {dimension_numbers = #tpu.dot_dimension_numbers<[1], [0], [0], [1], [0, 0, 1, 1], [], []>} : vector<16x64xbf16>, vector<64x32xbf16>, vector<16x32xf32> -> vector<16x32xf32>
    %322 = arith.addf %307, %321 : vector<16x32xf32>
    %c0_122 = arith.constant 0 : index
    %c0_123 = arith.constant 0 : index
    %c0_124 = arith.constant 0 : index
    %323 = vector.load %arg25[%c0_122, %c0_123, %c0_124] : memref<1x1x32xf32, #tpu.memory_space<vmem>>, vector<1x1x32xf32>
    %324 = vector.shape_cast %323 : vector<1x1x32xf32> to vector<1x32xf32>
    %325 = vector.broadcast %324 : vector<1x32xf32> to vector<16x32xf32>
    %326 = arith.addf %322, %325 : vector<16x32xf32>
    %c0_125 = arith.constant 0 : index
    %c0_126 = arith.constant 0 : index
    %c0_127 = arith.constant 0 : index
    %327 = vector.load %arg20[%c0_125, %c0_126, %c0_127] : memref<1x1x32xf32, #tpu.memory_space<vmem>>, vector<1x1x32xf32>
    %328 = vector.shape_cast %327 : vector<1x1x32xf32> to vector<1x32xf32>
    %c0_128 = arith.constant 0 : index
    %c0_129 = arith.constant 0 : index
    %c0_130 = arith.constant 0 : index
    %329 = vector.load %arg21[%c0_128, %c0_129, %c0_130] : memref<1x1x32xf32, #tpu.memory_space<vmem>>, vector<1x1x32xf32>
    %330 = vector.shape_cast %329 : vector<1x1x32xf32> to vector<1x32xf32>
    %cst_131 = arith.constant dense<0.000000e+00> : vector<16xf32>
    %331 = vector.multi_reduction <add>, %326, %cst_131 [1] : vector<16x32xf32> to vector<16xf32>
    %332 = vector.shape_cast %331 : vector<16xf32> to vector<16x1xf32>
    %cst_132 = arith.constant 3.200000e+01 : f32
    %333 = vector.broadcast %cst_132 : f32 to vector<16x1xf32>
    %334 = arith.divf %332, %333 : vector<16x1xf32>
    %335 = vector.broadcast %334 : vector<16x1xf32> to vector<16x32xf32>
    %336 = arith.subf %326, %335 : vector<16x32xf32>
    %337 = arith.mulf %336, %336 : vector<16x32xf32>
    %cst_133 = arith.constant dense<0.000000e+00> : vector<16xf32>
    %338 = vector.multi_reduction <add>, %337, %cst_133 [1] : vector<16x32xf32> to vector<16xf32>
    %339 = vector.shape_cast %338 : vector<16xf32> to vector<16x1xf32>
    %cst_134 = arith.constant 3.200000e+01 : f32
    %340 = vector.broadcast %cst_134 : f32 to vector<16x1xf32>
    %341 = arith.divf %339, %340 : vector<16x1xf32>
    %342 = vector.broadcast %334 : vector<16x1xf32> to vector<16x32xf32>
    %343 = arith.subf %326, %342 : vector<16x32xf32>
    %cst_135 = arith.constant 9.99999974E-6 : f32
    %344 = vector.broadcast %cst_135 : f32 to vector<16x1xf32>
    %345 = arith.addf %341, %344 : vector<16x1xf32>
    %346 = math.rsqrt %345 : vector<16x1xf32>
    %347 = vector.broadcast %346 : vector<16x1xf32> to vector<16x32xf32>
    %348 = arith.mulf %343, %347 : vector<16x32xf32>
    %349 = vector.broadcast %328 : vector<1x32xf32> to vector<16x32xf32>
    %350 = arith.mulf %348, %349 : vector<16x32xf32>
    %351 = vector.broadcast %330 : vector<1x32xf32> to vector<16x32xf32>
    %352 = arith.addf %350, %351 : vector<16x32xf32>
    %c0_136 = arith.constant 0 : index
    %c0_137 = arith.constant 0 : index
    %353 = vector.load %arg28[%c0_136, %c0_137] : memref<16x32xf32, #tpu.memory_space<vmem>>, vector<16x32xf32>
    tpu.vector_store %arg28[%c0_136, %c0_137], %352 {strides = array<i32>} : memref<16x32xf32, #tpu.memory_space<vmem>>, vector<16x32xf32>,
    %c1_i32 = arith.constant 1 : i32
    %354 = arith.cmpi eq, %arg0, %c1_i32 : i32
    %355 = arith.extui %354 : i1 to i32
    %c0_i32_138 = arith.constant 0 : i32
    %356 = arith.cmpi ne, %355, %c0_i32_138 : i32
    scf.if %356 {
      %c0_139 = arith.constant 0 : index
      %c0_140 = arith.constant 0 : index
      %357 = vector.load %arg4[%c0_139, %c0_140] : memref<1x32xf32, #tpu.memory_space<vmem>>, vector<1x32xf32>
      %c0_141 = arith.constant 0 : index
      %c0_142 = arith.constant 0 : index
      %358 = vector.load %arg5[%c0_141, %c0_142] : memref<1x32xf32, #tpu.memory_space<vmem>>, vector<1x32xf32>
      %cst_143 = arith.constant dense<0.000000e+00> : vector<16xf32>
      %359 = vector.multi_reduction <add>, %352, %cst_143 [1] : vector<16x32xf32> to vector<16xf32>
      %360 = vector.shape_cast %359 : vector<16xf32> to vector<16x1xf32>
      %cst_144 = arith.constant 3.200000e+01 : f32
      %361 = vector.broadcast %cst_144 : f32 to vector<16x1xf32>
      %362 = arith.divf %360, %361 : vector<16x1xf32>
      %363 = vector.broadcast %362 : vector<16x1xf32> to vector<16x32xf32>
      %364 = arith.subf %352, %363 : vector<16x32xf32>
      %365 = arith.mulf %364, %364 : vector<16x32xf32>
      %cst_145 = arith.constant dense<0.000000e+00> : vector<16xf32>
      %366 = vector.multi_reduction <add>, %365, %cst_145 [1] : vector<16x32xf32> to vector<16xf32>
      %367 = vector.shape_cast %366 : vector<16xf32> to vector<16x1xf32>
      %cst_146 = arith.constant 3.200000e+01 : f32
      %368 = vector.broadcast %cst_146 : f32 to vector<16x1xf32>
      %369 = arith.divf %367, %368 : vector<16x1xf32>
      %370 = vector.broadcast %362 : vector<16x1xf32> to vector<16x32xf32>
      %371 = arith.subf %352, %370 : vector<16x32xf32>
      %cst_147 = arith.constant 9.99999974E-6 : f32
      %372 = vector.broadcast %cst_147 : f32 to vector<16x1xf32>
      %373 = arith.addf %369, %372 : vector<16x1xf32>
      %374 = math.rsqrt %373 : vector<16x1xf32>
      %375 = vector.broadcast %374 : vector<16x1xf32> to vector<16x32xf32>
      %376 = arith.mulf %371, %375 : vector<16x32xf32>
      %377 = vector.broadcast %357 : vector<1x32xf32> to vector<16x32xf32>
      %378 = arith.mulf %376, %377 : vector<16x32xf32>
      %379 = vector.broadcast %358 : vector<1x32xf32> to vector<16x32xf32>
      %380 = arith.addf %378, %379 : vector<16x32xf32>
      %381 = vector.shape_cast %380 : vector<16x32xf32> to vector<2x8x32xf32>
      %c0_148 = arith.constant 0 : index
      %c0_149 = arith.constant 0 : index
      %c0_150 = arith.constant 0 : index
      %382 = vector.load %arg26[%c0_148, %c0_149, %c0_150] : memref<2x8x32xf32, #tpu.memory_space<vmem>>, vector<2x8x32xf32>
      tpu.vector_store %arg26[%c0_148, %c0_149, %c0_150], %381 {strides = array<i32>} : memref<2x8x32xf32, #tpu.memory_space<vmem>>, vector<2x8x32xf32>,
      %c0_151 = arith.constant 0 : index
      %c0_152 = arith.constant 0 : index
      %c0_153 = arith.constant 0 : index
      %383 = vector.load %arg27[%c0_151, %c0_152, %c0_153] : memref<2x8x8xf32, #tpu.memory_space<vmem>>, vector<2x8x8xf32>
      tpu.vector_store %arg27[%c0_151, %c0_152, %c0_153], %271 {strides = array<i32>} : memref<2x8x8xf32, #tpu.memory_space<vmem>>, vector<2x8x8xf32>,
    } else {
    }
    return
  }
  func.func @transform_0(%arg0: i32) -> (i32, i32, i32) {
    %c0_i32 = arith.constant 0 : i32
    %c0_i32_0 = arith.constant 0 : i32
    %c0_i32_1 = arith.constant 0 : i32
    %c0_i32_2 = arith.constant 0 : i32
    return %c0_i32, %c0_i32_0, %c0_i32_1 : i32, i32, i32
  }
  func.func @transform_1(%arg0: i32) -> (i32, i32, i32) {
    %c0_i32 = arith.constant 0 : i32
    %c0_i32_0 = arith.constant 0 : i32
    %c0_i32_1 = arith.constant 0 : i32
    %c0_i32_2 = arith.constant 0 : i32
    return %c0_i32, %c0_i32_0, %c0_i32_1 : i32, i32, i32
  }
  func.func @transform_2(%arg0: i32) -> (i32, i32, i32) {
    %c0_i32 = arith.constant 0 : i32
    %c0_i32_0 = arith.constant 0 : i32
    %c0_i32_1 = arith.constant 0 : i32
    %c0_i32_2 = arith.constant 0 : i32
    return %c0_i32, %c0_i32_0, %c0_i32_1 : i32, i32, i32
  }
  func.func @transform_3(%arg0: i32) -> (i32, i32) {
    %c0_i32 = arith.constant 0 : i32
    %c0_i32_0 = arith.constant 0 : i32
    %c0_i32_1 = arith.constant 0 : i32
    return %c0_i32, %c0_i32_0 : i32, i32
  }
  func.func @transform_4(%arg0: i32) -> (i32, i32) {
    %c0_i32 = arith.constant 0 : i32
    %c0_i32_0 = arith.constant 0 : i32
    %c0_i32_1 = arith.constant 0 : i32
    return %c0_i32, %c0_i32_0 : i32, i32
  }
  func.func @transform_5(%arg0: i32) -> (i32, i32, i32) {
    %c0_i32 = arith.constant 0 : i32
    %c0_i32_0 = arith.constant 0 : i32
    %c0_i32_1 = arith.constant 0 : i32
    return %arg0, %c0_i32, %c0_i32_0 : i32, i32, i32
  }
  func.func @transform_6(%arg0: i32) -> (i32, i32, i32) {
    %c0_i32 = arith.constant 0 : i32
    %c0_i32_0 = arith.constant 0 : i32
    %c0_i32_1 = arith.constant 0 : i32
    return %arg0, %c0_i32, %c0_i32_0 : i32, i32, i32
  }
  func.func @transform_7(%arg0: i32) -> (i32, i32, i32) {
    %c0_i32 = arith.constant 0 : i32
    %c0_i32_0 = arith.constant 0 : i32
    %c0_i32_1 = arith.constant 0 : i32
    return %arg0, %c0_i32, %c0_i32_0 : i32, i32, i32
  }
  func.func @transform_8(%arg0: i32) -> (i32, i32, i32) {
    %c0_i32 = arith.constant 0 : i32
    %c0_i32_0 = arith.constant 0 : i32
    %c0_i32_1 = arith.constant 0 : i32
    return %arg0, %c0_i32, %c0_i32_0 : i32, i32, i32
  }
  func.func @transform_9(%arg0: i32) -> (i32, i32, i32) {
    %c0_i32 = arith.constant 0 : i32
    %c0_i32_0 = arith.constant 0 : i32
    %c0_i32_1 = arith.constant 0 : i32
    return %arg0, %c0_i32, %c0_i32_0 : i32, i32, i32
  }
  func.func @transform_10(%arg0: i32) -> (i32, i32, i32) {
    %c0_i32 = arith.constant 0 : i32
    %c0_i32_0 = arith.constant 0 : i32
    %c0_i32_1 = arith.constant 0 : i32
    return %arg0, %c0_i32, %c0_i32_0 : i32, i32, i32
  }
  func.func @transform_11(%arg0: i32) -> (i32, i32, i32) {
    %c0_i32 = arith.constant 0 : i32
    %c0_i32_0 = arith.constant 0 : i32
    %c0_i32_1 = arith.constant 0 : i32
    return %arg0, %c0_i32, %c0_i32_0 : i32, i32, i32
  }
  func.func @transform_12(%arg0: i32) -> (i32, i32, i32) {
    %c0_i32 = arith.constant 0 : i32
    %c0_i32_0 = arith.constant 0 : i32
    %c0_i32_1 = arith.constant 0 : i32
    return %arg0, %c0_i32, %c0_i32_0 : i32, i32, i32
  }
  func.func @transform_13(%arg0: i32) -> (i32, i32, i32) {
    %c0_i32 = arith.constant 0 : i32
    %c0_i32_0 = arith.constant 0 : i32
    %c0_i32_1 = arith.constant 0 : i32
    return %arg0, %c0_i32, %c0_i32_0 : i32, i32, i32
  }
  func.func @transform_14(%arg0: i32) -> (i32, i32, i32) {
    %c0_i32 = arith.constant 0 : i32
    %c0_i32_0 = arith.constant 0 : i32
    %c0_i32_1 = arith.constant 0 : i32
    return %arg0, %c0_i32, %c0_i32_0 : i32, i32, i32
  }
  func.func @transform_15(%arg0: i32) -> (i32, i32, i32) {
    %c0_i32 = arith.constant 0 : i32
    %c0_i32_0 = arith.constant 0 : i32
    %c0_i32_1 = arith.constant 0 : i32
    return %arg0, %c0_i32, %c0_i32_0 : i32, i32, i32
  }
  func.func @transform_16(%arg0: i32) -> (i32, i32, i32) {
    %c0_i32 = arith.constant 0 : i32
    %c0_i32_0 = arith.constant 0 : i32
    %c0_i32_1 = arith.constant 0 : i32
    return %arg0, %c0_i32, %c0_i32_0 : i32, i32, i32
  }
  func.func @transform_17(%arg0: i32) -> (i32, i32, i32) {
    %c0_i32 = arith.constant 0 : i32
    %c0_i32_0 = arith.constant 0 : i32
    %c0_i32_1 = arith.constant 0 : i32
    return %arg0, %c0_i32, %c0_i32_0 : i32, i32, i32
  }
  func.func @transform_18(%arg0: i32) -> (i32, i32, i32) {
    %c0_i32 = arith.constant 0 : i32
    %c0_i32_0 = arith.constant 0 : i32
    %c0_i32_1 = arith.constant 0 : i32
    return %arg0, %c0_i32, %c0_i32_0 : i32, i32, i32
  }
  func.func @transform_19(%arg0: i32) -> (i32, i32, i32) {
    %c0_i32 = arith.constant 0 : i32
    %c0_i32_0 = arith.constant 0 : i32
    %c0_i32_1 = arith.constant 0 : i32
    return %arg0, %c0_i32, %c0_i32_0 : i32, i32, i32
  }
  func.func @transform_20(%arg0: i32) -> (i32, i32, i32) {
    %c0_i32 = arith.constant 0 : i32
    %c0_i32_0 = arith.constant 0 : i32
    %c0_i32_1 = arith.constant 0 : i32
    return %arg0, %c0_i32, %c0_i32_0 : i32, i32, i32
  }
  func.func @transform_21(%arg0: i32) -> (i32, i32, i32) {
    %c0_i32 = arith.constant 0 : i32
    %c0_i32_0 = arith.constant 0 : i32
    %c0_i32_1 = arith.constant 0 : i32
    return %arg0, %c0_i32, %c0_i32_0 : i32, i32, i32
  }
  func.func @transform_22(%arg0: i32) -> (i32, i32, i32) {
    %c0_i32 = arith.constant 0 : i32
    %c0_i32_0 = arith.constant 0 : i32
    %c0_i32_1 = arith.constant 0 : i32
    return %arg0, %c0_i32, %c0_i32_0 : i32, i32, i32
  }
  func.func @transform_23(%arg0: i32) -> (i32, i32, i32) {
    %c0_i32 = arith.constant 0 : i32
    %c0_i32_0 = arith.constant 0 : i32
    %c0_i32_1 = arith.constant 0 : i32
    return %arg0, %c0_i32, %c0_i32_0 : i32, i32, i32
  }
  func.func @transform_24(%arg0: i32) -> (i32, i32, i32) {
    %c0_i32 = arith.constant 0 : i32
    %c0_i32_0 = arith.constant 0 : i32
    %c0_i32_1 = arith.constant 0 : i32
    return %arg0, %c0_i32, %c0_i32_0 : i32, i32, i32
  }
  func.func @transform_25(%arg0: i32) -> (i32, i32, i32) {
    %c0_i32 = arith.constant 0 : i32
    %c0_i32_0 = arith.constant 0 : i32
    %c0_i32_1 = arith.constant 0 : i32
    %c0_i32_2 = arith.constant 0 : i32
    return %c0_i32, %c0_i32_0, %c0_i32_1 : i32, i32, i32
  }
  func.func @transform_26(%arg0: i32) -> (i32, i32, i32) {
    %c0_i32 = arith.constant 0 : i32
    %c0_i32_0 = arith.constant 0 : i32
    %c0_i32_1 = arith.constant 0 : i32
    %c0_i32_2 = arith.constant 0 : i32
    return %c0_i32, %c0_i32_0, %c0_i32_1 : i32, i32, i32
  }
}

</mosaic_0001>

<bundles_post_ra>
// kernel: fwd.5
= control target key start
LH: loop header
LB: loop body
LE: loop exit
PB: predicated region body
PF: predicated region fallthrough
CT: control target
= control target key end

     0   :  { %vm43_vm0 = vcmask 64512   ;;  %v632_v0 = vmov 0.0   ;;  %vm633_vm1 = vmmov 0   ;;  %v634_v11 = vmov 0   ;;  %s636_s29 = smov 64   ;;  %s767_s1 = inlined_call_operand.vmem [shape: f32[2,8,32], index: 1, kind: input, shape index: {}]   ;;  %s768_s2 = inlined_call_operand.vmem [shape: f32[2,8,8], index: 2, kind: input, shape index: {}]   ;;  %s769_s5 = inlined_call_operand.vmem [shape: bf16[32,32], index: 5, kind: input, shape index: {}]   ;;  %s770_s0 = inlined_call_operand.vmem [shape: f32[2,8,32], index: 0, kind: input, shape index: {}]   ;;  %s771_s4 = inlined_call_operand.vmem [shape: s32[2,8,1], index: 4, kind: input, shape index: {}]   ;;  %s772_s3 = inlined_call_operand.vmem [shape: f32[2,8,32], index: 3, kind: input, shape index: {}]   ;;  %s773_s6 = inlined_call_operand.vmem [shape: f32[1,32], index: 6, kind: input, shape index: {}]   ;;  %s774_s7 = inlined_call_operand.vmem [shape: f32[1,96], index: 7, kind: input, shape index: {}]   ;;  %s775_s8 = inlined_call_operand.<no memory space> [shape: f32[1,1], index: 8, kind: input, shape index: {}]   ;;  %s776_s9 = inlined_call_operand.vmem [shape: f32[16,32], index: 9, kind: output, shape index: {}]  }
   0x1   :  { %570 = vmatprep.subr.mxu0 %v632_v0  ;;  %v37_v1 = vld [vmem:[%s767_s1] sm:$0xff]  ;;  %572 = vmatprep.mubr.msk.f32.mxu0 %vm633_vm1, %v632_v0  ;;  %v606_v3 = vld [vmem:[%s769_s5 + $0x8] sm:$0xff]   ;;  %vm206_vm2 = vcmask 261120   ;;  %v347_v17 = vlaneseq  ;;  %v637_v20 = vmov 1.0   ;;  %vm209_vm5 = vcmask 523264  }
   0x2   :  { %v39_v2 = vld [vmem:[%s768_s2] sm:$0xff]  ;;  %571 = vmatpush3.msra.mxu0 %v37_v1  ;;  %575 = vmatprep.subr.mxu1 %v632_v0  ;;  %v36_v6 = vld [vmem:[%s770_s0 + $0x8] sm:$0xff]  ;;  %vm221_vm6 = vcmask 785408   ;;  %v14_v48 = vstv %s775_s8 }
   0x3   :  { %573 = vmatmul.mubr.msk.f32.vlgmr.msra.gmra.mxu0 %vm43_vm0, %v39_v2  ;;  %580 = vmatprep.subr.bf16.mxu0 %v632_v0  ;;  %v607_v4 = vld [vmem:[%s769_s5] sm:$0xff]   ;;  %v38_v7 = vld [vmem:[%s767_s1 + $0x8] sm:$0xff]  ;;  %v348_v18 = vand.u32 127, %v347_v17  ;;  %15 = vst [vmem:[#allocation2] sm:$0x1] %v14_v48 }
   0x4   :  { %v35_v5 = vld [vmem:[%s770_s0] sm:$0xff]  ;;  %581 = vmatpush3.bf16.msra.mxu0 %v606_v3  ;;  %584 = vmatprep.mubr.msk.bf16.mxu0 %vm633_vm1, %v632_v0  ;;  %v40_v8 = vld [vmem:[%s768_s2 + $0x8] sm:$0xff]  ;;  %s635_s0 = smov 32  }
   0x5   :  { %582 = vmatprep.subr.bf16.mxu0 %v632_v0  ;;  %576 = vmatpush3.msra.mxu1 %v38_v7  ;;  %v349_v9 = vld [vmem:[%s771_s4] sm:$0xff]  ;;  %v350_v10 = vld [vmem:[%s771_s4 + $0x8] sm:$0xff]  ;;  %v253_v13 = vpack.c.bf16 %v36_v6, %v35_v5 }
   0x6   :  { %577 = vmatprep.mubr.msk.f32.mxu1 %vm633_vm1, %v632_v0  ;;  %604 = vset.pattern.permute.xlu0 %v634_v11  ;;  %v351_v12 = vadd.s32 8, %v349_v9  ;;  %v352_v14 = vadd.s32 8, %v350_v10  ;;  %v42_v15 = vld [vmem:[%s772_s3 + $0x8] sm:$0xff]  ;;  %v41_v16 = vld [vmem:[%s772_s3] sm:$0xff] }
   0x7   :  { %578 = vmatmul.mubr.msk.f32.vlgmr.msra.gmra.mxu1 %vm43_vm0, %v40_v8  ;;  %192 = vrot.lane.b32.xlu1 %v35_v5, %s635_s0  ;;  %v549_v29 = vld [vmem:[%s773_s6] ss:$0 sm:$0xff] }
   0x8   :  { %583 = vmatpush3.bf16.msra.mxu0 %v607_v4  ;;  %354 = vperm.xlu0 %604, %v351_v12   ;;  %v545_v35 = vld [vmem:[%s774_s7] ss:$0 sm:$0xff] }
   0x9   :  { %588 = vmatprep.subr.mxu1 %v632_v0  ;;  %590 = vmatprep.mubr.msk.f32.mxu1 %vm633_vm1, %v632_v0 }
   0xa   :  { %605 = vset.pattern.permute.xlu1 %v634_v11  ;;  %v546_v51 = vld [vmem:[#allocation2] ss:$0 sm:$0xff] }
   0xb   :  { %585 = vmatmul.mubr.msk.bf16.vlgmr.msra.gmra.mxu0 %vm206_vm2, %v253_v13  ;;  %194 = vrot.lane.b32.xlu1 %v36_v6, %s635_s0 }
   0xc   :  { %357 = vperm.xlu0 %604, %v352_v14  }
   0xf   :  { %202 = vrot.lane.b32.xlu1 %v42_v15, %s636_s29 }
  0x10   :  { %200 = vrot.lane.b32.xlu0 %v41_v16, %s636_s29 }
  0x79   :  { %v193_v22 = vpop.permute.xlu1 %192 }
  0x7d   :  { %v195_v24 = vpop.permute.xlu1 %194 }
  0x81   :  { %v203_v32 = vpop.permute.xlu1 %202 }
  0x83   :  { %v355_v19 = vpop.permute.xlu0 %354 }
  0x84   :  { %vm359_vm3 = vcmp.eq.s32.totalorder %v355_v19, %v348_v18 }
  0x85   :  { %589 = vmatpush3.msk.msra.mxu1 %vm359_vm3, %v637_v20 }
  0x86   :  { %593 = vmatprep.subr.mxu1 %v632_v0  ;;  %591 = vmatmul.mubr.msk.f32.vlgmr.msra.gmra.mxu1 %vm43_vm0, %v39_v2 }
  0x87   :  { %v358_v21 = vpop.permute.xlu0 %357  ;;  %595 = vmatprep.mubr.msk.f32.mxu1 %vm633_vm1, %v632_v0 }
  0x88   :  { %vm360_vm4 = vcmp.eq.s32.totalorder %v358_v21, %v348_v18 }
  0x89   :  { %594 = vmatpush3.msk.msra.mxu1 %vm360_vm4, %v637_v20 }
  0x8a   :  { %596 = vmatmul.mubr.msk.f32.vlgmr.msra.gmra.mxu1 %vm43_vm0, %v40_v8 }
  0x8b   :  { %v201_v28 = vpop.permute.xlu0 %200 }
  0xc3   :  { %v113_v23 = vpop.f32.mrf.mxu0 }
  0xc4   :  { %v207_v27 = vsel %vm206_vm2, %v113_v23, %v193_v22 }
  0xc5   :  { %v574_v25 = vpop.f32.mrf.mxu0  ;;  %v210_v33 = vsel %vm209_vm5, %v207_v27, %v201_v28 }
  0xc6   :  { %v219_v40 = vmul.f32 %v545_v35, %v210_v33 }
  0xc7   :  { %v186_v26 = vpop.f32.mrf.mxu1 }
  0xc8   :  { %v208_v31 = vsel %vm206_vm2, %v186_v26, %v195_v24  ;;  %v222_v45 = vsel %vm221_vm6, %v219_v40, 0.0 }
  0xc9   :  { %v579_v30 = vpop.f32.mrf.mxu1  ;;  %v211_v38 = vsel %vm209_vm5, %v208_v31, %v203_v32 }
  0xca   :  { %v220_v43 = vmul.f32 %v545_v35, %v211_v38 }
  0xcb   :  { %v310_v34 = vpop.f32.mrf.mxu0 }
  0xcc   :  { %v742_v36 = vadd.f32 %v549_v29, %v310_v34  ;;  %v225_v47 = vsel %vm221_vm6, %v220_v43, 0.0 }
  0xcd   :  { %v586_v37 = vpop.f32.mrf.mxu0 }
  0xce   :  { %v317_v39 = vsel %vm206_vm2, %v742_v36, -inf }
  0xcf   :  { %318 = vmax.xlane.f32.xlu0 %v317_v39  ;;  %v313_v41 = vpop.f32.mrf.mxu0 }
  0xd0   :  { %v746_v42 = vadd.f32 %v549_v29, %v313_v41 }
  0xd1   :  { %v587_v44 = vpop.f32.mrf.mxu0 }
  0xd2   :  { %v320_v46 = vsel %vm206_vm2, %v746_v42, -inf }
  0xd3   :  { %223 = vadd.xlane.f32.xlu0 %v222_v45  ;;  %321 = vmax.xlane.f32.xlu1 %v320_v46 }
  0xd7   :  { %226 = vadd.xlane.f32.xlu0 %v225_v47 }
 0x146   :  { %v431_v7 = vpop.f32.mrf.mxu1 }
 0x148   :  { %v592_v9 = vpop.f32.mrf.mxu1 }
 0x14a   :  { %v501_v12 = vpop.f32.mrf.mxu1 }
 0x14c   :  { %v597_v13 = vpop.f32.mrf.mxu1 }
 0x158   :  { %v319_v49 = vpop.xlane.xlu0 %318 }
 0x159   :  { %v323_v50 = vsub.f32 %v742_v36, %v319_v49 }
 0x15b   :  { %v325_v52 = vmul.f32 1.442695, %v323_v50 }
 0x15c   :  { %v224_v53 = vpop.xlane.xlu0 %223  ;;  %v322_v54 = vpop.xlane.xlu1 %321 }
 0x15d   :  { %608 = vpow2.f32 %v325_v52  ;;  %v235_v55 = vadd.f32 %v546_v51, %v224_v53  ;;  %v324_v56 = vsub.f32 %v746_v42, %v322_v54 }
 0x15f   :  { %v547_v57 = vmul.f32 -1.442695, %v235_v55  ;;  %v327_v58 = vmul.f32 1.442695, %v324_v56 }
 0x160   :  { %v227_v59 = vpop.xlane.xlu0 %226 }
 0x161   :  { %610 = vpow2.f32 %v547_v57  ;;  %v236_v60 = vadd.f32 %v546_v51, %v227_v59 }
 0x162   :  { %612 = vpow2.f32 %v327_v58 }
 0x163   :  { %v548_v61 = vmul.f32 -1.442695, %v236_v60 }
 0x165   :  { %614 = vpow2.f32 %v548_v61 }
 0x16a   :  { %v609_v62 = vpop.eup %608 }
 0x16b   :  { %v329_v63 = vsel %vm206_vm2, %v609_v62, 0.0 }
 0x16c   :  { %330 = vadd.xlane.f32.xlu1 %v329_v63 }
 0x16e   :  { %v611_v0 = vpop.eup %610 }
 0x16f   :  { %v613_v1 = vpop.eup %612  ;;  %v243_v2 = vadd.f32 1.0, %v611_v0 }
 0x170   :  { %v332_v3 = vsel %vm206_vm2, %v613_v1, 0.0 }
 0x171   :  { %616 = vrcp.f32 %v243_v2  ;;  %333 = vadd.xlane.f32.xlu0 %v332_v3 }
 0x172   :  { %v615_v4 = vpop.eup %614 }
 0x173   :  { %v244_v5 = vadd.f32 1.0, %v615_v4 }
 0x175   :  { %618 = vrcp.f32 %v244_v5 }
 0x17e   :  { %v617_v6 = vpop.eup %616 }
 0x17f   :  { %507 = vperm.xlu1 %605, %v617_v6   ;;  %v517_v8 = vsub.f32 1.0, %v617_v6 }
 0x182   :  { %v619_v10 = vpop.eup %618 }
 0x183   :  { %521 = vperm.xlu1 %605, %v517_v8   ;;  %v518_v11 = vsub.f32 1.0, %v619_v10 }
 0x187   :  { %512 = vperm.xlu0 %604, %v619_v10   ;;  %526 = vperm.xlu1 %605, %v518_v11  }
 0x1f5   :  { %v331_v14 = vpop.xlane.xlu1 %330 }
 0x1f6   :  { %620 = vlog2.f32 %v331_v14 }
 0x1fa   :  { %v334_v15 = vpop.xlane.xlu0 %333  ;;  %v508_v26 = vpop.permute.xlu1 %507 }
 0x1fb   :  { %622 = vlog2.f32 %v334_v15 }
 0x1fe   :  { %v522_v27 = vpop.permute.xlu1 %521 }
 0x1ff   :  { %v529_v30 = vmul.f32 %v522_v27, %v431_v7 }
 0x202   :  { %v527_v32 = vpop.permute.xlu1 %526  ;;  %v513_v34 = vpop.permute.xlu0 %512 }
 0x203   :  { %v621_v16 = vpop.eup %620 }
 0x204   :  { %v336_v17 = vmul.f32 0.6931472, %v621_v16 }
 0x206   :  { %v339_v18 = vadd.f32 %v336_v17, %v319_v49 }
 0x208   :  { %v623_v19 = vpop.eup %622  ;;  %v341_v20 = vsub.f32 %v742_v36, %v339_v18  ;;  %v530_v36 = vmul.f32 %v527_v32, %v501_v12 }
 0x209   :  { %v338_v21 = vmul.f32 0.6931472, %v623_v19 }
 0x20a   :  { %v343_v22 = vmul.f32 1.442695, %v341_v20 }
 0x20b   :  { %v340_v23 = vadd.f32 %v338_v21, %v322_v54 }
 0x20c   :  { %624 = vpow2.f32 %v343_v22 }
 0x20d   :  { %v342_v24 = vsub.f32 %v746_v42, %v340_v23 }
 0x20f   :  { %v345_v25 = vmul.f32 1.442695, %v342_v24 }
 0x211   :  { %626 = vpow2.f32 %v345_v25 }
 0x219   :  { %v625_v28 = vpop.eup %624 }
 0x21a   :  { %v515_v29 = vmul.f32 %v625_v28, %v508_v26 }
 0x21c   :  { %v531_v31 = vadd.f32 %v529_v30, %v515_v29 }
 0x21e   :  { %v627_v33 = vpop.eup %626  ;;  %628 = vlog2.f32 %v531_v31 }
 0x21f   :  { %v516_v35 = vmul.f32 %v627_v33, %v513_v34 }
 0x221   :  { %v532_v37 = vadd.f32 %v530_v36, %v516_v35 }
 0x223   :  { %630 = vlog2.f32 %v532_v37 }
 0x22b   :  { %v629_v38 = vpop.eup %628 }
 0x22c   :  { %v534_v39 = vmul.f32 0.6931472, %v629_v38 }
 0x22e   :  { %537 = vst.msk [vmem:[%s776_s9] sm:$0xff] %vm206_vm2, %v534_v39 }
 0x230   :  { %v631_v40 = vpop.eup %630 }
 0x231   :  { %v536_v41 = vmul.f32 0.6931472, %v631_v40 }
 0x233   :  { %538 = vst.msk [vmem:[%s776_s9 + $0x8] sm:$0xff] %vm206_vm2, %v536_v41 }

// kernel: fwd.3
= control target key start
LH: loop header
LB: loop body
LE: loop exit
PB: predicated region body
PF: predicated region fallthrough
CT: control target
= control target key end

     0   :  { %s2654_s21 = smov 0   ;;  %s2997_s0 = inlined_call_operand.vmem [shape: f32[2,8,32], index: 0, kind: input, shape index: {}]   ;;  %s2998_s1 = inlined_call_operand.vmem [shape: s32[2,1,8], index: 1, kind: input, shape index: {}]   ;;  %s2999_s2 = inlined_call_operand.vmem [shape: f32[1,32], index: 2, kind: input, shape index: {}]   ;;  %s3000_s3 = inlined_call_operand.vmem [shape: f32[1,32], index: 3, kind: input, shape index: {}]   ;;  %s3001_s4 = inlined_call_operand.vmem [shape: bf16[2,32,96], index: 4, kind: input, shape index: {}]   ;;  %s3002_s5 = inlined_call_operand.vmem [shape: f32[2,1,96], index: 5, kind: input, shape index: {}]   ;;  %s3003_s6 = inlined_call_operand.vmem [shape: bf16[2,32,32], index: 6, kind: input, shape index: {}]   ;;  %s3004_s7 = inlined_call_operand.vmem [shape: f32[2,1,32], index: 7, kind: input, shape index: {}, may-alias: {7,9,11,15}]   ;;  %s3005_s8 = inlined_call_operand.vmem [shape: f32[2,1,32], index: 8, kind: input, shape index: {}, may-alias: {8,10}]   ;;  %s3006_s9 = inlined_call_operand.vmem [shape: f32[2,1,32], index: 9, kind: input, shape index: {}, may-alias: {7,9,11,15}]   ;;  %s3007_s10 = inlined_call_operand.vmem [shape: f32[2,1,32], index: 10, kind: input, shape index: {}, may-alias: {8,10}]   ;;  %s3008_s11 = inlined_call_operand.vmem [shape: f32[2,1,32], index: 11, kind: input, shape index: {}, may-alias: {7,9,11,15}]   ;;  %s3009_s12 = inlined_call_operand.vmem [shape: bf16[2,32,64], index: 12, kind: input, shape index: {}]   ;;  %s3010_s13 = inlined_call_operand.vmem [shape: f32[2,1,64], index: 13, kind: input, shape index: {}]   ;;  %s3011_s14 = inlined_call_operand.vmem [shape: bf16[2,64,32], index: 14, kind: input, shape index: {}]   ;;  %s3012_s15 = inlined_call_operand.vmem [shape: f32[2,1,32], index: 15, kind: input, shape index: {}, may-alias: {7,9,11,15}]   ;;  %s3013_s16 = inlined_call_operand.vmem [shape: f32[2,8,32], index: 16, kind: output, shape index: {}]  }
   0x1   :  { %3019 = sst [smem:[#allocation5_spill]] %s2997_s0 }
   0x2   :  { %3020 = sst [smem:[#allocation6_spill]] %s2998_s1 }
   0x3   :  { %3021 = sst [smem:[#allocation7_spill]] %s2999_s2 }
   0x4   :  { %3022 = sst [smem:[#allocation8_spill]] %s3000_s3 }
   0x5   :  { %3023 = sst [smem:[#allocation9_spill]] %s3001_s4 }
   0x6   :  { %3024 = sst [smem:[#allocation10_spill]] %s3003_s6 }
   0x7   :  { %3025 = sst [smem:[#allocation11_spill]] %s3013_s16 }
   0x8 LB: > { %3026 = sst [smem:[#allocation3_spill]] %s2551_s21  ;;  %s2660_s22 = sadd.s32 4294967295, %s2551_s21   ;;  %s2551_s21 = sphi %s2654_s21, %s26_s21  }
   0x9   : > { %p2217_p0 = scmp.ge.s32.totalorder %s2551_s21, 1  ;;  %p551_p1 = scmp.lt.s32.totalorder %s2551_s21, 3 }
   0xb   : > { %p552_p2 = pnand %p2217_p0, %p551_p1 }
   0xd   : > { %555 = sbr.rel (%p552_p2) target bundleno = 4289 (0x10c1), region = 84 }
  0x12   : > { %p635_p3 = scmp.lt.s32.totalorder %s2660_s22, 1  ;;  %s3027_s4 = sld [smem:[#allocation9_spill]] }
  0x13   : > { %s3028_s6 = sld [smem:[#allocation10_spill]]  ;;  %p2226_p4 = scmp.ne.s32.totalorder %s2660_s22, 0 }
  0x14   : > { %s2666_s23 = scalar_select %p635_p3, %s2660_s22, 1 }
  0x16   : > { %s2270_s24 = sshll.u32 %s2666_s23, 4  ;;  %s650_s21 = scalar_lea.vmem %s3004_s7, %s2666_s23 }
  0x17   : > { %s659_s29 = scalar_lea.vmem %s3007_s10, %s2666_s23  ;;  %s662_s17 = scalar_lea.vmem %s3008_s11, %s2666_s23 }
  0x18   : > { %s639_s30 = scalar_lea.vmem %s3027_s4, %s2270_s24  ;;  %s2704_s19 = scalar_lea.vmem %s3009_s12, %s2270_s24 }
  0x19   : > { %s2679_s18 = scalar_lea.vmem %s3028_s6, %s2270_s24  ;;  %s670_s16 = scalar_lea.vmem %s3010_s13, %s2666_s23 }
  0x1a   : > { %3029 = sst [smem:[#allocation4_spill]] %s2679_s18  ;;  %s2273_s2 = sshll.u32 %s2666_s23, 5 }
  0x1b   : > { %s2714_s26 = scalar_lea.vmem %s3011_s14, %s2273_s2  ;;  %s678_s4 = scalar_lea.vmem %s3012_s15, %s2666_s23 }
  0x1c   : > { %683 = sbr.rel (%p2226_p4) target bundleno = 36 (0x24), region = 88  ;;  %s3030_s18 = sld [smem:[#allocation5_spill]] (!%p2226_p4) }
  0x21   : > { %vm686_vm0 = vcmask 261120  }
  0x22   : > { %v684_v0 = vld [vmem:[%s3030_s18] sm:$0xff]  ;;  %v685_v1 = vld [vmem:[%s3030_s18 + $0x8] sm:$0xff] }
  0x23   : > { %687 = vst.msk [vmem:[#allocation2] sm:$0xff] %vm686_vm0, %v684_v0  ;;  %688 = vst.msk [vmem:[#allocation2 + $0x8] sm:$0xff] %vm686_vm0, %v685_v1 }
  0x24 PF: > { %v2491_v2 = vld [vmem:[%s639_s30 + $0x8] sm:$0xff]   ;;  %v2553_v3 = vmov 0.0   ;;  %v2492_v4 = vld [vmem:[%s639_s30] sm:$0xff]   ;;  %vm2554_vm1 = vmmov 0   ;;  %vm721_vm2 = vcmask 261120   ;;  %s3031_s3 = scalar_lea.vmem %s3002_s5, %s2666_s23  ;;  %s2555_s1 = smov 96   ;;  %v871_v21 = vlaneseq }
  0x25   : > { %2320 = vmatprep.subr.bf16.mxu0 %v2553_v3  ;;  %2328 = vmatprep.subr.bf16.mxu1 %v2553_v3  ;;  %v2227_v8 = vld [vmem:[%s3031_s3] ss:$0 sm:$0xff]  ;;  %vm771_vm3 = vcmask 64512   ;;  %s3032_s28 = sld [smem:[#allocation6_spill]]  ;;  %s2556_s0 = smov 64   ;;  %vm912_vm6 = vcmask 1043456  }
  0x26   : > { %2321 = vmatpush3.bf16.msra.mxu0 %v2491_v2  ;;  %2324 = vmatprep.mubr.msk.bf16.mxu0 %vm2554_vm1, %v2553_v3  ;;  %v872_v23 = vshrl.u32 %v871_v21, 7  ;;  %s2557_s20 = smov 88   ;;  %s2558_s2 = smov 120   ;;  %vm1702_vm7 = vcmask 130048   ;;  %vm1705_vm8 = vcmask 195584   ;;  %vm1926_vm9 = vcmask 523264  }
  0x27   : > { %2322 = vmatprep.subr.bf16.mxu0 %v2553_v3  ;;  %2330 = vmatprep.mubr.msk.bf16.mxu1 %vm2554_vm1, %v2553_v3  ;;  %s2559_s30 = smov 56   ;;  %s2560_s3 = smov 80  }
  0x28   : > { %v873_v25 = vsub.s32 0, %v872_v23  ;;  %s2562_s25 = smov 48   ;;  %s2563_s27 = smov 72  }
  0x29   : > { %s2564_s6 = smov 104   ;;  %s2565_s24 = smov 40  }
  0x2a   : > { %v2731_v5 = vld [vmem:[#allocation2] sm:$0xff]  ;;  %v2733_v6 = vld [vmem:[#allocation2 + $0x8] sm:$0xff]  ;;  %2323 = vmatpush3.bf16.msra.mxu0 %v2492_v4  ;;  %p2265_p5 = scmp.ne.s32.totalorder %s2660_s22, 1 }
  0x2b   : > { %v701_v7 = vpack.c.bf16 %v2733_v6, %v2731_v5  ;;  %2334 = vmatprep.subr.bf16.mxu0 %v2553_v3  ;;  %v691_v22 = vld [vmem:[%s3032_s28] sm:$0x1]  ;;  %v692_v24 = vld [vmem:[%s3032_s28 + $0x1] sm:$0x1] }
  0x2c   : > { %vm693_vm4 = vcmp.eq.s32.totalorder %v691_v22, 0  ;;  %vm694_vm5 = vcmp.eq.s32.totalorder %v692_v24, 0 }
  0x2d   : > { %2325 = vmatmul.mubr.msk.bf16.vlgmr.msra.gmra.mxu0 %vm721_vm2, %v701_v7  ;;  %v695_v26 = vsel %vm693_vm4, -1e+09, %v2553_v3  ;;  %v696_v29 = vsel %vm694_vm5, -1e+09, %v2553_v3 }
  0x2e   : > { %2336 = vmatprep.mubr.msk.bf16.mxu0 %vm2554_vm1, %v2553_v3  ;;  %v2774_v27 = vrot.slane %v695_v26, %v873_v25  ;;  %v2778_v33 = vrot.slane %v696_v29, %v873_v25 }
  0xed   : > { %v759_v9 = vpop.f32.mrf.mxu0 }
  0xee   : > { %v760_v10 = vadd.f32 %v2227_v8, %v759_v9 }
  0xef   : > { %v2326_v11 = vpop.f32.mrf.mxu0 }
  0xf0   : > { %v2749_v12 = vpack.c.bf16 %v760_v10, %v760_v10 }
  0xf1   : > { %v762_v13 = vpop.f32.mrf.mxu0 }
  0xf2   : > { %v763_v14 = vadd.f32 %v2227_v8, %v762_v13  ;;  %769 = vrot.lane.b32.xlu0 %v2749_v12, %s2555_s1 }
  0xf3   : > { %v2327_v15 = vpop.f32.mrf.mxu0 }
  0xf4   : > { %v2752_v16 = vpack.c.bf16 %v763_v14, %v763_v14 }
  0xf6   : > { %819 = vrot.lane.b32.xlu0 %v2752_v16, %s2555_s1  ;;  %s2561_s1 = smov 112  }
 0x164   : > { %v770_v17 = vpop.permute.xlu0 %769 }
 0x165   : > { %v776_v18 = vsel %vm771_vm3, %v770_v17, 0 }
 0x166   : > { %2329 = vmatpush3.bf16.xpose.msra.mxu1 %v776_v18 }
 0x167   : > { %2340 = vmatprep.subr.bf16.mxu1 %v2553_v3 }
 0x168   : > { %v820_v19 = vpop.permute.xlu0 %819 }
 0x169   : > { %v825_v20 = vsel %vm771_vm3, %v820_v19, 0 }
 0x16a   : > { %2335 = vmatpush3.bf16.xpose.msra.mxu0 %v825_v20 }
 0x16b   : > { %2346 = vmatprep.subr.bf16.mxu0 %v2553_v3 }
 0x16d   : > { %2331 = vmatmul.mubr.msk.bf16.vlgmr.msra.gmra.mxu1 %vm771_vm3, %v2749_v12 }
 0x16e   : > { %2342 = vmatprep.mubr.msk.bf16.mxu1 %vm2554_vm1, %v2553_v3 }
 0x171   : > { %2337 = vmatmul.mubr.msk.bf16.vlgmr.msra.gmra.mxu0 %vm771_vm3, %v2752_v16 }
 0x172   : > { %2348 = vmatprep.mubr.msk.bf16.mxu0 %vm2554_vm1, %v2553_v3 }
 0x22d   : > { %v812_v28 = vpop.f32.mrf.mxu1 }
 0x22e   : > { %v867_v30 = vmul.f32 0.35355338, %v812_v28 }
 0x22f   : > { %v2332_v31 = vpop.f32.mrf.mxu1 }
 0x230   : > { %v881_v32 = vadd.f32 %v2774_v27, %v867_v30 }
 0x231   : > { %v815_v34 = vpop.f32.mrf.mxu1  ;;  %v861_v35 = vpop.f32.mrf.mxu0 }
 0x232   : > { %v868_v36 = vmul.f32 0.35355338, %v861_v35  ;;  %v883_v37 = vsel %vm771_vm3, %v881_v32, -inf }
 0x233   : > { %884 = vmax.xlane.f32.xlu1 %v883_v37  ;;  %v2333_v38 = vpop.f32.mrf.mxu1  ;;  %v2338_v39 = vpop.f32.mrf.mxu0 }
 0x234   : > { %v882_v40 = vadd.f32 %v2778_v33, %v868_v36 }
 0x235   : > { %v864_v41 = vpop.f32.mrf.mxu0 }
 0x236   : > { %v886_v42 = vsel %vm771_vm3, %v882_v40, -inf }
 0x237   : > { %887 = vmax.xlane.f32.xlu1 %v886_v42  ;;  %v2339_v43 = vpop.f32.mrf.mxu0 }
 0x248   : > { %907 = vrot.lane.b32.xlu1 %v2749_v12, %s2556_s0 }
 0x24c   : > { %956 = vrot.lane.b32.xlu1 %v2752_v16, %s2556_s0  ;;  %s2566_s0 = smov 8  }
 0x250   : > { %1006 = vrot.lane.b32.xlu1 %v2749_v12, %s2557_s20 }
 0x2bc   : > { %v885_v44 = vpop.xlane.xlu1 %884 }
 0x2bd   : > { %v889_v45 = vsub.f32 %v881_v32, %v885_v44 }
 0x2bf   : > { %v891_v46 = vmul.f32 1.442695, %v889_v45 }
 0x2c0   : > { %v888_v47 = vpop.xlane.xlu1 %887 }
 0x2c1   : > { %2501 = vpow2.f32 %v891_v46  ;;  %v890_v48 = vsub.f32 %v882_v40, %v888_v47 }
 0x2c3   : > { %v893_v49 = vmul.f32 1.442695, %v890_v48 }
 0x2c4   : > { %v908_v50 = vpop.permute.xlu1 %907 }
 0x2c5   : > { %2503 = vpow2.f32 %v893_v49  ;;  %v914_v51 = vsel %vm912_vm6, %v908_v50, 0 }
 0x2c6   : > { %2341 = vmatpush3.bf16.msra.mxu1 %v914_v51 }
 0x2c7   : > { %2352 = vmatprep.subr.bf16.mxu1 %v2553_v3 }
 0x2c8   : > { %v957_v52 = vpop.permute.xlu1 %956 }
 0x2c9   : > { %v962_v53 = vsel %vm912_vm6, %v957_v52, 0 }
 0x2ca   : > { %2347 = vmatpush3.bf16.msra.mxu0 %v962_v53 }
 0x2cb   : > { %2358 = vmatprep.subr.bf16.mxu0 %v2553_v3 }
 0x2cc   : > { %v1007_v58 = vpop.permute.xlu1 %1006 }
 0x2cd   : > { %v1012_v1 = vsel %vm771_vm3, %v1007_v58, 0 }
 0x2ce   : > { %v2502_v54 = vpop.eup %2501 }
 0x2cf   : > { %v895_v55 = vsel %vm771_vm3, %v2502_v54, 0.0 }
 0x2d0   : > { %896 = vadd.xlane.f32.xlu0 %v895_v55 }
 0x2d2   : > { %v2504_v56 = vpop.eup %2503 }
 0x2d3   : > { %v898_v57 = vsel %vm771_vm3, %v2504_v56, 0.0 }
 0x2d4   : > { %899 = vadd.xlane.f32.xlu1 %v898_v57 }
 0x2e5   : > { %1056 = vrot.lane.b32.xlu1 %v2752_v16, %s2557_s20  ;;  %s2567_s20 = smov 16  }
 0x2e6   : > { %1004 = vrot.lane.b32.xlu0 %v2749_v12, %s2558_s2 }
 0x2e9   : > { %1054 = vrot.lane.b32.xlu1 %v2752_v16, %s2558_s2  ;;  %s3033_s2 = sld [smem:[#allocation4_spill]] }
 0x359   : > { %v897_v59 = vpop.xlane.xlu0 %896 }
 0x35a   : > { %2505 = vrcp.f32 %v897_v59 }
 0x35d   : > { %v900_v60 = vpop.xlane.xlu1 %899  ;;  %v1005_v9 = vpop.permute.xlu0 %1004 }
 0x35e   : > { %2507 = vrcp.f32 %v900_v60 }
 0x361   : > { %v1057_v4 = vpop.permute.xlu1 %1056 }
 0x362   : > { %v1062_v8 = vsel %vm771_vm3, %v1057_v4, 0 }
 0x365   : > { %v1055_v10 = vpop.permute.xlu1 %1054 }
 0x367   : > { %v2506_v61 = vpop.eup %2505 }
 0x368   : > { %v903_v62 = vmul.f32 %v2506_v61, %v2502_v54 }
 0x36a   : > { %v905_v63 = vpack.c.bf16 %v903_v62, %v903_v62 }
 0x36b   : > { %v2508_v0 = vpop.eup %2507 }
 0x36c   : > { %2343 = vmatmul.mubr.msk.bf16.vlgmr.msra.gmra.mxu1 %vm771_vm3, %v905_v63  ;;  %v904_v2 = vmul.f32 %v2508_v0, %v2504_v56 }
 0x36d   : > { %2353 = vmatpush3.bf16.xpose.msra.mxu1 %v1012_v1  ;;  %2354 = vmatprep.mubr.msk.bf16.mxu1 %vm2554_vm1, %v2553_v3 }
 0x36e   : > { %v906_v7 = vpack.c.bf16 %v904_v2, %v904_v2  ;;  %2364 = vmatprep.subr.bf16.mxu1 %v2553_v3 }
 0x370   : > { %2349 = vmatmul.mubr.msk.bf16.vlgmr.msra.gmra.mxu0 %vm771_vm3, %v906_v7 }
 0x371   : > { %2359 = vmatpush3.bf16.xpose.msra.mxu0 %v1062_v8  ;;  %2360 = vmatprep.mubr.msk.bf16.mxu0 %vm2554_vm1, %v2553_v3 }
 0x372   : > { %2370 = vmatprep.subr.bf16.mxu0 %v2553_v3 }
 0x374   : > { %2355 = vmatmul.mubr.msk.bf16.vlgmr.msra.gmra.mxu1 %vm771_vm3, %v1005_v9 }
 0x375   : > { %2366 = vmatprep.mubr.msk.bf16.mxu1 %vm2554_vm1, %v2553_v3 }
 0x378   : > { %2361 = vmatmul.mubr.msk.bf16.vlgmr.msra.gmra.mxu0 %vm771_vm3, %v1055_v10 }
 0x379   : > { %2372 = vmatprep.mubr.msk.bf16.mxu0 %vm2554_vm1, %v2553_v3 }
 0x42c   : > { %v2811_v11 = vpop.f32.mrf.mxu1 }
 0x42e   : > { %v2344_v13 = vpop.f32.mrf.mxu1 }
 0x430   : > { %v953_v14 = vpop.f32.mrf.mxu1  ;;  %v2813_v15 = vpop.f32.mrf.mxu0 }
 0x432   : > { %v2345_v17 = vpop.f32.mrf.mxu1  ;;  %v2350_v18 = vpop.f32.mrf.mxu0 }
 0x434   : > { %v1001_v19 = vpop.f32.mrf.mxu0  ;;  %v1048_v20 = vpop.f32.mrf.mxu1 }
 0x435   : > { %v1104_v21 = vmul.f32 0.35355338, %v1048_v20 }
 0x436   : > { %v2351_v22 = vpop.f32.mrf.mxu0  ;;  %v2356_v23 = vpop.f32.mrf.mxu1 }
 0x437   : > { %v1106_v24 = vadd.f32 %v1104_v21, %v2774_v27 }
 0x438   : > { %v1051_v25 = vpop.f32.mrf.mxu1  ;;  %v1098_v26 = vpop.f32.mrf.mxu0 }
 0x439   : > { %v1105_v28 = vmul.f32 0.35355338, %v1098_v26  ;;  %v1108_v29 = vsel %vm771_vm3, %v1106_v24, -inf }
 0x43a   : > { %1109 = vmax.xlane.f32.xlu1 %v1108_v29  ;;  %v2357_v30 = vpop.f32.mrf.mxu1  ;;  %v2362_v31 = vpop.f32.mrf.mxu0 }
 0x43b   : > { %v1107_v32 = vadd.f32 %v1105_v28, %v2778_v33 }
 0x43c   : > { %v1101_v34 = vpop.f32.mrf.mxu0 }
 0x43d   : > { %v1111_v35 = vsel %vm771_vm3, %v1107_v32, -inf }
 0x43e   : > { %1112 = vmax.xlane.f32.xlu0 %v1111_v35  ;;  %v2363_v36 = vpop.f32.mrf.mxu0 }
 0x44b   : > { %1132 = vrot.lane.b32.xlu1 %v2749_v12, %s2559_s30 }
 0x44f   : > { %1230 = vrot.lane.b32.xlu1 %v2749_v12, %s2560_s3 }
 0x454   : > { %1180 = vrot.lane.b32.xlu0 %v2752_v16, %s2559_s30  ;;  %s2568_s30 = smov 24  }
 0x458   : > { %1228 = vrot.lane.b32.xlu0 %v2749_v12, %s2561_s1 }
 0x4c3   : > { %v1110_v37 = vpop.xlane.xlu1 %1109 }
 0x4c4   : > { %v1114_v38 = vsub.f32 %v1106_v24, %v1110_v37 }
 0x4c6   : > { %v1116_v39 = vmul.f32 1.442695, %v1114_v38 }
 0x4c7   : > { %v1133_v40 = vpop.permute.xlu1 %1132  ;;  %v1113_v41 = vpop.xlane.xlu0 %1112 }
 0x4c8   : > { %2509 = vpow2.f32 %v1116_v39  ;;  %v1138_v42 = vsel %vm912_vm6, %v1133_v40, 0  ;;  %v1115_v43 = vsub.f32 %v1107_v32, %v1113_v41 }
 0x4c9   : > { %2365 = vmatpush3.bf16.msra.mxu1 %v1138_v42 }
 0x4ca   : > { %v1118_v44 = vmul.f32 1.442695, %v1115_v43  ;;  %2376 = vmatprep.subr.bf16.mxu1 %v2553_v3 }
 0x4cb   : > { %v1181_v45 = vpop.permute.xlu0 %1180  ;;  %v1231_v51 = vpop.permute.xlu1 %1230 }
 0x4cc   : > { %2511 = vpow2.f32 %v1118_v44  ;;  %v1186_v46 = vsel %vm912_vm6, %v1181_v45, 0  ;;  %v1236_v58 = vsel %vm771_vm3, %v1231_v51, 0 }
 0x4cd   : > { %2371 = vmatpush3.bf16.msra.mxu0 %v1186_v46 }
 0x4ce   : > { %2382 = vmatprep.subr.bf16.mxu0 %v2553_v3 }
 0x4cf   : > { %v1229_v63 = vpop.permute.xlu0 %1228 }
 0x4d5   : > { %v2510_v47 = vpop.eup %2509 }
 0x4d6   : > { %v1120_v48 = vsel %vm771_vm3, %v2510_v47, 0.0 }
 0x4d7   : > { %1121 = vadd.xlane.f32.xlu1 %v1120_v48 }
 0x4d9   : > { %v2512_v49 = vpop.eup %2511 }
 0x4da   : > { %v1123_v50 = vsel %vm771_vm3, %v2512_v49, 0.0 }
 0x4db   : > { %1124 = vadd.xlane.f32.xlu1 %v1123_v50 }
 0x4ec   : > { %1280 = vrot.lane.b32.xlu1 %v2752_v16, %s2560_s3 }
 0x4f0   : > { %1278 = vrot.lane.b32.xlu1 %v2752_v16, %s2561_s1 }
 0x560   : > { %v1122_v52 = vpop.xlane.xlu1 %1121 }
 0x561   : > { %2513 = vrcp.f32 %v1122_v52 }
 0x564   : > { %v1125_v53 = vpop.xlane.xlu1 %1124 }
 0x565   : > { %2515 = vrcp.f32 %v1125_v53 }
 0x568   : > { %v1281_v60 = vpop.permute.xlu1 %1280 }
 0x569   : > { %v1286_v62 = vsel %vm771_vm3, %v1281_v60, 0 }
 0x56c   : > { %v1279_v0 = vpop.permute.xlu1 %1278 }
 0x56e   : > { %v2514_v54 = vpop.eup %2513 }
 0x56f   : > { %v1128_v55 = vmul.f32 %v2514_v54, %v2510_v47 }
 0x571   : > { %v1130_v56 = vpack.c.bf16 %v1128_v55, %v1128_v55 }
 0x572   : > { %v2516_v57 = vpop.eup %2515 }
 0x573   : > { %2367 = vmatmul.mubr.msk.bf16.vlgmr.msra.gmra.mxu1 %vm771_vm3, %v1130_v56  ;;  %v1129_v59 = vmul.f32 %v2516_v57, %v2512_v49 }
 0x574   : > { %2377 = vmatpush3.bf16.xpose.msra.mxu1 %v1236_v58  ;;  %2378 = vmatprep.mubr.msk.bf16.mxu1 %vm2554_vm1, %v2553_v3 }
 0x575   : > { %v1131_v61 = vpack.c.bf16 %v1129_v59, %v1129_v59  ;;  %2388 = vmatprep.subr.bf16.mxu1 %v2553_v3 }
 0x577   : > { %2373 = vmatmul.mubr.msk.bf16.vlgmr.msra.gmra.mxu0 %vm771_vm3, %v1131_v61 }
 0x578   : > { %2383 = vmatpush3.bf16.xpose.msra.mxu0 %v1286_v62  ;;  %2384 = vmatprep.mubr.msk.bf16.mxu0 %vm2554_vm1, %v2553_v3 }
 0x579   : > { %2394 = vmatprep.subr.bf16.mxu0 %v2553_v3 }
 0x57b   : > { %2379 = vmatmul.mubr.msk.bf16.vlgmr.msra.gmra.mxu1 %vm771_vm3, %v1229_v63 }
 0x57c   : > { %2390 = vmatprep.mubr.msk.bf16.mxu1 %vm2554_vm1, %v2553_v3 }
 0x57f   : > { %2385 = vmatmul.mubr.msk.bf16.vlgmr.msra.gmra.mxu0 %vm771_vm3, %v1279_v0 }
 0x580   : > { %2396 = vmatprep.mubr.msk.bf16.mxu0 %vm2554_vm1, %v2553_v3 }
 0x633   : > { %v2847_v1 = vpop.f32.mrf.mxu1 }
 0x635   : > { %v2368_v2 = vpop.f32.mrf.mxu1 }
 0x637   : > { %v1177_v4 = vpop.f32.mrf.mxu1  ;;  %v2849_v7 = vpop.f32.mrf.mxu0 }
 0x638   : > { %v2476_v8 = vpack.i.bf16 %v2849_v7, %v2847_v1 }
 0x639   : > { %v2369_v9 = vpop.f32.mrf.mxu1  ;;  %v2374_v10 = vpop.f32.mrf.mxu0 }
 0x63b   : > { %v1225_v13 = vpop.f32.mrf.mxu0  ;;  %v1272_v14 = vpop.f32.mrf.mxu1 }
 0x63c   : > { %v1328_v17 = vmul.f32 0.35355338, %v1272_v14 }
 0x63d   : > { %v2375_v18 = vpop.f32.mrf.mxu0  ;;  %v2380_v19 = vpop.f32.mrf.mxu1 }
 0x63e   : > { %v1330_v20 = vadd.f32 %v1328_v17, %v2774_v27 }
 0x63f   : > { %v1275_v21 = vpop.f32.mrf.mxu1  ;;  %v1322_v22 = vpop.f32.mrf.mxu0 }
 0x640   : > { %v1329_v23 = vmul.f32 0.35355338, %v1322_v22  ;;  %v1332_v24 = vsel %vm771_vm3, %v1330_v20, -inf }
 0x641   : > { %1333 = vmax.xlane.f32.xlu0 %v1332_v24  ;;  %v2381_v25 = vpop.f32.mrf.mxu1  ;;  %v2386_v26 = vpop.f32.mrf.mxu0 }
 0x642   : > { %v1331_v28 = vadd.f32 %v1329_v23, %v2778_v33 }
 0x643   : > { %v1325_v29 = vpop.f32.mrf.mxu0 }
 0x644   : > { %v1335_v30 = vsel %vm771_vm3, %v1331_v28, -inf }
 0x645   : > { %1336 = vmax.xlane.f32.xlu1 %v1335_v30  ;;  %v2387_v31 = vpop.f32.mrf.mxu0 }
 0x656   : > { %1356 = vrot.lane.b32.xlu1 %v2749_v12, %s2562_s25 }
 0x65a   : > { %1454 = vrot.lane.b32.xlu1 %v2749_v12, %s2563_s27 }
 0x65e   : > { %1504 = vrot.lane.b32.xlu1 %v2752_v16, %s2563_s27  ;;  %s3038_s27 = sld [smem:[#allocation11_spill]] (!%p2265_p5) }
 0x662   : > { %1502 = vrot.lane.b32.xlu1 %v2752_v16, %s2564_s6 }
 0x6ca   : > { %v1334_v32 = vpop.xlane.xlu0 %1333 }
 0x6cb   : > { %v1338_v34 = vsub.f32 %v1330_v20, %v1334_v32 }
 0x6cd   : > { %v1340_v35 = vmul.f32 1.442695, %v1338_v34 }
 0x6ce   : > { %v1337_v36 = vpop.xlane.xlu1 %1336 }
 0x6cf   : > { %2517 = vpow2.f32 %v1340_v35  ;;  %v1339_v37 = vsub.f32 %v1331_v28, %v1337_v36 }
 0x6d1   : > { %v1342_v38 = vmul.f32 1.442695, %v1339_v37 }
 0x6d2   : > { %v1357_v39 = vpop.permute.xlu1 %1356 }
 0x6d3   : > { %2519 = vpow2.f32 %v1342_v38  ;;  %v1362_v40 = vsel %vm912_vm6, %v1357_v39, 0 }
 0x6d4   : > { %2389 = vmatpush3.bf16.msra.mxu1 %v1362_v40 }
 0x6d5   : > { %2400 = vmatprep.subr.bf16.mxu1 %v2553_v3 }
 0x6d6   : > { %v1455_v50 = vpop.permute.xlu1 %1454 }
 0x6d7   : > { %v1460_v54 = vsel %vm771_vm3, %v1455_v50, 0 }
 0x6da   : > { %v1505_v56 = vpop.permute.xlu1 %1504 }
 0x6db   : > { %v1510_v58 = vsel %vm771_vm3, %v1505_v56, 0 }
 0x6dc   : > { %v2518_v41 = vpop.eup %2517 }
 0x6dd   : > { %v1344_v42 = vsel %vm771_vm3, %v2518_v41, 0.0 }
 0x6de   : > { %1345 = vadd.xlane.f32.xlu0 %v1344_v42  ;;  %v1503_v60 = vpop.permute.xlu1 %1502 }
 0x6e0   : > { %v2520_v43 = vpop.eup %2519 }
 0x6e1   : > { %v1347_v44 = vsel %vm771_vm3, %v2520_v43, 0.0 }
 0x6e2   : > { %1348 = vadd.xlane.f32.xlu0 %v1347_v44 }
 0x6f8   : > { %1404 = vrot.lane.b32.xlu0 %v2752_v16, %s2562_s25  ;;  %s3034_s25 = scalar_lea.vmem %s3005_s8, %s2666_s23 }
 0x6fc   : > { %1452 = vrot.lane.b32.xlu0 %v2749_v12, %s2564_s6 }
 0x767   : > { %v1346_v45 = vpop.xlane.xlu0 %1345 }
 0x768   : > { %2521 = vrcp.f32 %v1346_v45 }
 0x76b   : > { %v1349_v46 = vpop.xlane.xlu0 %1348 }
 0x76c   : > { %2523 = vrcp.f32 %v1349_v46 }
 0x76f   : > { %v1405_v47 = vpop.permute.xlu0 %1404 }
 0x770   : > { %v1410_v48 = vsel %vm912_vm6, %v1405_v47, 0  ;;  %v2493_v47 = vld [vmem:[%s3033_s2 + $0x8] sm:$0xff]  }
 0x771   : > { %2395 = vmatpush3.bf16.msra.mxu0 %v1410_v48  ;;  %v2494_v48 = vld [vmem:[%s3033_s2] sm:$0xff]  }
 0x772   : > { %2406 = vmatprep.subr.bf16.mxu0 %v2553_v3 }
 0x773   : > { %v1453_v59 = vpop.permute.xlu0 %1452 }
 0x775   : > { %v2522_v49 = vpop.eup %2521 }
 0x776   : > { %v1352_v51 = vmul.f32 %v2522_v49, %v2518_v41 }
 0x778   : > { %v1354_v52 = vpack.c.bf16 %v1352_v51, %v1352_v51 }
 0x779   : > { %v2524_v53 = vpop.eup %2523 }
 0x77a   : > { %2391 = vmatmul.mubr.msk.bf16.vlgmr.msra.gmra.mxu1 %vm771_vm3, %v1354_v52  ;;  %v1353_v55 = vmul.f32 %v2524_v53, %v2520_v43 }
 0x77b   : > { %2401 = vmatpush3.bf16.xpose.msra.mxu1 %v1460_v54  ;;  %2402 = vmatprep.mubr.msk.bf16.mxu1 %vm2554_vm1, %v2553_v3 }
 0x77c   : > { %v1355_v57 = vpack.c.bf16 %v1353_v55, %v1353_v55  ;;  %2412 = vmatprep.subr.bf16.mxu1 %v2553_v3 }
 0x77e   : > { %2397 = vmatmul.mubr.msk.bf16.vlgmr.msra.gmra.mxu0 %vm771_vm3, %v1355_v57 }
 0x77f   : > { %2407 = vmatpush3.bf16.xpose.msra.mxu0 %v1510_v58  ;;  %2408 = vmatprep.mubr.msk.bf16.mxu0 %vm2554_vm1, %v2553_v3 }
 0x780   : > { %2418 = vmatprep.subr.bf16.mxu0 %v2553_v3 }
 0x782   : > { %2403 = vmatmul.mubr.msk.bf16.vlgmr.msra.gmra.mxu1 %vm771_vm3, %v1453_v59 }
 0x783   : > { %2414 = vmatprep.mubr.msk.bf16.mxu1 %vm2554_vm1, %v2553_v3 }
 0x786   : > { %2409 = vmatmul.mubr.msk.bf16.vlgmr.msra.gmra.mxu0 %vm771_vm3, %v1503_v60 }
 0x787   : > { %2420 = vmatprep.mubr.msk.bf16.mxu0 %vm2554_vm1, %v2553_v3 }
 0x83a   : > { %v1398_v61 = vpop.f32.mrf.mxu1 }
 0x83c   : > { %v2392_v62 = vpop.f32.mrf.mxu1 }
 0x83e   : > { %v1401_v63 = vpop.f32.mrf.mxu1  ;;  %v1446_v0 = vpop.f32.mrf.mxu0 }
 0x840   : > { %v2393_v2 = vpop.f32.mrf.mxu1  ;;  %v2398_v4 = vpop.f32.mrf.mxu0 }
 0x842   : > { %v1449_v9 = vpop.f32.mrf.mxu0  ;;  %v1496_v10 = vpop.f32.mrf.mxu1 }
 0x843   : > { %v1552_v13 = vmul.f32 0.35355338, %v1496_v10 }
 0x844   : > { %v2399_v14 = vpop.f32.mrf.mxu0  ;;  %v2404_v17 = vpop.f32.mrf.mxu1 }
 0x845   : > { %v1554_v18 = vadd.f32 %v1552_v13, %v2774_v27  ;;  %v2481_v27 = vpack.i.bf16 %v1446_v0, %v1398_v61 }
 0x846   : > { %v1499_v19 = vpop.f32.mrf.mxu1  ;;  %v1546_v20 = vpop.f32.mrf.mxu0 }
 0x847   : > { %v1553_v21 = vmul.f32 0.35355338, %v1546_v20  ;;  %v1556_v22 = vsel %vm771_vm3, %v1554_v18, -inf }
 0x848   : > { %1557 = vmax.xlane.f32.xlu0 %v1556_v22  ;;  %v2405_v23 = vpop.f32.mrf.mxu1  ;;  %v2410_v24 = vpop.f32.mrf.mxu0 }
 0x849   : > { %v1555_v25 = vadd.f32 %v1553_v21, %v2778_v33 }
 0x84a   : > { %v1549_v26 = vpop.f32.mrf.mxu0 }
 0x84b   : > { %v1559_v28 = vsel %vm771_vm3, %v1555_v25, -inf }
 0x84c   : > { %1560 = vmax.xlane.f32.xlu1 %v1559_v28  ;;  %v2411_v29 = vpop.f32.mrf.mxu0 }
 0x85d   : > { %1580 = vrot.lane.b32.xlu1 %v2749_v12, %s2565_s24 }
 0x861   : > { %2477 = vrot.lane.b32.xlu1 %v2476_v8, %s2566_s0 }
 0x865   : > { %2482 = vrot.lane.b32.xlu1 %v2481_v27, %s2567_s20 }
 0x8d1   : > { %v1558_v30 = vpop.xlane.xlu0 %1557 }
 0x8d2   : > { %v1562_v31 = vsub.f32 %v1554_v18, %v1558_v30 }
 0x8d4   : > { %v1564_v32 = vmul.f32 1.442695, %v1562_v31 }
 0x8d5   : > { %v1561_v33 = vpop.xlane.xlu1 %1560 }
 0x8d6   : > { %2525 = vpow2.f32 %v1564_v32  ;;  %v1563_v34 = vsub.f32 %v1555_v25, %v1561_v33 }
 0x8d8   : > { %v1566_v35 = vmul.f32 1.442695, %v1563_v34 }
 0x8d9   : > { %v1581_v36 = vpop.permute.xlu1 %1580 }
 0x8da   : > { %2527 = vpow2.f32 %v1566_v35  ;;  %v1586_v37 = vsel %vm912_vm6, %v1581_v36, 0 }
 0x8db   : > { %2413 = vmatpush3.bf16.msra.mxu1 %v1586_v37 }
 0x8dc   : > { %2424 = vmatprep.subr.bf16.mxu1 %v2553_v3 }
 0x8dd   : > { %v2478_v58 = vpop.permute.xlu1 %2477 }
 0x8de   : > { %v2480_v60 = vunpack.i.h.bf16 %v2478_v58  ;;  %v2479_v61 = vunpack.i.l.bf16 %v2478_v58 }
 0x8e0   : > { %v1701_v2 = vsel %vm771_vm3, %v2813_v15, %v2480_v60  ;;  %v1700_v4 = vsel %vm771_vm3, %v2811_v11, %v2479_v61  ;;  %v2247_v15 = vld [vmem:[%s650_s21] ss:$0 sm:$0xff]  ;;  %s3037_s21 = sld [smem:[#allocation8_spill]] (!%p2265_p5) }
 0x8e1   : > { %v2483_v59 = vpop.permute.xlu1 %2482 }
 0x8e2   : > { %v2485_v62 = vunpack.i.h.bf16 %v2483_v59  ;;  %v2484_v63 = vunpack.i.l.bf16 %v2483_v59 }
 0x8e3   : > { %v2526_v12 = vpop.eup %2525 }
 0x8e4   : > { %v1568_v1 = vsel %vm771_vm3, %v2526_v12, 0.0  ;;  %v1703_v13 = vsel %vm1702_vm7, %v1700_v4, %v2484_v63  ;;  %v1704_v14 = vsel %vm1702_vm7, %v1701_v2, %v2485_v62  ;;  %v2262_v2 = vld [vmem:[%s678_s4] ss:$0 sm:$0xff] }
 0x8e5   : > { %1569 = vadd.xlane.f32.xlu0 %v1568_v1  ;;  %v2497_v1 = vld [vmem:[%s2714_s26 + $0x18] sm:$0xff]  }
 0x8e7   : > { %v2528_v7 = vpop.eup %2527 }
 0x8e8   : > { %v1571_v8 = vsel %vm771_vm3, %v2528_v7, 0.0 }
 0x8e9   : > { %1572 = vadd.xlane.f32.xlu0 %v1571_v8 }
 0x8ff   : > { %1628 = vrot.lane.b32.xlu0 %v2752_v16, %s2565_s24  ;;  %s3035_s24 = scalar_lea.vmem %s3006_s9, %s2666_s23 }
 0x96e   : > { %v1570_v38 = vpop.xlane.xlu0 %1569 }
 0x96f   : > { %2529 = vrcp.f32 %v1570_v38 }
 0x972   : > { %v1573_v39 = vpop.xlane.xlu0 %1572 }
 0x973   : > { %2531 = vrcp.f32 %v1573_v39 }
 0x976   : > { %v1629_v40 = vpop.permute.xlu0 %1628 }
 0x977   : > { %v1634_v41 = vsel %vm912_vm6, %v1629_v40, 0 }
 0x978   : > { %2419 = vmatpush3.bf16.msra.mxu0 %v1634_v41 }
 0x979   : > { %2432 = vmatprep.subr.bf16.mxu0 %v2553_v3 }
 0x97c   : > { %v2530_v42 = vpop.eup %2529 }
 0x97d   : > { %v1576_v43 = vmul.f32 %v2530_v42, %v2526_v12  ;;  %v2496_v12 = vld [vmem:[%s2704_s19] sm:$0xff]  }
 0x97f   : > { %v1578_v44 = vpack.c.bf16 %v1576_v43, %v1576_v43 }
 0x980   : > { %v2532_v45 = vpop.eup %2531 }
 0x981   : > { %2415 = vmatmul.mubr.msk.bf16.vlgmr.msra.gmra.mxu1 %vm771_vm3, %v1578_v44  ;;  %v1577_v46 = vmul.f32 %v2532_v45, %v2528_v7  ;;  %v2251_v44 = vld [vmem:[%s3034_s25] ss:$0 sm:$0xff] }
 0x982   : > { %2428 = vmatprep.mubr.msk.bf16.mxu1 %vm2554_vm1, %v2553_v3  ;;  %2425 = vmatpush3.bf16.msra.mxu1 %v2493_v47  ;;  %v2252_v47 = vld [vmem:[%s3035_s24] ss:$0 sm:$0xff] }
 0x983   : > { %v1579_v16 = vpack.c.bf16 %v1577_v46, %v1577_v46  ;;  %2426 = vmatprep.subr.bf16.mxu1 %v2553_v3 }
 0x985   : > { %2421 = vmatmul.mubr.msk.bf16.vlgmr.msra.gmra.mxu0 %vm771_vm3, %v1579_v16 }
 0x986   : > { %2436 = vmatprep.mubr.msk.bf16.mxu0 %vm2554_vm1, %v2553_v3  ;;  %2427 = vmatpush3.bf16.msra.mxu1 %v2494_v48 }
 0x987   : > { %2440 = vmatprep.subr.bf16.mxu1 %v2553_v3 }
 0xa41   : > { %v1622_v49 = vpop.f32.mrf.mxu1 }
 0xa43   : > { %v2416_v50 = vpop.f32.mrf.mxu1 }
 0xa45   : > { %v1625_v51 = vpop.f32.mrf.mxu1  ;;  %v1670_v52 = vpop.f32.mrf.mxu0 }
 0xa46   : > { %v2486_v53 = vpack.i.bf16 %v1670_v52, %v1622_v49  ;;  %v2498_v52 = vld [vmem:[%s2714_s26 + $0x10] sm:$0xff]  }
 0xa47   : > { %v2417_v54 = vpop.f32.mrf.mxu1  ;;  %v2422_v55 = vpop.f32.mrf.mxu0 }
 0xa48   : > { %2487 = vrot.lane.b32.xlu0 %v2486_v53, %s2568_s30  ;;  %v2499_v53 = vld [vmem:[%s2714_s26 + $0x8] sm:$0xff]   ;;  %v2500_v54 = vld [vmem:[%s2714_s26] sm:$0xff]  }
 0xa49   : > { %v1673_v56 = vpop.f32.mrf.mxu0  ;;  %v2253_v55 = vld [vmem:[%s670_s16] ss:$0 sm:$0xff] }
 0xa4b   : > { %v2423_v57 = vpop.f32.mrf.mxu0 }
 0xaba   : > { %v2488_v0 = vpop.permute.xlu0 %2487 }
 0xabb   : > { %v2490_v9 = vunpack.i.h.bf16 %v2488_v0  ;;  %v2489_v10 = vunpack.i.l.bf16 %v2488_v0 }
 0xabd   : > { %v1707_v17 = vsel %vm1705_vm8, %v1704_v14, %v2490_v9  ;;  %v1706_v18 = vsel %vm1705_vm8, %v1703_v13, %v2489_v10 }
 0xabe   : > { %v1712_v19 = vpack.c.bf16 %v1707_v17, %v1706_v18 }
 0xac0   : > { %2429 = vmatmul.mubr.msk.bf16.vlgmr.msra.gmra.mxu1 %vm721_vm2, %v1712_v19 }
 0xac1   : > { %2448 = vmatprep.mubr.msk.bf16.mxu1 %vm2554_vm1, %v2553_v3  ;;  %2441 = vmatpush3.bf16.msra.mxu1 %v2497_v1 }
 0xac2   : > { %2442 = vmatprep.subr.bf16.mxu1 %v2553_v3 }
 0xac5   : > { %2443 = vmatpush3.bf16.msra.mxu1 %v2498_v52 }
 0xac6   : > { %2444 = vmatprep.subr.bf16.mxu1 %v2553_v3 }
 0xac9   : > { %2445 = vmatpush3.bf16.msra.mxu1 %v2499_v53 }
 0xaca   : > { %2446 = vmatprep.subr.bf16.mxu1 %v2553_v3 }
 0xacd   : > { %2447 = vmatpush3.bf16.msra.mxu1 %v2500_v54 }
 0xb80   : > { %v1769_v20 = vpop.f32.mrf.mxu1 }
 0xb81   : > { %v1770_v21 = vadd.f32 %v2247_v15, %v1769_v20 }
 0xb82   : > { %v2430_v11 = vpop.f32.mrf.mxu1 }
 0xb83   : > { %v1776_v22 = vadd.f32 %v1770_v21, %v2731_v5 }
 0xb84   : > { %v1772_v23 = vpop.f32.mrf.mxu1 }
 0xb85   : > { %v1773_v24 = vadd.f32 %v2247_v15, %v1772_v23  ;;  %v1780_v25 = vsel %vm721_vm2, %v1776_v22, 0.0 }
 0xb86   : > { %1781 = vadd.xlane.f32.xlu1 %v1780_v25  ;;  %v2431_v26 = vpop.f32.mrf.mxu1 }
 0xb87   : > { %v1777_v28 = vadd.f32 %v1773_v24, %v2733_v6  ;;  %v2495_v6 = vld [vmem:[%s2704_s19 + $0x8] sm:$0xff]  }
 0xb88   : > { %2433 = vmatpush3.bf16.msra.mxu0 %v2495_v6 }
 0xb89   : > { %v1783_v29 = vsel %vm721_vm2, %v1777_v28, 0.0  ;;  %2434 = vmatprep.subr.bf16.mxu0 %v2553_v3 }
 0xb8a   : > { %1784 = vadd.xlane.f32.xlu0 %v1783_v29 }
 0xb8c   : > { %2435 = vmatpush3.bf16.msra.mxu0 %v2496_v12 }
 0xc0f   : > { %v1782_v27 = vpop.xlane.xlu1 %1781 }
 0xc10   : > { %v1787_v30 = vmul.f32 0.03125, %v1782_v27 }
 0xc12   : > { %v1789_v31 = vsub.f32 %v1776_v22, %v1787_v30 }
 0xc13   : > { %v1785_v32 = vpop.xlane.xlu0 %1784 }
 0xc14   : > { %v1788_v33 = vmul.f32 0.03125, %v1785_v32  ;;  %v1791_v5 = vmul.f32 %v1789_v31, %v1789_v31 }
 0xc16   : > { %v1790_v34 = vsub.f32 %v1777_v28, %v1788_v33  ;;  %v1793_v35 = vsel %vm721_vm2, %v1791_v5, 0.0 }
 0xc17   : > { %1794 = vadd.xlane.f32.xlu0 %v1793_v35  ;;  %v2263_v35 = vld [vmem:[%s659_s29] ss:$0 sm:$0xff]  ;;  %s3036_s29 = sld [smem:[#allocation7_spill]] (!%p2265_p5) }
 0xc18   : > { %v1792_v36 = vmul.f32 %v1790_v34, %v1790_v34 }
 0xc1a   : > { %v1796_v37 = vsel %vm721_vm2, %v1792_v36, 0.0 }
 0xc1b   : > { %1797 = vadd.xlane.f32.xlu1 %v1796_v37  ;;  %v2264_v37 = vld [vmem:[%s662_s17] ss:$0 sm:$0xff] }
 0xca0   : > { %v1795_v7 = vpop.xlane.xlu0 %1794 }
 0xca1   : > { %v1799_v8 = vmul.f32 0.03125, %v1795_v7 }
 0xca3   : > { %v1801_v38 = vadd.f32 1e-05, %v1799_v8 }
 0xca4   : > { %v1798_v39 = vpop.xlane.xlu1 %1797 }
 0xca5   : > { %2533 = vrsqrt.f32 %v1801_v38  ;;  %v1800_v40 = vmul.f32 0.03125, %v1798_v39 }
 0xca7   : > { %v1802_v41 = vadd.f32 1e-05, %v1800_v40 }
 0xca9   : > { %2535 = vrsqrt.f32 %v1802_v41 }
 0xcb2   : > { %v2534_v42 = vpop.eup %2533 }
 0xcb3   : > { %v1805_v43 = vmul.f32 %v2534_v42, %v1789_v31 }
 0xcb5   : > { %v1813_v16 = vmul.f32 %v2251_v44, %v1805_v43 }
 0xcb6   : > { %v2536_v45 = vpop.eup %2535 }
 0xcb7   : > { %v1806_v46 = vmul.f32 %v2536_v45, %v1790_v34  ;;  %v1821_v49 = vadd.f32 %v2252_v47, %v1813_v16 }
 0xcb9   : > { %v1814_v48 = vmul.f32 %v2251_v44, %v1806_v46 }
 0xcbb   : > { %v1822_v50 = vadd.f32 %v2252_v47, %v1814_v48 }
 0xcbd   : > { %v1827_v51 = vpack.c.bf16 %v1822_v50, %v1821_v49 }
 0xcbf   : > { %2437 = vmatmul.mubr.msk.bf16.vlgmr.msra.gmra.mxu0 %vm721_vm2, %v1827_v51 }
 0xd7f   : > { %v1884_v56 = vpop.f32.mrf.mxu0 }
 0xd80   : > { %v1885_v58 = vadd.f32 %v2253_v55, %v1884_v56 }
 0xd81   : > { %v2438_v57 = vpop.f32.mrf.mxu0 }
 0xd82   : > { %v1891_v62 = vmax.f32 %v1885_v58, 0.0 }
 0xd83   : > { %v1887_v59 = vpop.f32.mrf.mxu0 }
 0xd84   : > { %v1888_v60 = vadd.f32 %v2253_v55, %v1887_v59 }
 0xd85   : > { %v2439_v61 = vpop.f32.mrf.mxu0 }
 0xd86   : > { %v1892_v63 = vmax.f32 %v1888_v60, 0.0 }
 0xd88   : > { %v1901_v0 = vpack.c.bf16 %v1892_v63, %v1891_v62 }
 0xd8a   : > { %2449 = vmatmul.mubr.msk.bf16.vlgmr.msra.gmra.mxu1 %vm1926_vm9, %v1901_v0 }
 0xe4a   : > { %v1964_v3 = vpop.f32.mrf.mxu1 }
 0xe4b   : > { %v1971_v4 = vadd.f32 %v1964_v3, %v1821_v49 }
 0xe4c   : > { %v2450_v9 = vpop.f32.mrf.mxu1 }
 0xe4d   : > { %v1980_v10 = vadd.f32 %v2262_v2, %v1971_v4 }
 0xe4e   : > { %v1967_v13 = vpop.f32.mrf.mxu1 }
 0xe4f   : > { %v1972_v14 = vadd.f32 %v1967_v13, %v1822_v50  ;;  %v1984_v17 = vsel %vm721_vm2, %v1980_v10, 0.0 }
 0xe50   : > { %1985 = vadd.xlane.f32.xlu0 %v1984_v17  ;;  %v2451_v18 = vpop.f32.mrf.mxu1 }
 0xe51   : > { %v1981_v19 = vadd.f32 %v2262_v2, %v1972_v14 }
 0xe53   : > { %v1987_v15 = vsel %vm721_vm2, %v1981_v19, 0.0 }
 0xe54   : > { %1988 = vadd.xlane.f32.xlu1 %v1987_v15 }
 0xed9   : > { %v1986_v20 = vpop.xlane.xlu0 %1985 }
 0xeda   : > { %v1990_v21 = vmul.f32 0.03125, %v1986_v20 }
 0xedc   : > { %v1992_v11 = vsub.f32 %v1980_v10, %v1990_v21 }
 0xedd   : > { %v1989_v22 = vpop.xlane.xlu1 %1988 }
 0xede   : > { %v1991_v23 = vmul.f32 0.03125, %v1989_v22  ;;  %v1994_v24 = vmul.f32 %v1992_v11, %v1992_v11 }
 0xee0   : > { %v1993_v25 = vsub.f32 %v1981_v19, %v1991_v23  ;;  %v1996_v26 = vsel %vm721_vm2, %v1994_v24, 0.0 }
 0xee1   : > { %1997 = vadd.xlane.f32.xlu0 %v1996_v26 }
 0xee2   : > { %v1995_v28 = vmul.f32 %v1993_v25, %v1993_v25 }
 0xee4   : > { %v1999_v29 = vsel %vm721_vm2, %v1995_v28, 0.0 }
 0xee5   : > { %2000 = vadd.xlane.f32.xlu1 %v1999_v29 }
 0xf6a   : > { %v1998_v27 = vpop.xlane.xlu0 %1997 }
 0xf6b   : > { %v2002_v30 = vmul.f32 0.03125, %v1998_v27 }
 0xf6d   : > { %v2004_v31 = vadd.f32 1e-05, %v2002_v30 }
 0xf6e   : > { %v2001_v32 = vpop.xlane.xlu1 %2000 }
 0xf6f   : > { %2537 = vrsqrt.f32 %v2004_v31  ;;  %v2003_v33 = vmul.f32 0.03125, %v2001_v32 }
 0xf71   : > { %v2005_v5 = vadd.f32 1e-05, %v2003_v33 }
 0xf73   : > { %2539 = vrsqrt.f32 %v2005_v5 }
 0xf7c   : > { %v2538_v34 = vpop.eup %2537 }
 0xf7d   : > { %v2008_v36 = vmul.f32 %v2538_v34, %v1992_v11 }
 0xf7f   : > { %v2016_v6 = vmul.f32 %v2263_v35, %v2008_v36 }
 0xf80   : > { %v2540_v12 = vpop.eup %2539 }
 0xf81   : > { %v2024_v1 = vadd.f32 %v2264_v37, %v2016_v6  ;;  %v2009_v7 = vmul.f32 %v2540_v12, %v1993_v25 }
 0xf83   : > { %2026 = vst.msk [vmem:[#allocation2] sm:$0xff] %vm721_vm2, %v2024_v1  ;;  %v2017_v8 = vmul.f32 %v2263_v35, %v2009_v7  ;;  %2031 = sbr.rel (%p2265_p5) target bundleno = 4289 (0x10c1), region = 92 }
 0xf85   : > { %v2025_v38 = vadd.f32 %v2264_v37, %v2017_v8 }
 0xf87   : > { %2027 = vst.msk [vmem:[#allocation2 + $0x8] sm:$0xff] %vm721_vm2, %v2025_v38 }
 0xf88   : > { %v2034_v39 = vsel %vm721_vm2, %v2024_v1, 0.0  ;;  %v2037_v40 = vsel %vm721_vm2, %v2025_v38, 0.0  ;;  %v2266_v57 = vld [vmem:[%s3036_s29] ss:$0 sm:$0xff] }
 0xf89   : > { %2035 = vadd.xlane.f32.xlu0 %v2034_v39  ;;  %v2267_v59 = vld [vmem:[%s3037_s21] ss:$0 sm:$0xff] }
 0xf8d   : > { %2038 = vadd.xlane.f32.xlu0 %v2037_v40 }
0x1012   : > { %v2036_v41 = vpop.xlane.xlu0 %2035 }
0x1013   : > { %v2040_v42 = vmul.f32 0.03125, %v2036_v41 }
0x1015   : > { %v2042_v43 = vsub.f32 %v2024_v1, %v2040_v42 }
0x1016   : > { %v2039_v44 = vpop.xlane.xlu0 %2038 }
0x1017   : > { %v2041_v45 = vmul.f32 0.03125, %v2039_v44  ;;  %v2044_v46 = vmul.f32 %v2042_v43, %v2042_v43 }
0x1019   : > { %v2043_v16 = vsub.f32 %v2025_v38, %v2041_v45  ;;  %v2046_v47 = vsel %vm721_vm2, %v2044_v46, 0.0 }
0x101a   : > { %2047 = vadd.xlane.f32.xlu1 %v2046_v47 }
0x101b   : > { %v2045_v48 = vmul.f32 %v2043_v16, %v2043_v16 }
0x101d   : > { %v2049_v49 = vsel %vm721_vm2, %v2045_v48, 0.0 }
0x101e   : > { %2050 = vadd.xlane.f32.xlu1 %v2049_v49 }
0x10a3   : > { %v2048_v50 = vpop.xlane.xlu1 %2047 }
0x10a4   : > { %v2052_v51 = vmul.f32 0.03125, %v2048_v50 }
0x10a6   : > { %v2054_v52 = vadd.f32 1e-05, %v2052_v51 }
0x10a7   : > { %v2051_v53 = vpop.xlane.xlu1 %2050 }
0x10a8   : > { %2541 = vrsqrt.f32 %v2054_v52  ;;  %v2053_v54 = vmul.f32 0.03125, %v2051_v53 }
0x10aa   : > { %v2055_v55 = vadd.f32 1e-05, %v2053_v54 }
0x10ac   : > { %2543 = vrsqrt.f32 %v2055_v55 }
0x10b5   : > { %v2542_v56 = vpop.eup %2541 }
0x10b6   : > { %v2058_v58 = vmul.f32 %v2542_v56, %v2042_v43 }
0x10b8   : > { %v2066_v60 = vmul.f32 %v2266_v57, %v2058_v58 }
0x10b9   : > { %v2544_v61 = vpop.eup %2543 }
0x10ba   : > { %v2074_v62 = vadd.f32 %v2267_v59, %v2066_v60  ;;  %v2059_v63 = vmul.f32 %v2544_v61, %v2043_v16 }
0x10bc   : > { %2076 = vst.msk [vmem:[%s3038_s27] sm:$0xff] %vm721_vm2, %v2074_v62  ;;  %v2067_v0 = vmul.f32 %v2266_v57, %v2059_v63 }
0x10be   : > { %v2075_v3 = vadd.f32 %v2267_v59, %v2067_v0 }
0x10c0   : > { %2077 = vst.msk [vmem:[%s3038_s27 + $0x8] sm:$0xff] %vm721_vm2, %v2075_v3 }
0x10c1 PF: > { %s3039_s0 = sld [smem:[#allocation3_spill]] }
0x10c7   : > { %s26_s21 = sadd.s32 1, %s3039_s0  }
0x10c8   : > { %p23_p6 = scmp.ge.s32.totalorder %s26_s21, 4  }
0x10ca   :  { %25 = sbr.rel (!%p23_p6) target bundleno = 8 (0x8), region = 151 }

// kernel: fwd.4
= control target key start
LH: loop header
LB: loop body
LE: loop exit
PB: predicated region body
PF: predicated region fallthrough
CT: control target
= control target key end

     0   :  { %s4634_s27 = smov 0   ;;  %s5314_s0 = inlined_call_operand.vmem [shape: f32[2,8,32], index: 0, kind: input, shape index: {}]   ;;  %s5315_s1 = inlined_call_operand.vmem [shape: f32[2,8,32], index: 1, kind: input, shape index: {}]   ;;  %s5316_s2 = inlined_call_operand.vmem [shape: s32[2,1,8], index: 2, kind: input, shape index: {}]   ;;  %s5317_s3 = inlined_call_operand.vmem [shape: f32[1,32], index: 3, kind: input, shape index: {}]   ;;  %s5318_s4 = inlined_call_operand.vmem [shape: f32[1,32], index: 4, kind: input, shape index: {}]   ;;  %s5319_s5 = inlined_call_operand.vmem [shape: bf16[2,32,96], index: 5, kind: input, shape index: {}]   ;;  %s5320_s6 = inlined_call_operand.vmem [shape: f32[2,1,96], index: 6, kind: input, shape index: {}]   ;;  %s5321_s7 = inlined_call_operand.vmem [shape: bf16[2,32,32], index: 7, kind: input, shape index: {}]   ;;  %s5322_s8 = inlined_call_operand.vmem [shape: f32[2,1,32], index: 8, kind: input, shape index: {}, may-alias: {8,10,14,16,18,20,24}]   ;;  %s5323_s9 = inlined_call_operand.vmem [shape: bf16[2,32,32], index: 9, kind: input, shape index: {}]   ;;  %s5324_s10 = inlined_call_operand.vmem [shape: f32[2,1,32], index: 10, kind: input, shape index: {}, may-alias: {8,10,14,16,18,20,24}]   ;;  %s5325_s11 = inlined_call_operand.vmem [shape: bf16[2,32,64], index: 11, kind: input, shape index: {}]   ;;  %s5326_s12 = inlined_call_operand.vmem [shape: f32[2,1,64], index: 12, kind: input, shape index: {}, may-alias: {12,22}]   ;;  %s5327_s13 = inlined_call_operand.vmem [shape: bf16[2,32,32], index: 13, kind: input, shape index: {}]   ;;  %s5328_s14 = inlined_call_operand.vmem [shape: f32[2,1,32], index: 14, kind: input, shape index: {}, may-alias: {8,10,14,16,18,20,24}]   ;;  %s5329_s15 = inlined_call_operand.vmem [shape: f32[2,1,32], index: 15, kind: input, shape index: {}, may-alias: {15,17,19}]   ;;  %s5330_s16 = inlined_call_operand.vmem [shape: f32[2,1,32], index: 16, kind: input, shape index: {}, may-alias: {8,10,14,16,18,20,24}]   ;;  %s5331_s17 = inlined_call_operand.vmem [shape: f32[2,1,32], index: 17, kind: input, shape index: {}, may-alias: {15,17,19}]   ;;  %s5332_s18 = inlined_call_operand.vmem [shape: f32[2,1,32], index: 18, kind: input, shape index: {}, may-alias: {8,10,14,16,18,20,24}]   ;;  %s5333_s19 = inlined_call_operand.vmem [shape: f32[2,1,32], index: 19, kind: input, shape index: {}, may-alias: {15,17,19}]   ;;  %s5334_s20 = inlined_call_operand.vmem [shape: f32[2,1,32], index: 20, kind: input, shape index: {}, may-alias: {8,10,14,16,18,20,24}]   ;;  %s5335_s21 = inlined_call_operand.vmem [shape: bf16[2,32,64], index: 21, kind: input, shape index: {}]   ;;  %s5336_s22 = inlined_call_operand.vmem [shape: f32[2,1,64], index: 22, kind: input, shape index: {}, may-alias: {12,22}]   ;;  %s5337_s23 = inlined_call_operand.vmem [shape: bf16[2,64,32], index: 23, kind: input, shape index: {}]   ;;  %s5338_s24 = inlined_call_operand.vmem [shape: f32[2,1,32], index: 24, kind: input, shape index: {}, may-alias: {8,10,14,16,18,20,24}]   ;;  %s5339_s25 = inlined_call_operand.vmem [shape: f32[2,8,32], index: 25, kind: output, shape index: {0}]   ;;  %s5340_s26 = inlined_call_operand.vmem [shape: f32[2,8,8], index: 26, kind: output, shape index: {1}]  }
   0x1   :  { %5352 = sst [smem:[#allocation8_spill]] %s5314_s0 }
   0x2   :  { %5353 = sst [smem:[#allocation9_spill]] %s5315_s1 }
   0x3   :  { %5354 = sst [smem:[#allocation10_spill]] %s5316_s2 }
   0x4   :  { %5355 = sst [smem:[#allocation11_spill]] %s5317_s3 }
   0x5   :  { %5356 = sst [smem:[#allocation12_spill]] %s5318_s4 }
   0x6   :  { %5357 = sst [smem:[#allocation13_spill]] %s5319_s5 }
   0x7   :  { %5358 = sst [smem:[#allocation14_spill]] %s5320_s6 }
   0x8   :  { %5359 = sst [smem:[#allocation15_spill]] %s5321_s7 }
   0x9   :  { %5360 = sst [smem:[#allocation16_spill]] %s5322_s8 }
   0xa   :  { %5361 = sst [smem:[#allocation17_spill]] %s5323_s9 }
   0xb   :  { %5362 = sst [smem:[#allocation18_spill]] %s5324_s10 }
   0xc   :  { %5363 = sst [smem:[#allocation19_spill]] %s5325_s11 }
   0xd   :  { %5364 = sst [smem:[#allocation20_spill]] %s5327_s13 }
   0xe   :  { %5365 = sst [smem:[#allocation21_spill]] %s5337_s23 }
   0xf   :  { %5366 = sst [smem:[#allocation22_spill]] %s5338_s24 }
  0x10   :  { %5367 = sst [smem:[#allocation23_spill]] %s5339_s25 }
  0x11   :  { %5368 = sst [smem:[#allocation24_spill]] %s5340_s26 }
  0x12 LB: > { %5369 = sst [smem:[#allocation3_spill]] %s4481_s27  ;;  %s4640_s3 = sadd.s32 4294967295, %s4481_s27   ;;  %s4481_s27 = sphi %s4634_s27, %s37_s27  }
  0x13   : > { %5370 = sst [smem:[#allocation4_spill]] %s4640_s3  ;;  %p3890_p0 = scmp.ge.s32.totalorder %s4481_s27, 1 }
  0x14   : > { %p869_p1 = scmp.lt.s32.totalorder %s4481_s27, 3 }
  0x16   : > { %p870_p2 = pnand %p3890_p0, %p869_p1 }
  0x18   : > { %873 = sbr.rel (%p870_p2) target bundleno = 7399 (0x1ce7), region = 120 }
  0x1d   : > { %p1003_p3 = scmp.lt.s32.totalorder %s4640_s3, 1  ;;  %s5372_s2 = sld [smem:[#allocation13_spill]] }
  0x1e   : > { %s5374_s1 = sld [smem:[#allocation15_spill]] }
  0x1f   : > { %s4646_s7 = scalar_select %p1003_p3, %s4640_s3, 1 }
  0x20   : > { %s5377_s4 = sld [smem:[#allocation17_spill]] }
  0x21   : > { %s3979_s28 = sshll.u32 %s4646_s7, 4  ;;  %s5379_s11 = sld [smem:[#allocation19_spill]] }
  0x22   : > { %s5380_s13 = sld [smem:[#allocation20_spill]] }
  0x23   : > { %s4656_s5 = scalar_lea.vmem %s5372_s2, %s3979_s28  ;;  %s5382_s3 = sld [smem:[#allocation21_spill]] }
  0x24   : > { %5373 = sst [smem:[#allocation5_spill]] %s4656_s5  ;;  %s4661_s27 = scalar_lea.vmem %s5374_s1, %s3979_s28 }
  0x25   : > { %5375 = sst [smem:[#allocation6_spill]] %s4661_s27  ;;  %s4721_s5 = scalar_lea.vmem %s5335_s21, %s3979_s28 }
  0x26   : > { %s4670_s29 = scalar_lea.vmem %s5377_s4, %s3979_s28  ;;  %s3985_s1 = sshll.u32 %s4646_s7, 5 }
  0x27   : > { %s4679_s6 = scalar_lea.vmem %s5379_s11, %s3979_s28  ;;  %s5384_s4 = sld [smem:[#allocation4_spill]] }
  0x28   : > { %s4688_s23 = scalar_lea.vmem %s5380_s13, %s3979_s28 }
  0x29   : > { %5381 = sst [smem:[#allocation7_spill]] %s4688_s23  ;;  %s4731_s24 = scalar_lea.vmem %s5382_s3, %s3985_s1 }
  0x2d   : > { %p3905_p4 = scmp.ne.s32.totalorder %s5384_s4, 0 }
  0x2e   : > { %s5385_s30 = sld [smem:[#allocation8_spill]] (!%p3905_p4) }
  0x2f   : > { %1081 = sbr.rel (%p3905_p4) target bundleno = 54 (0x36), region = 124 }
  0x34   : > { %v1082_v0 = vld [vmem:[%s5385_s30] sm:$0xff]  ;;  %vm1084_vm0 = vcmask 261120   ;;  %v1083_v1 = vld [vmem:[%s5385_s30 + $0x8] sm:$0xff] }
  0x35   : > { %1085 = vst.msk [vmem:[#allocation2] sm:$0xff] %vm1084_vm0, %v1082_v0  ;;  %1086 = vst.msk [vmem:[#allocation2 + $0x8] sm:$0xff] %vm1084_vm0, %v1083_v1 }
  0x36 PF: > { %s5386_s1 = sld [smem:[#allocation5_spill]]  ;;  %v4483_v3 = vmov 0.0   ;;  %vm4484_vm1 = vmmov 0   ;;  %vm1139_vm2 = vcmask 261120   ;;  %s4485_s13 = smov 96   ;;  %vm1189_vm3 = vcmask 64512  }
  0x37   : > { %4073 = vmatprep.subr.bf16.mxu1 %v4483_v3  ;;  %4087 = vmatprep.subr.bf16.mxu0 %v4483_v3  ;;  %s5387_s25 = sld [smem:[#allocation14_spill]]  ;;  %v1089_v21 = vlaneseq  ;;  %s4486_s11 = smov 64   ;;  %vm1318_vm7 = vcmask 1043456   ;;  %vm2108_vm8 = vcmask 130048   ;;  %vm2111_vm9 = vcmask 195584  }
  0x38   : > { %4077 = vmatprep.mubr.msk.bf16.mxu1 %vm4484_vm1, %v4483_v3  ;;  %4089 = vmatprep.mubr.msk.bf16.mxu0 %vm4484_vm1, %v4483_v3  ;;  %s5389_s2 = sld [smem:[#allocation10_spill]]  ;;  %s4488_s3 = smov 120   ;;  %vm3510_vm10 = vcmask 523264  }
  0x39   : > { %v1090_v23 = vshrl.u32 %v1089_v21, 7  ;;  %v1092_v24 = vand.u32 127, %v1089_v21  ;;  %s4489_s8 = smov 56   ;;  %s4492_s23 = smov 48  }
  0x3a   : > { %s4493_s4 = smov 72   ;;  %s4494_s28 = smov 104  }
  0x3b   : > { %v1105_v26 = vsub.s32 0, %v1090_v23  ;;  %vm1093_vm5 = vcmp.gt.s32.totalorder %v1092_v24, %v1090_v23  ;;  %s4495_s10 = smov 40   ;;  %s5391_s0 = sld [smem:[#allocation16_spill]] }
  0x3c   : > { %v4379_v2 = vld [vmem:[%s5386_s1 + $0x8] sm:$0xff]   ;;  %v4380_v4 = vld [vmem:[%s5386_s1] sm:$0xff]   ;;  %v1094_v29 = vsel %vm1093_vm5, -1e+09, %v4483_v3  ;;  %s4487_s1 = smov 88  }
  0x3d   : > { %4074 = vmatpush3.bf16.msra.mxu1 %v4379_v2  ;;  %v4750_v5 = vld [vmem:[#allocation2] sm:$0xff]  ;;  %v4752_v6 = vld [vmem:[#allocation2 + $0x8] sm:$0xff]  ;;  %s5388_s26 = scalar_lea.vmem %s5387_s25, %s4646_s7  ;;  %s4490_s25 = smov 80  }
  0x3e   : > { %4075 = vmatprep.subr.bf16.mxu1 %v4483_v3  ;;  %v1119_v7 = vpack.c.bf16 %v4752_v6, %v4750_v5  ;;  %v3906_v8 = vld [vmem:[%s5388_s26] ss:$0 sm:$0xff]  ;;  %v1096_v25 = vld [vmem:[%s5389_s2 + $0x1] sm:$0x1]  ;;  %s4491_s26 = smov 112  }
  0x3f   : > { %v1095_v22 = vld [vmem:[%s5389_s2] sm:$0x1]  ;;  %vm1098_vm6 = vcmp.eq.s32.totalorder %v1096_v25, 0 }
  0x40   : > { %vm1097_vm4 = vcmp.eq.s32.totalorder %v1095_v22, 0  ;;  %v1100_v30 = vsel %vm1098_vm6, -1e+09, %v4483_v3 }
  0x41   : > { %4076 = vmatpush3.bf16.msra.mxu1 %v4380_v4  ;;  %v1099_v27 = vsel %vm1097_vm4, -1e+09, %v4483_v3  ;;  %v1110_v32 = vrot.slane %v1100_v30, %v1105_v26  ;;  %s5392_s27 = scalar_lea.vmem %s5391_s0, %s4646_s7  ;;  %s5393_s0 = sld [smem:[#allocation9_spill]] }
  0x42   : > { %4081 = vmatprep.subr.bf16.mxu1 %v4483_v3  ;;  %v1106_v28 = vrot.slane %v1099_v27, %v1105_v26 }
  0x43   : > { %v4800_v37 = vadd.f32 %v1110_v32, %v1094_v29 }
  0x44   : > { %4078 = vmatmul.mubr.msk.bf16.vlgmr.msra.gmra.mxu1 %vm1139_vm2, %v1119_v7  ;;  %v4797_v31 = vadd.f32 %v1106_v28, %v1094_v29 }
  0x45   : > { %4083 = vmatprep.mubr.msk.bf16.mxu1 %vm4484_vm1, %v4483_v3 }
 0x104   : > { %v1177_v9 = vpop.f32.mrf.mxu1 }
 0x105   : > { %v1178_v10 = vadd.f32 %v3906_v8, %v1177_v9 }
 0x106   : > { %v4079_v11 = vpop.f32.mrf.mxu1 }
 0x107   : > { %v4768_v12 = vpack.c.bf16 %v1178_v10, %v1178_v10 }
 0x108   : > { %v1180_v13 = vpop.f32.mrf.mxu1 }
 0x109   : > { %v1181_v14 = vadd.f32 %v3906_v8, %v1180_v13  ;;  %1187 = vrot.lane.b32.xlu0 %v4768_v12, %s4485_s13 }
 0x10a   : > { %v4080_v15 = vpop.f32.mrf.mxu1 }
 0x10b   : > { %v4772_v16 = vpack.c.bf16 %v1181_v14, %v1181_v14 }
 0x10d   : > { %1237 = vrot.lane.b32.xlu0 %v4772_v16, %s4485_s13 }
 0x17b   : > { %v1188_v17 = vpop.permute.xlu0 %1187 }
 0x17c   : > { %v1194_v18 = vsel %vm1189_vm3, %v1188_v17, 0 }
 0x17d   : > { %4082 = vmatpush3.bf16.xpose.msra.mxu1 %v1194_v18 }
 0x17e   : > { %4093 = vmatprep.subr.bf16.mxu1 %v4483_v3 }
 0x17f   : > { %v1238_v19 = vpop.permute.xlu0 %1237 }
 0x180   : > { %v1243_v20 = vsel %vm1189_vm3, %v1238_v19, 0 }
 0x181   : > { %4088 = vmatpush3.bf16.xpose.msra.mxu0 %v1243_v20 }
 0x182   : > { %4099 = vmatprep.subr.bf16.mxu0 %v4483_v3 }
 0x184   : > { %4084 = vmatmul.mubr.msk.bf16.vlgmr.msra.gmra.mxu1 %vm1189_vm3, %v4768_v12 }
 0x185   : > { %4095 = vmatprep.mubr.msk.bf16.mxu1 %vm4484_vm1, %v4483_v3 }
 0x188   : > { %4090 = vmatmul.mubr.msk.bf16.vlgmr.msra.gmra.mxu0 %vm1189_vm3, %v4772_v16 }
 0x189   : > { %4101 = vmatprep.mubr.msk.bf16.mxu0 %vm4484_vm1, %v4483_v3 }
 0x244   : > { %v1230_v33 = vpop.f32.mrf.mxu1 }
 0x245   : > { %v1285_v34 = vmul.f32 0.35355338, %v1230_v33 }
 0x246   : > { %v4085_v35 = vpop.f32.mrf.mxu1 }
 0x247   : > { %v1287_v36 = vadd.f32 %v1285_v34, %v4797_v31 }
 0x248   : > { %v1233_v38 = vpop.f32.mrf.mxu1  ;;  %v1279_v39 = vpop.f32.mrf.mxu0 }
 0x249   : > { %v1286_v40 = vmul.f32 0.35355338, %v1279_v39  ;;  %v1289_v41 = vsel %vm1189_vm3, %v1287_v36, -inf }
 0x24a   : > { %v4091_v42 = vpop.f32.mrf.mxu0  ;;  %1290 = vmax.xlane.f32.xlu1 %v1289_v41  ;;  %v4086_v43 = vpop.f32.mrf.mxu1 }
 0x24b   : > { %v1288_v44 = vadd.f32 %v1286_v40, %v4800_v37 }
 0x24c   : > { %v1282_v45 = vpop.f32.mrf.mxu0 }
 0x24d   : > { %v1292_v46 = vsel %vm1189_vm3, %v1288_v44, -inf }
 0x24e   : > { %v4092_v47 = vpop.f32.mrf.mxu0  ;;  %1293 = vmax.xlane.f32.xlu1 %v1292_v46 }
 0x25f   : > { %1313 = vrot.lane.b32.xlu1 %v4768_v12, %s4486_s11 }
 0x263   : > { %1362 = vrot.lane.b32.xlu1 %v4772_v16, %s4486_s11  ;;  %s4496_s11 = smov 8  }
 0x267   : > { %1412 = vrot.lane.b32.xlu1 %v4768_v12, %s4487_s1 }
 0x2d3   : > { %v1291_v48 = vpop.xlane.xlu1 %1290 }
 0x2d4   : > { %v1295_v49 = vsub.f32 %v1287_v36, %v1291_v48 }
 0x2d6   : > { %v1297_v50 = vmul.f32 1.442695, %v1295_v49 }
 0x2d7   : > { %v1294_v51 = vpop.xlane.xlu1 %1293 }
 0x2d8   : > { %4395 = vpow2.f32 %v1297_v50  ;;  %v1296_v52 = vsub.f32 %v1288_v44, %v1294_v51 }
 0x2da   : > { %v1299_v53 = vmul.f32 1.442695, %v1296_v52 }
 0x2db   : > { %v1314_v54 = vpop.permute.xlu1 %1313 }
 0x2dc   : > { %4397 = vpow2.f32 %v1299_v53  ;;  %v1320_v55 = vsel %vm1318_vm7, %v1314_v54, 0 }
 0x2dd   : > { %4094 = vmatpush3.bf16.msra.mxu1 %v1320_v55 }
 0x2de   : > { %4105 = vmatprep.subr.bf16.mxu1 %v4483_v3 }
 0x2df   : > { %v1363_v56 = vpop.permute.xlu1 %1362 }
 0x2e0   : > { %v1368_v57 = vsel %vm1318_vm7, %v1363_v56, 0 }
 0x2e1   : > { %4100 = vmatpush3.bf16.msra.mxu0 %v1368_v57 }
 0x2e2   : > { %4111 = vmatprep.subr.bf16.mxu0 %v4483_v3 }
 0x2e3   : > { %v1413_v62 = vpop.permute.xlu1 %1412 }
 0x2e4   : > { %v1418_v8 = vsel %vm1189_vm3, %v1413_v62, 0 }
 0x2e5   : > { %v4396_v58 = vpop.eup %4395 }
 0x2e6   : > { %v1301_v59 = vsel %vm1189_vm3, %v4396_v58, 0.0 }
 0x2e7   : > { %1302 = vadd.xlane.f32.xlu0 %v1301_v59 }
 0x2e9   : > { %v4398_v60 = vpop.eup %4397 }
 0x2ea   : > { %v1304_v61 = vsel %vm1189_vm3, %v4398_v60, 0.0 }
 0x2eb   : > { %1305 = vadd.xlane.f32.xlu1 %v1304_v61 }
 0x2fc   : > { %1462 = vrot.lane.b32.xlu1 %v4772_v16, %s4487_s1 }
 0x2fd   : > { %1410 = vrot.lane.b32.xlu0 %v4768_v12, %s4488_s3 }
 0x300   : > { %1460 = vrot.lane.b32.xlu1 %v4772_v16, %s4488_s3 }
 0x370   : > { %v1303_v63 = vpop.xlane.xlu0 %1302 }
 0x371   : > { %4399 = vrcp.f32 %v1303_v63 }
 0x374   : > { %v1306_v0 = vpop.xlane.xlu1 %1305  ;;  %v1411_v14 = vpop.permute.xlu0 %1410 }
 0x375   : > { %4401 = vrcp.f32 %v1306_v0 }
 0x378   : > { %v1463_v10 = vpop.permute.xlu1 %1462 }
 0x379   : > { %v1468_v13 = vsel %vm1189_vm3, %v1463_v10, 0 }
 0x37c   : > { %v1461_v15 = vpop.permute.xlu1 %1460 }
 0x37e   : > { %v4400_v1 = vpop.eup %4399 }
 0x37f   : > { %v1309_v2 = vmul.f32 %v4400_v1, %v4396_v58 }
 0x381   : > { %v1311_v4 = vpack.c.bf16 %v1309_v2, %v1309_v2 }
 0x382   : > { %v4402_v7 = vpop.eup %4401 }
 0x383   : > { %4096 = vmatmul.mubr.msk.bf16.vlgmr.msra.gmra.mxu1 %vm1189_vm3, %v1311_v4  ;;  %v1310_v9 = vmul.f32 %v4402_v7, %v4398_v60 }
 0x384   : > { %4106 = vmatpush3.bf16.xpose.msra.mxu1 %v1418_v8  ;;  %4107 = vmatprep.mubr.msk.bf16.mxu1 %vm4484_vm1, %v4483_v3 }
 0x385   : > { %v1312_v11 = vpack.c.bf16 %v1310_v9, %v1310_v9  ;;  %4117 = vmatprep.subr.bf16.mxu1 %v4483_v3 }
 0x387   : > { %4102 = vmatmul.mubr.msk.bf16.vlgmr.msra.gmra.mxu0 %vm1189_vm3, %v1312_v11 }
 0x388   : > { %4112 = vmatpush3.bf16.xpose.msra.mxu0 %v1468_v13  ;;  %4113 = vmatprep.mubr.msk.bf16.mxu0 %vm4484_vm1, %v4483_v3 }
 0x389   : > { %4123 = vmatprep.subr.bf16.mxu0 %v4483_v3 }
 0x38b   : > { %4108 = vmatmul.mubr.msk.bf16.vlgmr.msra.gmra.mxu1 %vm1189_vm3, %v1411_v14 }
 0x38c   : > { %4119 = vmatprep.mubr.msk.bf16.mxu1 %vm4484_vm1, %v4483_v3 }
 0x38f   : > { %4114 = vmatmul.mubr.msk.bf16.vlgmr.msra.gmra.mxu0 %vm1189_vm3, %v1461_v15 }
 0x390   : > { %4125 = vmatprep.mubr.msk.bf16.mxu0 %vm4484_vm1, %v4483_v3 }
 0x443   : > { %v4837_v17 = vpop.f32.mrf.mxu1 }
 0x445   : > { %v4097_v18 = vpop.f32.mrf.mxu1 }
 0x447   : > { %v1359_v19 = vpop.f32.mrf.mxu1  ;;  %v4839_v20 = vpop.f32.mrf.mxu0 }
 0x449   : > { %v4098_v21 = vpop.f32.mrf.mxu1  ;;  %v4103_v22 = vpop.f32.mrf.mxu0 }
 0x44b   : > { %v1407_v23 = vpop.f32.mrf.mxu0  ;;  %v1454_v24 = vpop.f32.mrf.mxu1 }
 0x44c   : > { %v1510_v25 = vmul.f32 0.35355338, %v1454_v24 }
 0x44d   : > { %v4104_v26 = vpop.f32.mrf.mxu0  ;;  %v4109_v27 = vpop.f32.mrf.mxu1 }
 0x44e   : > { %v1512_v28 = vadd.f32 %v1510_v25, %v4797_v31 }
 0x44f   : > { %v1457_v29 = vpop.f32.mrf.mxu1  ;;  %v1504_v30 = vpop.f32.mrf.mxu0 }
 0x450   : > { %v1511_v32 = vmul.f32 0.35355338, %v1504_v30  ;;  %v1514_v33 = vsel %vm1189_vm3, %v1512_v28, -inf }
 0x451   : > { %v4115_v34 = vpop.f32.mrf.mxu0  ;;  %1515 = vmax.xlane.f32.xlu1 %v1514_v33  ;;  %v4110_v35 = vpop.f32.mrf.mxu1 }
 0x452   : > { %v1513_v36 = vadd.f32 %v1511_v32, %v4800_v37 }
 0x453   : > { %v1507_v38 = vpop.f32.mrf.mxu0 }
 0x454   : > { %v1517_v39 = vsel %vm1189_vm3, %v1513_v36, -inf }
 0x455   : > { %1518 = vmax.xlane.f32.xlu0 %v1517_v39  ;;  %v4116_v40 = vpop.f32.mrf.mxu0 }
 0x462   : > { %1538 = vrot.lane.b32.xlu1 %v4768_v12, %s4489_s8 }
 0x466   : > { %1636 = vrot.lane.b32.xlu1 %v4768_v12, %s4490_s25 }
 0x46b   : > { %1586 = vrot.lane.b32.xlu0 %v4772_v16, %s4489_s8  ;;  %s4497_s8 = smov 16  }
 0x46f   : > { %1634 = vrot.lane.b32.xlu0 %v4768_v12, %s4491_s26 }
 0x4da   : > { %v1516_v41 = vpop.xlane.xlu1 %1515 }
 0x4db   : > { %v1520_v42 = vsub.f32 %v1512_v28, %v1516_v41 }
 0x4dd   : > { %v1522_v43 = vmul.f32 1.442695, %v1520_v42 }
 0x4de   : > { %v1519_v44 = vpop.xlane.xlu0 %1518  ;;  %v1539_v45 = vpop.permute.xlu1 %1538 }
 0x4df   : > { %4403 = vpow2.f32 %v1522_v43  ;;  %v1521_v46 = vsub.f32 %v1513_v36, %v1519_v44  ;;  %v1544_v47 = vsel %vm1318_vm7, %v1539_v45, 0 }
 0x4e0   : > { %4118 = vmatpush3.bf16.msra.mxu1 %v1544_v47 }
 0x4e1   : > { %v1524_v48 = vmul.f32 1.442695, %v1521_v46  ;;  %4129 = vmatprep.subr.bf16.mxu1 %v4483_v3 }
 0x4e2   : > { %v1587_v49 = vpop.permute.xlu0 %1586  ;;  %v1637_v55 = vpop.permute.xlu1 %1636 }
 0x4e3   : > { %4405 = vpow2.f32 %v1524_v48  ;;  %v1592_v50 = vsel %vm1318_vm7, %v1587_v49, 0  ;;  %v1642_v62 = vsel %vm1189_vm3, %v1637_v55, 0 }
 0x4e4   : > { %4124 = vmatpush3.bf16.msra.mxu0 %v1592_v50 }
 0x4e5   : > { %4135 = vmatprep.subr.bf16.mxu0 %v4483_v3 }
 0x4e6   : > { %v1635_v4 = vpop.permute.xlu0 %1634 }
 0x4ec   : > { %v4404_v51 = vpop.eup %4403 }
 0x4ed   : > { %v1526_v52 = vsel %vm1189_vm3, %v4404_v51, 0.0 }
 0x4ee   : > { %1527 = vadd.xlane.f32.xlu1 %v1526_v52 }
 0x4f0   : > { %v4406_v53 = vpop.eup %4405 }
 0x4f1   : > { %v1529_v54 = vsel %vm1189_vm3, %v4406_v53, 0.0 }
 0x4f2   : > { %1530 = vadd.xlane.f32.xlu1 %v1529_v54 }
 0x503   : > { %1686 = vrot.lane.b32.xlu1 %v4772_v16, %s4490_s25 }
 0x507   : > { %1684 = vrot.lane.b32.xlu1 %v4772_v16, %s4491_s26 }
 0x577   : > { %v1528_v56 = vpop.xlane.xlu1 %1527 }
 0x578   : > { %4407 = vrcp.f32 %v1528_v56 }
 0x57b   : > { %v1531_v57 = vpop.xlane.xlu1 %1530 }
 0x57c   : > { %4409 = vrcp.f32 %v1531_v57 }
 0x57f   : > { %v1687_v0 = vpop.permute.xlu1 %1686 }
 0x580   : > { %v1692_v2 = vsel %vm1189_vm3, %v1687_v0, 0 }
 0x583   : > { %v1685_v7 = vpop.permute.xlu1 %1684 }
 0x585   : > { %v4408_v58 = vpop.eup %4407 }
 0x586   : > { %v1534_v59 = vmul.f32 %v4408_v58, %v4404_v51 }
 0x588   : > { %v1536_v60 = vpack.c.bf16 %v1534_v59, %v1534_v59 }
 0x589   : > { %v4410_v61 = vpop.eup %4409 }
 0x58a   : > { %4120 = vmatmul.mubr.msk.bf16.vlgmr.msra.gmra.mxu1 %vm1189_vm3, %v1536_v60  ;;  %v1535_v63 = vmul.f32 %v4410_v61, %v4406_v53 }
 0x58b   : > { %4130 = vmatpush3.bf16.xpose.msra.mxu1 %v1642_v62  ;;  %4131 = vmatprep.mubr.msk.bf16.mxu1 %vm4484_vm1, %v4483_v3 }
 0x58c   : > { %v1537_v1 = vpack.c.bf16 %v1535_v63, %v1535_v63  ;;  %4141 = vmatprep.subr.bf16.mxu1 %v4483_v3 }
 0x58e   : > { %4126 = vmatmul.mubr.msk.bf16.vlgmr.msra.gmra.mxu0 %vm1189_vm3, %v1537_v1 }
 0x58f   : > { %4136 = vmatpush3.bf16.xpose.msra.mxu0 %v1692_v2  ;;  %4137 = vmatprep.mubr.msk.bf16.mxu0 %vm4484_vm1, %v4483_v3 }
 0x590   : > { %4147 = vmatprep.subr.bf16.mxu0 %v4483_v3 }
 0x592   : > { %4132 = vmatmul.mubr.msk.bf16.vlgmr.msra.gmra.mxu1 %vm1189_vm3, %v1635_v4 }
 0x593   : > { %4143 = vmatprep.mubr.msk.bf16.mxu1 %vm4484_vm1, %v4483_v3 }
 0x596   : > { %4138 = vmatmul.mubr.msk.bf16.vlgmr.msra.gmra.mxu0 %vm1189_vm3, %v1685_v7 }
 0x597   : > { %4149 = vmatprep.mubr.msk.bf16.mxu0 %vm4484_vm1, %v4483_v3 }
 0x64a   : > { %v4877_v8 = vpop.f32.mrf.mxu1 }
 0x64c   : > { %v4121_v9 = vpop.f32.mrf.mxu1 }
 0x64e   : > { %v1583_v10 = vpop.f32.mrf.mxu1  ;;  %v4879_v11 = vpop.f32.mrf.mxu0 }
 0x64f   : > { %v4349_v13 = vpack.i.bf16 %v4879_v11, %v4877_v8 }
 0x650   : > { %v4122_v14 = vpop.f32.mrf.mxu1  ;;  %v4127_v15 = vpop.f32.mrf.mxu0 }
 0x652   : > { %v1631_v18 = vpop.f32.mrf.mxu0  ;;  %v1678_v19 = vpop.f32.mrf.mxu1 }
 0x653   : > { %v1734_v21 = vmul.f32 0.35355338, %v1678_v19 }
 0x654   : > { %v4128_v22 = vpop.f32.mrf.mxu0  ;;  %v4133_v23 = vpop.f32.mrf.mxu1 }
 0x655   : > { %v1736_v24 = vadd.f32 %v1734_v21, %v4797_v31 }
 0x656   : > { %v1681_v25 = vpop.f32.mrf.mxu1  ;;  %v1728_v26 = vpop.f32.mrf.mxu0 }
 0x657   : > { %v1735_v27 = vmul.f32 0.35355338, %v1728_v26  ;;  %v1738_v28 = vsel %vm1189_vm3, %v1736_v24, -inf }
 0x658   : > { %v4139_v29 = vpop.f32.mrf.mxu0  ;;  %1739 = vmax.xlane.f32.xlu0 %v1738_v28  ;;  %v4134_v30 = vpop.f32.mrf.mxu1 }
 0x659   : > { %v1737_v32 = vadd.f32 %v1735_v27, %v4800_v37 }
 0x65a   : > { %v1731_v33 = vpop.f32.mrf.mxu0 }
 0x65b   : > { %v1741_v34 = vsel %vm1189_vm3, %v1737_v32, -inf }
 0x65c   : > { %1742 = vmax.xlane.f32.xlu1 %v1741_v34  ;;  %v4140_v35 = vpop.f32.mrf.mxu0 }
 0x66d   : > { %1762 = vrot.lane.b32.xlu1 %v4768_v12, %s4492_s23 }
 0x671   : > { %1860 = vrot.lane.b32.xlu1 %v4768_v12, %s4493_s4 }
 0x675   : > { %1910 = vrot.lane.b32.xlu1 %v4772_v16, %s4493_s4 }
 0x679   : > { %1908 = vrot.lane.b32.xlu1 %v4772_v16, %s4494_s28 }
 0x6e1   : > { %v1740_v36 = vpop.xlane.xlu0 %1739 }
 0x6e2   : > { %v1744_v38 = vsub.f32 %v1736_v24, %v1740_v36 }
 0x6e4   : > { %v1746_v39 = vmul.f32 1.442695, %v1744_v38 }
 0x6e5   : > { %v1743_v40 = vpop.xlane.xlu1 %1742 }
 0x6e6   : > { %4411 = vpow2.f32 %v1746_v39  ;;  %v1745_v41 = vsub.f32 %v1737_v32, %v1743_v40 }
 0x6e8   : > { %v1748_v42 = vmul.f32 1.442695, %v1745_v41 }
 0x6e9   : > { %v1763_v43 = vpop.permute.xlu1 %1762 }
 0x6ea   : > { %4413 = vpow2.f32 %v1748_v42  ;;  %v1768_v44 = vsel %vm1318_vm7, %v1763_v43, 0 }
 0x6eb   : > { %4142 = vmatpush3.bf16.msra.mxu1 %v1768_v44 }
 0x6ec   : > { %4153 = vmatprep.subr.bf16.mxu1 %v4483_v3 }
 0x6ed   : > { %v1861_v54 = vpop.permute.xlu1 %1860 }
 0x6ee   : > { %v1866_v58 = vsel %vm1189_vm3, %v1861_v54, 0 }
 0x6f1   : > { %v1911_v60 = vpop.permute.xlu1 %1910 }
 0x6f2   : > { %v1916_v62 = vsel %vm1189_vm3, %v1911_v60, 0 }
 0x6f3   : > { %v4412_v45 = vpop.eup %4411 }
 0x6f4   : > { %v1750_v46 = vsel %vm1189_vm3, %v4412_v45, 0.0 }
 0x6f5   : > { %1751 = vadd.xlane.f32.xlu0 %v1750_v46  ;;  %v1909_v0 = vpop.permute.xlu1 %1908 }
 0x6f7   : > { %v4414_v47 = vpop.eup %4413 }
 0x6f8   : > { %v1753_v48 = vsel %vm1189_vm3, %v4414_v47, 0.0 }
 0x6f9   : > { %1754 = vadd.xlane.f32.xlu0 %v1753_v48 }
 0x70f   : > { %1810 = vrot.lane.b32.xlu0 %v4772_v16, %s4492_s23  ;;  %s5390_s23 = sld [smem:[#allocation6_spill]] }
 0x713   : > { %1858 = vrot.lane.b32.xlu0 %v4768_v12, %s4494_s28 }
 0x77e   : > { %v1752_v49 = vpop.xlane.xlu0 %1751 }
 0x77f   : > { %4415 = vrcp.f32 %v1752_v49 }
 0x782   : > { %v1755_v50 = vpop.xlane.xlu0 %1754 }
 0x783   : > { %4417 = vrcp.f32 %v1755_v50 }
 0x786   : > { %v1811_v51 = vpop.permute.xlu0 %1810 }
 0x787   : > { %v1816_v52 = vsel %vm1318_vm7, %v1811_v51, 0  ;;  %v4381_v51 = vld [vmem:[%s5390_s23 + $0x8] sm:$0xff]  }
 0x788   : > { %4148 = vmatpush3.bf16.msra.mxu0 %v1816_v52  ;;  %v4382_v52 = vld [vmem:[%s5390_s23] sm:$0xff]   ;;  %s5395_s23 = scalar_lea.vmem %s5330_s16, %s4646_s7 }
 0x789   : > { %4159 = vmatprep.subr.bf16.mxu0 %v4483_v3 }
 0x78a   : > { %v1859_v63 = vpop.permute.xlu0 %1858 }
 0x78c   : > { %v4416_v53 = vpop.eup %4415 }
 0x78d   : > { %v1758_v55 = vmul.f32 %v4416_v53, %v4412_v45 }
 0x78f   : > { %v1760_v56 = vpack.c.bf16 %v1758_v55, %v1758_v55 }
 0x790   : > { %v4418_v57 = vpop.eup %4417 }
 0x791   : > { %4144 = vmatmul.mubr.msk.bf16.vlgmr.msra.gmra.mxu1 %vm1189_vm3, %v1760_v56  ;;  %v1759_v59 = vmul.f32 %v4418_v57, %v4414_v47 }
 0x792   : > { %4154 = vmatpush3.bf16.xpose.msra.mxu1 %v1866_v58  ;;  %4155 = vmatprep.mubr.msk.bf16.mxu1 %vm4484_vm1, %v4483_v3 }
 0x793   : > { %v1761_v61 = vpack.c.bf16 %v1759_v59, %v1759_v59  ;;  %4165 = vmatprep.subr.bf16.mxu1 %v4483_v3 }
 0x795   : > { %4150 = vmatmul.mubr.msk.bf16.vlgmr.msra.gmra.mxu0 %vm1189_vm3, %v1761_v61 }
 0x796   : > { %4160 = vmatpush3.bf16.xpose.msra.mxu0 %v1916_v62  ;;  %4161 = vmatprep.mubr.msk.bf16.mxu0 %vm4484_vm1, %v4483_v3 }
 0x797   : > { %4171 = vmatprep.subr.bf16.mxu0 %v4483_v3 }
 0x799   : > { %4156 = vmatmul.mubr.msk.bf16.vlgmr.msra.gmra.mxu1 %vm1189_vm3, %v1859_v63 }
 0x79a   : > { %4167 = vmatprep.mubr.msk.bf16.mxu1 %vm4484_vm1, %v4483_v3 }
 0x79d   : > { %4162 = vmatmul.mubr.msk.bf16.vlgmr.msra.gmra.mxu0 %vm1189_vm3, %v1909_v0 }
 0x79e   : > { %4173 = vmatprep.mubr.msk.bf16.mxu0 %vm4484_vm1, %v4483_v3 }
 0x851   : > { %v1804_v1 = vpop.f32.mrf.mxu1 }
 0x853   : > { %v4145_v2 = vpop.f32.mrf.mxu1 }
 0x855   : > { %v1807_v4 = vpop.f32.mrf.mxu1  ;;  %v1852_v7 = vpop.f32.mrf.mxu0 }
 0x857   : > { %v4146_v9 = vpop.f32.mrf.mxu1  ;;  %v4151_v10 = vpop.f32.mrf.mxu0 }
 0x859   : > { %v1855_v14 = vpop.f32.mrf.mxu0  ;;  %v1902_v15 = vpop.f32.mrf.mxu1 }
 0x85a   : > { %v1958_v18 = vmul.f32 0.35355338, %v1902_v15 }
 0x85b   : > { %v4152_v19 = vpop.f32.mrf.mxu0  ;;  %v4157_v21 = vpop.f32.mrf.mxu1 }
 0x85c   : > { %v1960_v22 = vadd.f32 %v1958_v18, %v4797_v31  ;;  %v4354_v31 = vpack.i.bf16 %v1852_v7, %v1804_v1 }
 0x85d   : > { %v1905_v23 = vpop.f32.mrf.mxu1  ;;  %v1952_v24 = vpop.f32.mrf.mxu0 }
 0x85e   : > { %v1959_v25 = vmul.f32 0.35355338, %v1952_v24  ;;  %v1962_v26 = vsel %vm1189_vm3, %v1960_v22, -inf }
 0x85f   : > { %v4163_v27 = vpop.f32.mrf.mxu0  ;;  %1963 = vmax.xlane.f32.xlu0 %v1962_v26  ;;  %v4158_v28 = vpop.f32.mrf.mxu1 }
 0x860   : > { %v1961_v29 = vadd.f32 %v1959_v25, %v4800_v37 }
 0x861   : > { %v1955_v30 = vpop.f32.mrf.mxu0 }
 0x862   : > { %v1965_v32 = vsel %vm1189_vm3, %v1961_v29, -inf }
 0x863   : > { %1966 = vmax.xlane.f32.xlu1 %v1965_v32  ;;  %v4164_v33 = vpop.f32.mrf.mxu0 }
 0x874   : > { %1986 = vrot.lane.b32.xlu1 %v4768_v12, %s4495_s10 }
 0x878   : > { %4350 = vrot.lane.b32.xlu1 %v4349_v13, %s4496_s11 }
 0x87c   : > { %4355 = vrot.lane.b32.xlu1 %v4354_v31, %s4497_s8 }
 0x8e8   : > { %v1964_v34 = vpop.xlane.xlu0 %1963 }
 0x8e9   : > { %v1968_v37 = vsub.f32 %v1960_v22, %v1964_v34 }
 0x8eb   : > { %v1970_v35 = vmul.f32 1.442695, %v1968_v37 }
 0x8ec   : > { %v1967_v36 = vpop.xlane.xlu1 %1966 }
 0x8ed   : > { %4419 = vpow2.f32 %v1970_v35  ;;  %v1969_v38 = vsub.f32 %v1961_v29, %v1967_v36 }
 0x8ef   : > { %v1972_v39 = vmul.f32 1.442695, %v1969_v38 }
 0x8f0   : > { %v1987_v40 = vpop.permute.xlu1 %1986 }
 0x8f1   : > { %4421 = vpow2.f32 %v1972_v39  ;;  %v1992_v12 = vsel %vm1318_vm7, %v1987_v40, 0 }
 0x8f2   : > { %4166 = vmatpush3.bf16.msra.mxu1 %v1992_v12 }
 0x8f3   : > { %4177 = vmatprep.subr.bf16.mxu1 %v4483_v3 }
 0x8f4   : > { %v4351_v62 = vpop.permute.xlu1 %4350 }
 0x8f5   : > { %v4353_v0 = vunpack.i.h.bf16 %v4351_v62  ;;  %v4352_v1 = vunpack.i.l.bf16 %v4351_v62 }
 0x8f7   : > { %v2107_v9 = vsel %vm1189_vm3, %v4839_v20, %v4353_v0  ;;  %v2106_v10 = vsel %vm1189_vm3, %v4837_v17, %v4352_v1  ;;  %v3926_v17 = vld [vmem:[%s5392_s27] ss:$0 sm:$0xff]  ;;  %s5404_s27 = scalar_lea.vmem %s5336_s22, %s4646_s7 }
 0x8f8   : > { %v4356_v63 = vpop.permute.xlu1 %4355 }
 0x8f9   : > { %v4358_v2 = vunpack.i.h.bf16 %v4356_v63  ;;  %v4357_v4 = vunpack.i.l.bf16 %v4356_v63 }
 0x8fa   : > { %v4420_v8 = vpop.eup %4419 }
 0x8fb   : > { %v1974_v11 = vsel %vm1189_vm3, %v4420_v8, 0.0  ;;  %v2110_v18 = vsel %vm2108_vm8, %v2107_v9, %v4358_v2  ;;  %v2109_v19 = vsel %vm2108_vm8, %v2106_v10, %v4357_v4 }
 0x8fc   : > { %1975 = vadd.xlane.f32.xlu0 %v1974_v11  ;;  %v2229_v11 = vld [vmem:[%s5393_s0] sm:$0xff] }
 0x8fe   : > { %v4422_v13 = vpop.eup %4421 }
 0x8ff   : > { %v1977_v41 = vsel %vm1189_vm3, %v4422_v13, 0.0 }
 0x900   : > { %1978 = vadd.xlane.f32.xlu0 %v1977_v41 }
 0x916   : > { %2034 = vrot.lane.b32.xlu0 %v4772_v16, %s4495_s10  ;;  %s5351_s10 = smov 24  }
 0x985   : > { %v1976_v42 = vpop.xlane.xlu0 %1975 }
 0x986   : > { %4423 = vrcp.f32 %v1976_v42  ;;  %v4385_v42 = vld [vmem:[%s4670_s29 + $0x8] sm:$0xff]  }
 0x989   : > { %v1979_v43 = vpop.xlane.xlu0 %1978 }
 0x98a   : > { %4425 = vrcp.f32 %v1979_v43  ;;  %v4386_v43 = vld [vmem:[%s4670_s29] sm:$0xff]   ;;  %s5394_s29 = scalar_lea.vmem %s5329_s15, %s4646_s7 }
 0x98d   : > { %v2035_v44 = vpop.permute.xlu0 %2034 }
 0x98e   : > { %v2040_v45 = vsel %vm1318_vm7, %v2035_v44, 0 }
 0x98f   : > { %4172 = vmatpush3.bf16.msra.mxu0 %v2040_v45 }
 0x990   : > { %4185 = vmatprep.subr.bf16.mxu0 %v4483_v3 }
 0x993   : > { %v4424_v46 = vpop.eup %4423 }
 0x994   : > { %v1982_v47 = vmul.f32 %v4424_v46, %v4420_v8  ;;  %v4384_v8 = vld [vmem:[%s4679_s6] sm:$0xff]  }
 0x996   : > { %v1984_v48 = vpack.c.bf16 %v1982_v47, %v1982_v47 }
 0x997   : > { %v4426_v49 = vpop.eup %4425 }
 0x998   : > { %4168 = vmatmul.mubr.msk.bf16.vlgmr.msra.gmra.mxu1 %vm1189_vm3, %v1984_v48  ;;  %v1983_v50 = vmul.f32 %v4426_v49, %v4422_v13  ;;  %v2230_v13 = vld [vmem:[%s5393_s0 + $0x8] sm:$0xff] }
 0x999   : > { %4181 = vmatprep.mubr.msk.bf16.mxu1 %vm4484_vm1, %v4483_v3  ;;  %4178 = vmatpush3.bf16.msra.mxu1 %v4381_v51  ;;  %v2303_v41 = vpack.c.bf16 %v2230_v13, %v2229_v11  ;;  %v3930_v51 = vld [vmem:[%s5394_s29] ss:$0 sm:$0xff]  ;;  %s5396_s29 = scalar_lea.vmem %s5326_s12, %s4646_s7 }
 0x99a   : > { %v1985_v16 = vpack.c.bf16 %v1983_v50, %v1983_v50  ;;  %4179 = vmatprep.subr.bf16.mxu1 %v4483_v3 }
 0x99c   : > { %4174 = vmatmul.mubr.msk.bf16.vlgmr.msra.gmra.mxu0 %vm1189_vm3, %v1985_v16 }
 0x99d   : > { %4189 = vmatprep.mubr.msk.bf16.mxu0 %vm4484_vm1, %v4483_v3  ;;  %4180 = vmatpush3.bf16.msra.mxu1 %v4382_v52 }
 0x99e   : > { %4193 = vmatprep.subr.bf16.mxu1 %v4483_v3  ;;  %4186 = vmatpush3.bf16.msra.mxu0 %v4385_v42 }
 0x99f   : > { %4187 = vmatprep.subr.bf16.mxu0 %v4483_v3 }
 0x9a2   : > { %4188 = vmatpush3.bf16.msra.mxu0 %v4386_v43 }
 0x9a3   : > { %4201 = vmatprep.subr.bf16.mxu0 %v4483_v3 }
 0xa58   : > { %v2028_v53 = vpop.f32.mrf.mxu1 }
 0xa5a   : > { %v4169_v54 = vpop.f32.mrf.mxu1 }
 0xa5c   : > { %v2031_v55 = vpop.f32.mrf.mxu1  ;;  %v2076_v56 = vpop.f32.mrf.mxu0 }
 0xa5d   : > { %v4359_v57 = vpack.i.bf16 %v2076_v56, %v2028_v53  ;;  %v3931_v55 = vld [vmem:[%s5395_s23] ss:$0 sm:$0xff]  ;;  %s5397_s23 = sld [smem:[#allocation18_spill]] }
 0xa5e   : > { %v4170_v58 = vpop.f32.mrf.mxu1  ;;  %v4175_v59 = vpop.f32.mrf.mxu0 }
 0xa5f   : > { %4360 = vrot.lane.b32.xlu0 %v4359_v57, %s5351_s10  ;;  %s5403_s10 = scalar_lea.vmem %s5332_s18, %s4646_s7 }
 0xa60   : > { %v2079_v60 = vpop.f32.mrf.mxu0 }
 0xa61   : > { %v3936_v60 = vld [vmem:[%s5396_s29] ss:$0 sm:$0xff] }
 0xa62   : > { %v4176_v61 = vpop.f32.mrf.mxu0 }
 0xad1   : > { %v4361_v7 = vpop.permute.xlu0 %4360 }
 0xad2   : > { %v4363_v14 = vunpack.i.h.bf16 %v4361_v7  ;;  %v4362_v15 = vunpack.i.l.bf16 %v4361_v7 }
 0xad4   : > { %v2113_v21 = vsel %vm2111_vm9, %v2110_v18, %v4363_v14  ;;  %v2112_v22 = vsel %vm2111_vm9, %v2109_v19, %v4362_v15 }
 0xad5   : > { %v2118_v23 = vpack.c.bf16 %v2113_v21, %v2112_v22 }
 0xad7   : > { %4182 = vmatmul.mubr.msk.bf16.vlgmr.msra.gmra.mxu1 %vm1139_vm2, %v2118_v23 }
 0xad8   : > { %4197 = vmatprep.mubr.msk.bf16.mxu1 %vm4484_vm1, %v4483_v3 }
 0xb97   : > { %v2175_v20 = vpop.f32.mrf.mxu1 }
 0xb98   : > { %v2176_v24 = vadd.f32 %v3926_v17, %v2175_v20 }
 0xb99   : > { %v4183_v25 = vpop.f32.mrf.mxu1 }
 0xb9a   : > { %v2182_v26 = vadd.f32 %v2176_v24, %v4750_v5 }
 0xb9b   : > { %v2178_v27 = vpop.f32.mrf.mxu1 }
 0xb9c   : > { %v2179_v28 = vadd.f32 %v3926_v17, %v2178_v27  ;;  %v2186_v29 = vsel %vm1139_vm2, %v2182_v26, 0.0 }
 0xb9d   : > { %2187 = vadd.xlane.f32.xlu1 %v2186_v29  ;;  %v4184_v30 = vpop.f32.mrf.mxu1 }
 0xb9e   : > { %v2183_v32 = vadd.f32 %v2179_v28, %v4752_v6  ;;  %v4383_v6 = vld [vmem:[%s4679_s6 + $0x8] sm:$0xff]   ;;  %s5398_s6 = scalar_lea.vmem %s5397_s23, %s4646_s7 }
 0xb9f   : > { %4194 = vmatpush3.bf16.msra.mxu1 %v4383_v6  ;;  %v3932_v14 = vld [vmem:[%s5398_s6] ss:$0 sm:$0xff]  ;;  %s5405_s6 = sld [smem:[#allocation22_spill]] }
 0xba0   : > { %v2189_v33 = vsel %vm1139_vm2, %v2183_v32, 0.0  ;;  %4195 = vmatprep.subr.bf16.mxu1 %v4483_v3 }
 0xba1   : > { %2190 = vadd.xlane.f32.xlu0 %v2189_v33 }
 0xba3   : > { %4196 = vmatpush3.bf16.msra.mxu1 %v4384_v8 }
 0xba4   : > { %4207 = vmatprep.subr.bf16.mxu1 %v4483_v3 }
 0xba6   : > { %4198 = vmatmul.mubr.msk.bf16.vlgmr.msra.gmra.mxu1 %vm1139_vm2, %v2303_v41 }
 0xba7   : > { %4209 = vmatprep.mubr.msk.bf16.mxu1 %vm4484_vm1, %v4483_v3 }
 0xc26   : > { %v2188_v31 = vpop.xlane.xlu1 %2187 }
 0xc27   : > { %v2193_v34 = vmul.f32 0.03125, %v2188_v31 }
 0xc29   : > { %v2195_v37 = vsub.f32 %v2182_v26, %v2193_v34 }
 0xc2a   : > { %v2191_v35 = vpop.xlane.xlu0 %2190 }
 0xc2b   : > { %v2194_v36 = vmul.f32 0.03125, %v2191_v35  ;;  %v2197_v38 = vmul.f32 %v2195_v37, %v2195_v37 }
 0xc2d   : > { %v2196_v5 = vsub.f32 %v2183_v32, %v2194_v36  ;;  %v2199_v39 = vsel %vm1139_vm2, %v2197_v38, 0.0 }
 0xc2e   : > { %2200 = vadd.xlane.f32.xlu0 %v2199_v39 }
 0xc2f   : > { %v2198_v40 = vmul.f32 %v2196_v5, %v2196_v5 }
 0xc31   : > { %v2202_v12 = vsel %vm1139_vm2, %v2198_v40, 0.0 }
 0xc32   : > { %2203 = vadd.xlane.f32.xlu1 %v2202_v12 }
 0xc66   : > { %v2360_v61 = vpop.f32.mrf.mxu1 }
 0xc67   : > { %v2361_v62 = vadd.f32 %v3936_v60, %v2360_v61 }
 0xc68   : > { %v4199_v63 = vpop.f32.mrf.mxu1 }
 0xc69   : > { %v5010_v0 = vpack.c.bf16 %v2361_v62, %v2361_v62 }
 0xc6a   : > { %v2363_v1 = vpop.f32.mrf.mxu1 }
 0xc6b   : > { %v2364_v2 = vadd.f32 %v3936_v60, %v2363_v1  ;;  %v2375_v4 = vsel %vm1189_vm3, %v5010_v0, 0 }
 0xc6c   : > { %v4200_v7 = vpop.f32.mrf.mxu1 }
 0xc6d   : > { %v5014_v9 = vpack.c.bf16 %v2364_v2, %v2364_v2 }
 0xc6f   : > { %v2421_v10 = vsel %vm1189_vm3, %v5014_v9, 0 }
 0xc70   : > { %4208 = vmatpush3.bf16.xpose.msra.mxu1 %v2421_v10 }
 0xc71   : > { %4219 = vmatprep.subr.bf16.mxu1 %v4483_v3 }
 0xcb7   : > { %v2201_v44 = vpop.xlane.xlu0 %2200 }
 0xcb8   : > { %v2205_v45 = vmul.f32 0.03125, %v2201_v44 }
 0xcba   : > { %v2207_v46 = vadd.f32 1e-05, %v2205_v45 }
 0xcbb   : > { %v2204_v47 = vpop.xlane.xlu1 %2203 }
 0xcbc   : > { %4427 = vrsqrt.f32 %v2207_v46  ;;  %v2206_v48 = vmul.f32 0.03125, %v2204_v47 }
 0xcbe   : > { %v2208_v49 = vadd.f32 1e-05, %v2206_v48 }
 0xcc0   : > { %4429 = vrsqrt.f32 %v2208_v49 }
 0xcc9   : > { %v4428_v50 = vpop.eup %4427 }
 0xcca   : > { %v2211_v16 = vmul.f32 %v4428_v50, %v2195_v37 }
 0xccc   : > { %v2219_v54 = vmul.f32 %v3930_v51, %v2211_v16 }
 0xccd   : > { %v4430_v52 = vpop.eup %4429 }
 0xcce   : > { %v2212_v53 = vmul.f32 %v4430_v52, %v2196_v5  ;;  %v4996_v57 = vadd.f32 %v3931_v55, %v2219_v54 }
 0xcd0   : > { %v2220_v56 = vmul.f32 %v3930_v51, %v2212_v53 }
 0xcd2   : > { %v4998_v58 = vadd.f32 %v3931_v55, %v2220_v56 }
 0xcd4   : > { %v2235_v59 = vpack.c.bf16 %v4998_v58, %v4996_v57 }
 0xcd6   : > { %4190 = vmatmul.mubr.msk.bf16.vlgmr.msra.gmra.mxu0 %vm1139_vm2, %v2235_v59 }
 0xcd7   : > { %4203 = vmatprep.mubr.msk.bf16.mxu0 %vm4484_vm1, %v4483_v3  ;;  %4202 = vmatpush3.bf16.xpose.msra.mxu0 %v2375_v4 }
 0xcd8   : > { %4213 = vmatprep.subr.bf16.mxu0 %v4483_v3 }
 0xd96   : > { %v2292_v15 = vpop.f32.mrf.mxu0 }
 0xd97   : > { %v2293_v18 = vadd.f32 %v3932_v14, %v2292_v15 }
 0xd98   : > { %v4191_v19 = vpop.f32.mrf.mxu0 }
 0xd99   : > { %v5025_v21 = vpack.c.bf16 %v2293_v18, %v2293_v18 }
 0xd9a   : > { %v2295_v22 = vpop.f32.mrf.mxu0 }
 0xd9b   : > { %v2296_v23 = vadd.f32 %v3932_v14, %v2295_v22  ;;  %4204 = vmatmul.mubr.msk.bf16.vlgmr.msra.gmra.mxu0 %vm1189_vm3, %v5025_v21 }
 0xd9c   : > { %v4192_v17 = vpop.f32.mrf.mxu0  ;;  %4215 = vmatprep.mubr.msk.bf16.mxu0 %vm4484_vm1, %v4483_v3 }
 0xd9d   : > { %v5031_v20 = vpack.c.bf16 %v2296_v23, %v2296_v23 }
 0xd9f   : > { %4210 = vmatmul.mubr.msk.bf16.vlgmr.msra.gmra.mxu1 %vm1189_vm3, %v5031_v20 }
 0xda0   : > { %4221 = vmatprep.mubr.msk.bf16.mxu1 %vm4484_vm1, %v4483_v3 }
 0xe5b   : > { %v2411_v24 = vpop.f32.mrf.mxu0 }
 0xe5c   : > { %v2463_v25 = vmul.f32 0.35355338, %v2411_v24 }
 0xe5d   : > { %v4205_v26 = vpop.f32.mrf.mxu0 }
 0xe5e   : > { %v2465_v27 = vsel %vm1189_vm3, %v2463_v25, -inf }
 0xe5f   : > { %2466 = vmax.xlane.f32.xlu0 %v2465_v27  ;;  %v2414_v28 = vpop.f32.mrf.mxu0  ;;  %v2457_v29 = vpop.f32.mrf.mxu1 }
 0xe60   : > { %v2464_v30 = vmul.f32 0.35355338, %v2457_v29 }
 0xe61   : > { %v4206_v32 = vpop.f32.mrf.mxu0  ;;  %v4211_v33 = vpop.f32.mrf.mxu1 }
 0xe62   : > { %v2468_v31 = vsel %vm1189_vm3, %v2464_v30, -inf }
 0xe63   : > { %2469 = vmax.xlane.f32.xlu1 %v2468_v31  ;;  %v2460_v34 = vpop.f32.mrf.mxu1 }
 0xe65   : > { %v4212_v37 = vpop.f32.mrf.mxu1 }
 0xe74   : > { %2539 = vrot.lane.b32.xlu1 %v5014_v9, %s4485_s13 }
 0xe75   : > { %2490 = vrot.lane.b32.xlu0 %v5010_v0, %s4485_s13  ;;  %s5399_s13 = sld [smem:[#allocation7_spill]] }
 0xee8   : > { %v2467_v35 = vpop.xlane.xlu0 %2466 }
 0xee9   : > { %v2471_v36 = vsub.f32 %v2463_v25, %v2467_v35 }
 0xeeb   : > { %v2473_v38 = vmul.f32 1.442695, %v2471_v36 }
 0xeec   : > { %v2491_v5 = vpop.permute.xlu0 %2490  ;;  %v2470_v39 = vpop.xlane.xlu1 %2469 }
 0xeed   : > { %4431 = vpow2.f32 %v2473_v38  ;;  %v2496_v40 = vsel %vm1318_vm7, %v2491_v5, 0  ;;  %v2472_v12 = vsub.f32 %v2464_v30, %v2470_v39 }
 0xeee   : > { %4214 = vmatpush3.bf16.msra.mxu0 %v2496_v40 }
 0xeef   : > { %v2475_v6 = vmul.f32 1.442695, %v2472_v12  ;;  %4225 = vmatprep.subr.bf16.mxu0 %v4483_v3 }
 0xef0   : > { %v2540_v8 = vpop.permute.xlu1 %2539 }
 0xef1   : > { %4433 = vpow2.f32 %v2475_v6  ;;  %v2545_v11 = vsel %vm1318_vm7, %v2540_v8, 0 }
 0xef2   : > { %4220 = vmatpush3.bf16.msra.mxu1 %v2545_v11 }
 0xef3   : > { %4231 = vmatprep.subr.bf16.mxu1 %v4483_v3 }
 0xefa   : > { %v4432_v13 = vpop.eup %4431 }
 0xefb   : > { %v2477_v41 = vsel %vm1189_vm3, %v4432_v13, 0.0 }
 0xefc   : > { %2478 = vadd.xlane.f32.xlu0 %v2477_v41 }
 0xefe   : > { %v4434_v42 = vpop.eup %4433 }
 0xeff   : > { %v2480_v43 = vsel %vm1189_vm3, %v4434_v42, 0.0 }
 0xf00   : > { %2481 = vadd.xlane.f32.xlu1 %v2480_v43 }
 0xf11   : > { %2590 = vrot.lane.b32.xlu1 %v5010_v0, %s4488_s3 }
 0xf12   : > { %2641 = vrot.lane.b32.xlu0 %v5014_v9, %s4488_s3 }
 0xf15   : > { %2588 = vrot.lane.b32.xlu1 %v5025_v21, %s4488_s3 }
 0xf16   : > { %2639 = vrot.lane.b32.xlu0 %v5031_v20, %s4488_s3 }
 0xf85   : > { %v2479_v44 = vpop.xlane.xlu0 %2478 }
 0xf86   : > { %4435 = vrcp.f32 %v2479_v44 }
 0xf89   : > { %v2482_v45 = vpop.xlane.xlu1 %2481  ;;  %v2642_v52 = vpop.permute.xlu0 %2641 }
 0xf8a   : > { %4437 = vrcp.f32 %v2482_v45  ;;  %v2647_v54 = vsel %vm1189_vm3, %v2642_v52, 0 }
 0xf8d   : > { %v2591_v48 = vpop.permute.xlu1 %2590  ;;  %v2640_v56 = vpop.permute.xlu0 %2639 }
 0xf8e   : > { %v2596_v16 = vsel %vm1189_vm3, %v2591_v48, 0 }
 0xf91   : > { %v2589_v55 = vpop.permute.xlu1 %2588 }
 0xf93   : > { %v4436_v46 = vpop.eup %4435 }
 0xf94   : > { %v5057_v47 = vmul.f32 %v4436_v46, %v4432_v13 }
 0xf96   : > { %v2487_v49 = vpack.c.bf16 %v5057_v47, %v5057_v47 }
 0xf97   : > { %v4438_v50 = vpop.eup %4437 }
 0xf98   : > { %4216 = vmatmul.mubr.msk.bf16.vlgmr.msra.gmra.mxu0 %vm1189_vm3, %v2487_v49  ;;  %v5063_v51 = vmul.f32 %v4438_v50, %v4434_v42 }
 0xf99   : > { %4226 = vmatpush3.bf16.xpose.msra.mxu0 %v2596_v16  ;;  %4227 = vmatprep.mubr.msk.bf16.mxu0 %vm4484_vm1, %v4483_v3 }
 0xf9a   : > { %v2488_v53 = vpack.c.bf16 %v5063_v51, %v5063_v51  ;;  %4237 = vmatprep.subr.bf16.mxu0 %v4483_v3 }
 0xf9c   : > { %4222 = vmatmul.mubr.msk.bf16.vlgmr.msra.gmra.mxu1 %vm1189_vm3, %v2488_v53 }
 0xf9d   : > { %4232 = vmatpush3.bf16.xpose.msra.mxu1 %v2647_v54  ;;  %4233 = vmatprep.mubr.msk.bf16.mxu1 %vm4484_vm1, %v4483_v3 }
 0xf9e   : > { %4243 = vmatprep.subr.bf16.mxu1 %v4483_v3 }
 0xfa0   : > { %4228 = vmatmul.mubr.msk.bf16.vlgmr.msra.gmra.mxu0 %vm1189_vm3, %v2589_v55 }
 0xfa1   : > { %4239 = vmatprep.mubr.msk.bf16.mxu0 %vm4484_vm1, %v4483_v3 }
 0xfa4   : > { %4234 = vmatmul.mubr.msk.bf16.vlgmr.msra.gmra.mxu1 %vm1189_vm3, %v2640_v56 }
 0xfa5   : > { %4245 = vmatprep.mubr.msk.bf16.mxu1 %vm4484_vm1, %v4483_v3 }
0x1058   : > { %v5081_v59 = vpop.f32.mrf.mxu0 }
0x105a   : > { %v4217_v60 = vpop.f32.mrf.mxu0 }
0x105c   : > { %v2535_v61 = vpop.f32.mrf.mxu0  ;;  %v5083_v62 = vpop.f32.mrf.mxu1 }
0x105e   : > { %v4218_v63 = vpop.f32.mrf.mxu0  ;;  %v4223_v1 = vpop.f32.mrf.mxu1 }
0x1060   : > { %v2584_v2 = vpop.f32.mrf.mxu1  ;;  %v2632_v4 = vpop.f32.mrf.mxu0 }
0x1061   : > { %v2689_v7 = vmul.f32 0.35355338, %v2632_v4 }
0x1062   : > { %v4224_v10 = vpop.f32.mrf.mxu1  ;;  %v4229_v14 = vpop.f32.mrf.mxu0 }
0x1063   : > { %v2691_v15 = vsel %vm1189_vm3, %v2689_v7, -inf }
0x1064   : > { %2692 = vmax.xlane.f32.xlu1 %v2691_v15  ;;  %v2635_v18 = vpop.f32.mrf.mxu0  ;;  %v2683_v19 = vpop.f32.mrf.mxu1 }
0x1065   : > { %v2690_v22 = vmul.f32 0.35355338, %v2683_v19 }
0x1066   : > { %v4230_v23 = vpop.f32.mrf.mxu0  ;;  %v4235_v17 = vpop.f32.mrf.mxu1 }
0x1067   : > { %v2694_v24 = vsel %vm1189_vm3, %v2690_v22, -inf }
0x1068   : > { %2695 = vmax.xlane.f32.xlu0 %v2694_v24  ;;  %v2686_v25 = vpop.f32.mrf.mxu1 }
0x106a   : > { %v4236_v26 = vpop.f32.mrf.mxu1 }
0x1075   : > { %2765 = vrot.lane.b32.xlu1 %v5014_v9, %s4487_s1 }
0x107e   : > { %2717 = vrot.lane.b32.xlu0 %v5010_v0, %s4487_s1  ;;  %s5400_s1 = smov 24  }
0x10ed   : > { %v2693_v27 = vpop.xlane.xlu1 %2692 }
0x10ee   : > { %v2697_v28 = vsub.f32 %v2689_v7, %v2693_v27 }
0x10f0   : > { %v2699_v29 = vmul.f32 1.442695, %v2697_v28 }
0x10f1   : > { %v2766_v30 = vpop.permute.xlu1 %2765  ;;  %v2696_v32 = vpop.xlane.xlu0 %2695 }
0x10f2   : > { %4439 = vpow2.f32 %v2699_v29  ;;  %v2771_v33 = vsel %vm1318_vm7, %v2766_v30, 0  ;;  %v2698_v31 = vsub.f32 %v2690_v22, %v2696_v32 }
0x10f3   : > { %4244 = vmatpush3.bf16.msra.mxu1 %v2771_v33 }
0x10f4   : > { %v2701_v34 = vmul.f32 1.442695, %v2698_v31  ;;  %4255 = vmatprep.subr.bf16.mxu1 %v4483_v3 }
0x10f5   : > { %v2718_v37 = vpop.permute.xlu0 %2717 }
0x10f6   : > { %4441 = vpow2.f32 %v2701_v34  ;;  %v2723_v35 = vsel %vm1318_vm7, %v2718_v37, 0 }
0x10f7   : > { %4238 = vmatpush3.bf16.msra.mxu0 %v2723_v35 }
0x10f8   : > { %4249 = vmatprep.subr.bf16.mxu0 %v4483_v3 }
0x10ff   : > { %v4440_v36 = vpop.eup %4439 }
0x1100   : > { %v2703_v38 = vsel %vm1189_vm3, %v4440_v36, 0.0 }
0x1101   : > { %2704 = vadd.xlane.f32.xlu0 %v2703_v38 }
0x1103   : > { %v4442_v5 = vpop.eup %4441 }
0x1104   : > { %v2706_v39 = vsel %vm1189_vm3, %v4442_v5, 0.0 }
0x1105   : > { %2707 = vadd.xlane.f32.xlu1 %v2706_v39 }
0x1116   : > { %2815 = vrot.lane.b32.xlu1 %v5010_v0, %s4491_s26 }
0x1117   : > { %2865 = vrot.lane.b32.xlu0 %v5014_v9, %s4491_s26 }
0x111a   : > { %2813 = vrot.lane.b32.xlu1 %v5025_v21, %s4491_s26 }
0x111b   : > { %2863 = vrot.lane.b32.xlu0 %v5031_v20, %s4491_s26  ;;  %s5401_s26 = scalar_lea.vmem %s5328_s14, %s4646_s7 }
0x118a   : > { %v2705_v40 = vpop.xlane.xlu0 %2704 }
0x118b   : > { %4443 = vrcp.f32 %v2705_v40 }
0x118e   : > { %v2708_v12 = vpop.xlane.xlu1 %2707  ;;  %v2866_v44 = vpop.permute.xlu0 %2865 }
0x118f   : > { %4445 = vrcp.f32 %v2708_v12  ;;  %v2871_v46 = vsel %vm1189_vm3, %v2866_v44, 0 }
0x1192   : > { %v2816_v11 = vpop.permute.xlu1 %2815  ;;  %v2864_v49 = vpop.permute.xlu0 %2863 }
0x1193   : > { %v2821_v42 = vsel %vm1189_vm3, %v2816_v11, 0 }
0x1196   : > { %v2814_v48 = vpop.permute.xlu1 %2813 }
0x1198   : > { %v4444_v6 = vpop.eup %4443 }
0x1199   : > { %v5105_v8 = vmul.f32 %v4444_v6, %v4440_v36 }
0x119b   : > { %v2715_v13 = vpack.c.bf16 %v5105_v8, %v5105_v8  ;;  %v2713_v39 = vadd.f32 %v5105_v8, %v5057_v47 }
0x119c   : > { %v4446_v41 = vpop.eup %4445 }
0x119d   : > { %4240 = vmatmul.mubr.msk.bf16.vlgmr.msra.gmra.mxu0 %vm1189_vm3, %v2715_v13  ;;  %v5111_v43 = vmul.f32 %v4446_v41, %v4442_v5 }
0x119e   : > { %4250 = vmatpush3.bf16.xpose.msra.mxu0 %v2821_v42  ;;  %4251 = vmatprep.mubr.msk.bf16.mxu0 %vm4484_vm1, %v4483_v3 }
0x119f   : > { %v2716_v45 = vpack.c.bf16 %v5111_v43, %v5111_v43  ;;  %4261 = vmatprep.subr.bf16.mxu0 %v4483_v3 }
0x11a1   : > { %4246 = vmatmul.mubr.msk.bf16.vlgmr.msra.gmra.mxu1 %vm1189_vm3, %v2716_v45 }
0x11a2   : > { %4256 = vmatpush3.bf16.xpose.msra.mxu1 %v2871_v46  ;;  %4257 = vmatprep.mubr.msk.bf16.mxu1 %vm4484_vm1, %v4483_v3 }
0x11a3   : > { %4267 = vmatprep.subr.bf16.mxu1 %v4483_v3 }
0x11a5   : > { %4252 = vmatmul.mubr.msk.bf16.vlgmr.msra.gmra.mxu0 %vm1189_vm3, %v2814_v48 }
0x11a6   : > { %4263 = vmatprep.mubr.msk.bf16.mxu0 %vm4484_vm1, %v4483_v3 }
0x11a9   : > { %4258 = vmatmul.mubr.msk.bf16.vlgmr.msra.gmra.mxu1 %vm1189_vm3, %v2864_v49 }
0x11aa   : > { %4269 = vmatprep.mubr.msk.bf16.mxu1 %vm4484_vm1, %v4483_v3 }
0x125d   : > { %v5129_v50 = vpop.f32.mrf.mxu0 }
0x125f   : > { %v4241_v16 = vpop.f32.mrf.mxu0 }
0x1261   : > { %v2762_v52 = vpop.f32.mrf.mxu0  ;;  %v5131_v53 = vpop.f32.mrf.mxu1 }
0x1262   : > { %v4364_v54 = vpack.i.bf16 %v5131_v53, %v5129_v50 }
0x1263   : > { %v4242_v55 = vpop.f32.mrf.mxu0  ;;  %v4247_v56 = vpop.f32.mrf.mxu1 }
0x1265   : > { %v2810_v60 = vpop.f32.mrf.mxu1  ;;  %v2857_v61 = vpop.f32.mrf.mxu0 }
0x1266   : > { %v2913_v63 = vmul.f32 0.35355338, %v2857_v61 }
0x1267   : > { %v4248_v1 = vpop.f32.mrf.mxu1  ;;  %v4253_v2 = vpop.f32.mrf.mxu0 }
0x1268   : > { %v2915_v4 = vsel %vm1189_vm3, %v2913_v63, -inf }
0x1269   : > { %2916 = vmax.xlane.f32.xlu1 %v2915_v4  ;;  %v2860_v7 = vpop.f32.mrf.mxu0  ;;  %v2907_v10 = vpop.f32.mrf.mxu1 }
0x126a   : > { %v2914_v14 = vmul.f32 0.35355338, %v2907_v10 }
0x126b   : > { %v4254_v15 = vpop.f32.mrf.mxu0  ;;  %v4259_v18 = vpop.f32.mrf.mxu1 }
0x126c   : > { %v2918_v19 = vsel %vm1189_vm3, %v2914_v14, -inf }
0x126d   : > { %2919 = vmax.xlane.f32.xlu0 %v2918_v19  ;;  %v2910_v22 = vpop.f32.mrf.mxu1 }
0x126f   : > { %v4260_v23 = vpop.f32.mrf.mxu1 }
0x127a   : > { %2989 = vrot.lane.b32.xlu1 %v5014_v9, %s4490_s25 }
0x1283   : > { %2941 = vrot.lane.b32.xlu0 %v5010_v0, %s4490_s25  ;;  %s5407_s25 = scalar_lea.vmem %s5333_s19, %s4646_s7 }
0x12f2   : > { %v2917_v17 = vpop.xlane.xlu1 %2916 }
0x12f3   : > { %v2921_v24 = vsub.f32 %v2913_v63, %v2917_v17 }
0x12f5   : > { %v2923_v25 = vmul.f32 1.442695, %v2921_v24 }
0x12f6   : > { %v2990_v26 = vpop.permute.xlu1 %2989  ;;  %v2920_v27 = vpop.xlane.xlu0 %2919 }
0x12f7   : > { %4447 = vpow2.f32 %v2923_v25  ;;  %v2995_v28 = vsel %vm1318_vm7, %v2990_v26, 0  ;;  %v2922_v29 = vsub.f32 %v2914_v14, %v2920_v27 }
0x12f8   : > { %4268 = vmatpush3.bf16.msra.mxu1 %v2995_v28 }
0x12f9   : > { %v2925_v30 = vmul.f32 1.442695, %v2922_v29  ;;  %4279 = vmatprep.subr.bf16.mxu1 %v4483_v3 }
0x12fa   : > { %v2942_v32 = vpop.permute.xlu0 %2941 }
0x12fb   : > { %4449 = vpow2.f32 %v2925_v30  ;;  %v2947_v33 = vsel %vm1318_vm7, %v2942_v32, 0 }
0x12fc   : > { %4262 = vmatpush3.bf16.msra.mxu0 %v2947_v33 }
0x12fd   : > { %4273 = vmatprep.subr.bf16.mxu0 %v4483_v3 }
0x1304   : > { %v4448_v31 = vpop.eup %4447 }
0x1305   : > { %v2927_v34 = vsel %vm1189_vm3, %v4448_v31, 0.0 }
0x1306   : > { %2928 = vadd.xlane.f32.xlu0 %v2927_v34 }
0x1308   : > { %v4450_v37 = vpop.eup %4449 }
0x1309   : > { %v2930_v35 = vsel %vm1189_vm3, %v4450_v37, 0.0 }
0x130a   : > { %2931 = vadd.xlane.f32.xlu1 %v2930_v35 }
0x131b   : > { %3039 = vrot.lane.b32.xlu1 %v5010_v0, %s4494_s28 }
0x131c   : > { %3089 = vrot.lane.b32.xlu0 %v5014_v9, %s4494_s28 }
0x131f   : > { %3037 = vrot.lane.b32.xlu1 %v5025_v21, %s4494_s28  ;;  %v2714_v21 = vadd.f32 %v5111_v43, %v5063_v51 }
0x1320   : > { %3087 = vrot.lane.b32.xlu0 %v5031_v20, %s4494_s28  ;;  %s5402_s28 = scalar_lea.vmem %s5331_s17, %s4646_s7 }
0x138f   : > { %v2929_v36 = vpop.xlane.xlu0 %2928 }
0x1390   : > { %4451 = vrcp.f32 %v2929_v36 }
0x1393   : > { %v2932_v38 = vpop.xlane.xlu1 %2931  ;;  %v3090_v42 = vpop.permute.xlu0 %3089 }
0x1394   : > { %4453 = vrcp.f32 %v2932_v38  ;;  %v3095_v44 = vsel %vm1189_vm3, %v3090_v42, 0 }
0x1397   : > { %v3040_v12 = vpop.permute.xlu1 %3039  ;;  %v3088_v43 = vpop.permute.xlu0 %3087 }
0x1398   : > { %v3045_v41 = vsel %vm1189_vm3, %v3040_v12, 0 }
0x139b   : > { %v3038_v51 = vpop.permute.xlu1 %3037 }
0x139d   : > { %v4452_v5 = vpop.eup %4451 }
0x139e   : > { %v2935_v40 = vmul.f32 %v4452_v5, %v4448_v31 }
0x13a0   : > { %v5157_v6 = vadd.f32 %v2935_v40, %v2713_v39  ;;  %v2939_v11 = vpack.c.bf16 %v2935_v40, %v2935_v40 }
0x13a1   : > { %v4454_v13 = vpop.eup %4453 }
0x13a2   : > { %4264 = vmatmul.mubr.msk.bf16.vlgmr.msra.gmra.mxu0 %vm1189_vm3, %v2939_v11  ;;  %v2936_v20 = vmul.f32 %v4454_v13, %v4450_v37  ;;  %v4388_v11 = vld [vmem:[%s5399_s13] sm:$0xff]  }
0x13a3   : > { %4274 = vmatpush3.bf16.xpose.msra.mxu0 %v3045_v41  ;;  %4275 = vmatprep.mubr.msk.bf16.mxu0 %vm4484_vm1, %v4483_v3 }
0x13a4   : > { %v5165_v47 = vadd.f32 %v2936_v20, %v2714_v21  ;;  %v2940_v8 = vpack.c.bf16 %v2936_v20, %v2936_v20  ;;  %4285 = vmatprep.subr.bf16.mxu0 %v4483_v3 }
0x13a6   : > { %4270 = vmatmul.mubr.msk.bf16.vlgmr.msra.gmra.mxu1 %vm1189_vm3, %v2940_v8 }
0x13a7   : > { %4280 = vmatpush3.bf16.xpose.msra.mxu1 %v3095_v44  ;;  %4281 = vmatprep.mubr.msk.bf16.mxu1 %vm4484_vm1, %v4483_v3 }
0x13a8   : > { %4291 = vmatprep.subr.bf16.mxu1 %v4483_v3 }
0x13aa   : > { %4276 = vmatmul.mubr.msk.bf16.vlgmr.msra.gmra.mxu0 %vm1189_vm3, %v3038_v51 }
0x13ab   : > { %4287 = vmatprep.mubr.msk.bf16.mxu0 %vm4484_vm1, %v4483_v3 }
0x13ae   : > { %4282 = vmatmul.mubr.msk.bf16.vlgmr.msra.gmra.mxu1 %vm1189_vm3, %v3088_v43 }
0x13af   : > { %4293 = vmatprep.mubr.msk.bf16.mxu1 %vm4484_vm1, %v4483_v3 }
0x1462   : > { %v2983_v45 = vpop.f32.mrf.mxu0 }
0x1464   : > { %v4265_v46 = vpop.f32.mrf.mxu0 }
0x1466   : > { %v2986_v48 = vpop.f32.mrf.mxu0  ;;  %v3031_v49 = vpop.f32.mrf.mxu1 }
0x1467   : > { %v4369_v16 = vpack.i.bf16 %v3031_v49, %v2983_v45 }
0x1468   : > { %v4266_v52 = vpop.f32.mrf.mxu0  ;;  %v4271_v55 = vpop.f32.mrf.mxu1 }
0x146a   : > { %v3034_v56 = vpop.f32.mrf.mxu1  ;;  %v3081_v60 = vpop.f32.mrf.mxu0 }
0x146b   : > { %v3137_v61 = vmul.f32 0.35355338, %v3081_v60 }
0x146c   : > { %v4272_v63 = vpop.f32.mrf.mxu1  ;;  %v4277_v1 = vpop.f32.mrf.mxu0 }
0x146d   : > { %v3139_v2 = vsel %vm1189_vm3, %v3137_v61, -inf }
0x146e   : > { %3140 = vmax.xlane.f32.xlu1 %v3139_v2  ;;  %v3084_v4 = vpop.f32.mrf.mxu0  ;;  %v3131_v7 = vpop.f32.mrf.mxu1 }
0x146f   : > { %v3138_v10 = vmul.f32 0.35355338, %v3131_v7 }
0x1470   : > { %v4278_v14 = vpop.f32.mrf.mxu0  ;;  %v4283_v15 = vpop.f32.mrf.mxu1 }
0x1471   : > { %v3142_v18 = vsel %vm1189_vm3, %v3138_v10, -inf }
0x1472   : > { %3143 = vmax.xlane.f32.xlu0 %v3142_v18  ;;  %v3134_v19 = vpop.f32.mrf.mxu1 }
0x1474   : > { %v4284_v22 = vpop.f32.mrf.mxu1 }
0x14f7   : > { %v3141_v23 = vpop.xlane.xlu1 %3140 }
0x14f8   : > { %v3145_v17 = vsub.f32 %v3137_v61, %v3141_v23 }
0x14fa   : > { %v3147_v24 = vmul.f32 1.442695, %v3145_v17 }
0x14fb   : > { %v3144_v25 = vpop.xlane.xlu0 %3143 }
0x14fc   : > { %4455 = vpow2.f32 %v3147_v24  ;;  %v3146_v26 = vsub.f32 %v3138_v10, %v3144_v25 }
0x14fe   : > { %v3149_v27 = vmul.f32 1.442695, %v3146_v26 }
0x1500   : > { %4457 = vpow2.f32 %v3149_v27 }
0x1509   : > { %v4456_v28 = vpop.eup %4455 }
0x150a   : > { %v3151_v29 = vsel %vm1189_vm3, %v4456_v28, 0.0 }
0x150b   : > { %3152 = vadd.xlane.f32.xlu0 %v3151_v29 }
0x150d   : > { %v4458_v30 = vpop.eup %4457 }
0x150e   : > { %v3154_v32 = vsel %vm1189_vm3, %v4458_v30, 0.0 }
0x150f   : > { %3155 = vadd.xlane.f32.xlu1 %v3154_v32 }
0x1520   : > { %3213 = vrot.lane.b32.xlu1 %v5014_v9, %s4493_s4 }
0x1521   : > { %3165 = vrot.lane.b32.xlu0 %v5010_v0, %s4493_s4  ;;  %s5408_s4 = scalar_lea.vmem %s5334_s20, %s4646_s7 }
0x1524   : > { %4365 = vrot.lane.b32.xlu1 %v4364_v54, %s4496_s11 }
0x1525   : > { %4370 = vrot.lane.b32.xlu0 %v4369_v16, %s4497_s8 }
0x1594   : > { %v3153_v33 = vpop.xlane.xlu0 %3152 }
0x1595   : > { %4459 = vrcp.f32 %v3153_v33 }
0x1598   : > { %v3156_v31 = vpop.xlane.xlu1 %3155  ;;  %v3166_v34 = vpop.permute.xlu0 %3165 }
0x1599   : > { %4461 = vrcp.f32 %v3156_v31  ;;  %v3171_v37 = vsel %vm1318_vm7, %v3166_v34, 0  ;;  %v4390_v34 = vld [vmem:[%s4721_s5] sm:$0xff]  }
0x159a   : > { %4286 = vmatpush3.bf16.msra.mxu0 %v3171_v37  ;;  %v4391_v37 = vld [vmem:[%s4731_s24 + $0x18] sm:$0xff]  }
0x159b   : > { %4297 = vmatprep.subr.bf16.mxu0 %v4483_v3 }
0x159c   : > { %v3214_v9 = vpop.permute.xlu1 %3213  ;;  %v4371_v48 = vpop.permute.xlu0 %4370 }
0x159d   : > { %v3219_v0 = vsel %vm1318_vm7, %v3214_v9, 0  ;;  %v4373_v52 = vunpack.i.h.bf16 %v4371_v48  ;;  %v4372_v55 = vunpack.i.l.bf16 %v4371_v48 }
0x159e   : > { %4292 = vmatpush3.bf16.msra.mxu1 %v3219_v0 }
0x159f   : > { %4305 = vmatprep.subr.bf16.mxu1 %v4483_v3 }
0x15a0   : > { %v4366_v43 = vpop.permute.xlu1 %4365 }
0x15a1   : > { %v4368_v45 = vunpack.i.h.bf16 %v4366_v43  ;;  %v4367_v46 = vunpack.i.l.bf16 %v4366_v43 }
0x15a2   : > { %v4460_v50 = vpop.eup %4459 }
0x15a3   : > { %v3159_v53 = vmul.f32 %v4460_v50, %v4456_v28  ;;  %v3286_v49 = vsel %vm1189_vm3, %v5083_v62, %v4368_v45  ;;  %v3285_v16 = vsel %vm1189_vm3, %v5081_v59, %v4367_v46  ;;  %v3956_v59 = vld [vmem:[%s5401_s26] ss:$0 sm:$0xff] }
0x15a4   : > { %v3287_v63 = vsel %vm2108_vm8, %v3285_v16, %v4372_v55  ;;  %v3288_v1 = vsel %vm2108_vm8, %v3286_v49, %v4373_v52 }
0x15a5   : > { %v3161_v54 = vadd.f32 %v3159_v53, %v5157_v6  ;;  %v3163_v35 = vpack.c.bf16 %v3159_v53, %v3159_v53  ;;  %v4387_v6 = vld [vmem:[%s5399_s13 + $0x8] sm:$0xff]   ;;  %s5406_s13 = scalar_lea.vmem %s5405_s6, %s4646_s7 }
0x15a6   : > { %v4462_v36 = vpop.eup %4461 }
0x15a7   : > { %4288 = vmatmul.mubr.msk.bf16.vlgmr.msra.gmra.mxu0 %vm1189_vm3, %v3163_v35  ;;  %v5198_v38 = vmul.f32 0.25, %v3161_v54  ;;  %v3160_v5 = vmul.f32 %v4462_v36, %v4458_v30 }
0x15a8   : > { %4301 = vmatprep.mubr.msk.bf16.mxu0 %vm4484_vm1, %v4483_v3  ;;  %4298 = vmatpush3.bf16.msra.mxu0 %v4387_v6 }
0x15a9   : > { %v3162_v39 = vadd.f32 %v3160_v5, %v5165_v47  ;;  %v3164_v40 = vpack.c.bf16 %v3160_v5, %v3160_v5  ;;  %4299 = vmatprep.subr.bf16.mxu0 %v4483_v3 }
0x15ab   : > { %4294 = vmatmul.mubr.msk.bf16.vlgmr.msra.gmra.mxu1 %vm1189_vm3, %v3164_v40  ;;  %v5204_v12 = vmul.f32 0.25, %v3162_v39  ;;  %v3960_v39 = vld [vmem:[%s5402_s28] ss:$0 sm:$0xff]  ;;  %s5409_s28 = sld [smem:[#allocation4_spill]] }
0x15ac   : > { %4309 = vmatprep.mubr.msk.bf16.mxu1 %vm4484_vm1, %v4483_v3  ;;  %4300 = vmatpush3.bf16.msra.mxu0 %v4388_v11 }
0x15ad   : > { %4313 = vmatprep.subr.bf16.mxu0 %v4483_v3 }
0x15b1   : > { %p3974_p5 = scmp.ne.s32.totalorder %s5409_s28, 1 }
0x15b2   : > { %s5410_s8 = sld [smem:[#allocation24_spill]] (!%p3974_p5) }
0x15b3   : > { %s5411_s23 = sld [smem:[#allocation11_spill]] (!%p3974_p5) }
0x1667   : > { %v3207_v13 = vpop.f32.mrf.mxu0 }
0x1669   : > { %v4289_v21 = vpop.f32.mrf.mxu0 }
0x166b   : > { %v3210_v41 = vpop.f32.mrf.mxu0  ;;  %v3255_v20 = vpop.f32.mrf.mxu1 }
0x166c   : > { %v4374_v42 = vpack.i.bf16 %v3255_v20, %v3207_v13  ;;  %v3961_v13 = vld [vmem:[%s5403_s10] ss:$0 sm:$0xff] }
0x166d   : > { %v4290_v47 = vpop.f32.mrf.mxu0  ;;  %v4295_v8 = vpop.f32.mrf.mxu1 }
0x166e   : > { %4375 = vrot.lane.b32.xlu1 %v4374_v42, %s5400_s1  ;;  %v4392_v47 = vld [vmem:[%s4731_s24 + $0x10] sm:$0xff]   ;;  %v4393_v8 = vld [vmem:[%s4731_s24 + $0x8] sm:$0xff]  }
0x166f   : > { %v3258_v44 = vpop.f32.mrf.mxu1 }
0x1670   : > { %v4394_v44 = vld [vmem:[%s4731_s24] sm:$0xff]  }
0x1671   : > { %v4296_v51 = vpop.f32.mrf.mxu1 }
0x1672   : > { %v3962_v51 = vld [vmem:[%s5404_s27] ss:$0 sm:$0xff] }
0x16e0   : > { %v4376_v56 = vpop.permute.xlu1 %4375 }
0x16e1   : > { %v4378_v60 = vunpack.i.h.bf16 %v4376_v56  ;;  %v4377_v61 = vunpack.i.l.bf16 %v4376_v56 }
0x16e3   : > { %v3290_v2 = vsel %vm2111_vm9, %v3288_v1, %v4378_v60  ;;  %v3289_v4 = vsel %vm2111_vm9, %v3287_v63, %v4377_v61  ;;  %v3971_v60 = vld [vmem:[%s5406_s13] ss:$0 sm:$0xff]  ;;  %s5412_s13 = sld [smem:[#allocation12_spill]] (!%p3974_p5) }
0x16e4   : > { %v3297_v7 = vpack.c.bf16 %v3290_v2, %v3289_v4 }
0x16e6   : > { %4302 = vmatmul.mubr.msk.bf16.vlgmr.msra.gmra.mxu0 %vm1139_vm2, %v3297_v7 }
0x16e7   : > { %4321 = vmatprep.mubr.msk.bf16.mxu0 %vm4484_vm1, %v4483_v3  ;;  %4314 = vmatpush3.bf16.msra.mxu0 %v4391_v37 }
0x16e8   : > { %4315 = vmatprep.subr.bf16.mxu0 %v4483_v3 }
0x16eb   : > { %4316 = vmatpush3.bf16.msra.mxu0 %v4392_v47 }
0x16ec   : > { %4317 = vmatprep.subr.bf16.mxu0 %v4483_v3 }
0x16ef   : > { %4318 = vmatpush3.bf16.msra.mxu0 %v4393_v8 }
0x16f0   : > { %4319 = vmatprep.subr.bf16.mxu0 %v4483_v3 }
0x16f3   : > { %4320 = vmatpush3.bf16.msra.mxu0 %v4394_v44 }
0x17a6   : > { %v3354_v62 = vpop.f32.mrf.mxu0 }
0x17a7   : > { %v3355_v10 = vadd.f32 %v3956_v59, %v3354_v62 }
0x17a8   : > { %v4303_v14 = vpop.f32.mrf.mxu0 }
0x17a9   : > { %v3361_v15 = vadd.f32 %v3355_v10, %v4996_v57 }
0x17aa   : > { %v3357_v18 = vpop.f32.mrf.mxu0 }
0x17ab   : > { %v3358_v19 = vadd.f32 %v3956_v59, %v3357_v18  ;;  %v3365_v22 = vsel %vm1139_vm2, %v3361_v15, 0.0 }
0x17ac   : > { %3366 = vadd.xlane.f32.xlu0 %v3365_v22  ;;  %v4304_v23 = vpop.f32.mrf.mxu0 }
0x17ad   : > { %v3362_v17 = vadd.f32 %v3358_v19, %v4998_v58  ;;  %v4389_v58 = vld [vmem:[%s4721_s5 + $0x8] sm:$0xff]  }
0x17ae   : > { %4306 = vmatpush3.bf16.msra.mxu1 %v4389_v58 }
0x17af   : > { %v3368_v24 = vsel %vm1139_vm2, %v3362_v17, 0.0  ;;  %4307 = vmatprep.subr.bf16.mxu1 %v4483_v3 }
0x17b0   : > { %3369 = vadd.xlane.f32.xlu1 %v3368_v24 }
0x17b2   : > { %4308 = vmatpush3.bf16.msra.mxu1 %v4390_v34  ;;  %v3973_v34 = vld [vmem:[%s5408_s4] ss:$0 sm:$0xff] }
0x1835   : > { %v3367_v25 = vpop.xlane.xlu0 %3366 }
0x1836   : > { %v3371_v26 = vmul.f32 0.03125, %v3367_v25 }
0x1838   : > { %v3373_v27 = vsub.f32 %v3361_v15, %v3371_v26 }
0x1839   : > { %v3370_v28 = vpop.xlane.xlu1 %3369 }
0x183a   : > { %v3372_v29 = vmul.f32 0.03125, %v3370_v28  ;;  %v3375_v57 = vmul.f32 %v3373_v27, %v3373_v27 }
0x183c   : > { %v3374_v30 = vsub.f32 %v3362_v17, %v3372_v29  ;;  %v3377_v32 = vsel %vm1139_vm2, %v3375_v57, 0.0 }
0x183d   : > { %3378 = vadd.xlane.f32.xlu0 %v3377_v32 }
0x183e   : > { %v3376_v33 = vmul.f32 %v3374_v30, %v3374_v30 }
0x1840   : > { %v3380_v31 = vsel %vm1139_vm2, %v3376_v33, 0.0 }
0x1841   : > { %3381 = vadd.xlane.f32.xlu0 %v3380_v31  ;;  %v3972_v31 = vld [vmem:[%s5407_s25] ss:$0 sm:$0xff]  ;;  %s5413_s25 = sld [smem:[#allocation23_spill]] (!%p3974_p5) }
0x18c6   : > { %v3379_v9 = vpop.xlane.xlu0 %3378 }
0x18c7   : > { %v3383_v0 = vmul.f32 0.03125, %v3379_v9 }
0x18c9   : > { %v3385_v50 = vadd.f32 1e-05, %v3383_v0 }
0x18ca   : > { %v3382_v53 = vpop.xlane.xlu0 %3381 }
0x18cb   : > { %4463 = vrsqrt.f32 %v3385_v50  ;;  %v3384_v54 = vmul.f32 0.03125, %v3382_v53 }
0x18cd   : > { %v3386_v35 = vadd.f32 1e-05, %v3384_v54 }
0x18cf   : > { %4465 = vrsqrt.f32 %v3386_v35 }
0x18d8   : > { %v4464_v36 = vpop.eup %4463 }
0x18d9   : > { %v3389_v5 = vmul.f32 %v4464_v36, %v3373_v27 }
0x18db   : > { %v3397_v11 = vmul.f32 %v3960_v39, %v3389_v5 }
0x18dc   : > { %v4466_v40 = vpop.eup %4465 }
0x18dd   : > { %v3390_v6 = vmul.f32 %v4466_v40, %v3374_v30  ;;  %v3405_v41 = vadd.f32 %v3961_v13, %v3397_v11 }
0x18df   : > { %v3398_v21 = vmul.f32 %v3960_v39, %v3390_v6 }
0x18e1   : > { %v3406_v20 = vadd.f32 %v3961_v13, %v3398_v21 }
0x18e3   : > { %v3411_v42 = vpack.c.bf16 %v3406_v20, %v3405_v41 }
0x18e5   : > { %4310 = vmatmul.mubr.msk.bf16.vlgmr.msra.gmra.mxu1 %vm1139_vm2, %v3411_v42 }
0x19a5   : > { %v3468_v43 = vpop.f32.mrf.mxu1 }
0x19a6   : > { %v3469_v46 = vadd.f32 %v3962_v51, %v3468_v43 }
0x19a7   : > { %v4311_v45 = vpop.f32.mrf.mxu1 }
0x19a8   : > { %v3475_v52 = vmax.f32 %v3469_v46, 0.0 }
0x19a9   : > { %v3471_v48 = vpop.f32.mrf.mxu1 }
0x19aa   : > { %v3472_v49 = vadd.f32 %v3962_v51, %v3471_v48 }
0x19ab   : > { %v4312_v16 = vpop.f32.mrf.mxu1 }
0x19ac   : > { %v3476_v55 = vmax.f32 %v3472_v49, 0.0 }
0x19ae   : > { %v3485_v56 = vpack.c.bf16 %v3476_v55, %v3475_v52 }
0x19b0   : > { %4322 = vmatmul.mubr.msk.bf16.vlgmr.msra.gmra.mxu0 %vm3510_vm10, %v3485_v56 }
0x1a70   : > { %v3548_v3 = vpop.f32.mrf.mxu0 }
0x1a71   : > { %v3555_v61 = vadd.f32 %v3548_v3, %v3405_v41 }
0x1a72   : > { %v4323_v63 = vpop.f32.mrf.mxu0 }
0x1a73   : > { %v3564_v1 = vadd.f32 %v3971_v60, %v3555_v61 }
0x1a74   : > { %v3551_v2 = vpop.f32.mrf.mxu0 }
0x1a75   : > { %v3556_v4 = vadd.f32 %v3551_v2, %v3406_v20  ;;  %v3568_v7 = vsel %vm1139_vm2, %v3564_v1, 0.0 }
0x1a76   : > { %3569 = vadd.xlane.f32.xlu1 %v3568_v7  ;;  %v4324_v59 = vpop.f32.mrf.mxu0 }
0x1a77   : > { %v3565_v62 = vadd.f32 %v3971_v60, %v3556_v4 }
0x1a79   : > { %v3571_v10 = vsel %vm1139_vm2, %v3565_v62, 0.0 }
0x1a7a   : > { %3572 = vadd.xlane.f32.xlu0 %v3571_v10 }
0x1aff   : > { %v3570_v14 = vpop.xlane.xlu1 %3569 }
0x1b00   : > { %v3574_v15 = vmul.f32 0.03125, %v3570_v14 }
0x1b02   : > { %v3576_v18 = vsub.f32 %v3564_v1, %v3574_v15 }
0x1b03   : > { %v3573_v19 = vpop.xlane.xlu0 %3572 }
0x1b04   : > { %v3575_v22 = vmul.f32 0.03125, %v3573_v19  ;;  %v3578_v23 = vmul.f32 %v3576_v18, %v3576_v18 }
0x1b06   : > { %v3577_v17 = vsub.f32 %v3565_v62, %v3575_v22  ;;  %v3580_v24 = vsel %vm1139_vm2, %v3578_v23, 0.0 }
0x1b07   : > { %3581 = vadd.xlane.f32.xlu1 %v3580_v24 }
0x1b08   : > { %v3579_v25 = vmul.f32 %v3577_v17, %v3577_v17 }
0x1b0a   : > { %v3583_v26 = vsel %vm1139_vm2, %v3579_v25, 0.0 }
0x1b0b   : > { %3584 = vadd.xlane.f32.xlu0 %v3583_v26 }
0x1b90   : > { %v3582_v27 = vpop.xlane.xlu1 %3581 }
0x1b91   : > { %v3586_v28 = vmul.f32 0.03125, %v3582_v27 }
0x1b93   : > { %v3588_v29 = vadd.f32 1e-05, %v3586_v28 }
0x1b94   : > { %v3585_v57 = vpop.xlane.xlu0 %3584 }
0x1b95   : > { %4467 = vrsqrt.f32 %v3588_v29  ;;  %v3587_v30 = vmul.f32 0.03125, %v3585_v57 }
0x1b97   : > { %v3589_v32 = vadd.f32 1e-05, %v3587_v30 }
0x1b99   : > { %4469 = vrsqrt.f32 %v3589_v32 }
0x1ba2   : > { %v4468_v33 = vpop.eup %4467 }
0x1ba3   : > { %v3592_v58 = vmul.f32 %v4468_v33, %v3576_v18 }
0x1ba5   : > { %v3600_v37 = vmul.f32 %v3972_v31, %v3592_v58 }
0x1ba6   : > { %v4470_v9 = vpop.eup %4469 }
0x1ba7   : > { %v3608_v0 = vadd.f32 %v3973_v34, %v3600_v37  ;;  %v3593_v50 = vmul.f32 %v4470_v9, %v3577_v17 }
0x1ba9   : > { %3610 = vst.msk [vmem:[#allocation2] sm:$0xff] %vm1139_vm2, %v3608_v0  ;;  %v3601_v53 = vmul.f32 %v3972_v31, %v3593_v50  ;;  %3615 = sbr.rel (%p3974_p5) target bundleno = 7399 (0x1ce7), region = 128 }
0x1bab   : > { %v3609_v54 = vadd.f32 %v3973_v34, %v3601_v53 }
0x1bad   : > { %3611 = vst.msk [vmem:[#allocation2 + $0x8] sm:$0xff] %vm1139_vm2, %v3609_v54 }
0x1bae   : > { %v3618_v35 = vsel %vm1139_vm2, %v3608_v0, 0.0  ;;  %3662 = vst.msk [vmem:[%s5410_s8] sm:$0xff] %vm1189_vm3, %v5198_v38  ;;  %3663 = vst.msk [vmem:[%s5410_s8 + $0x8] sm:$0xff] %vm1189_vm3, %v5204_v12  ;;  %v3621_v36 = vsel %vm1139_vm2, %v3609_v54, 0.0  ;;  %v3975_v45 = vld [vmem:[%s5411_s23] ss:$0 sm:$0xff] }
0x1baf   : > { %3619 = vadd.xlane.f32.xlu0 %v3618_v35  ;;  %v3976_v48 = vld [vmem:[%s5412_s13] ss:$0 sm:$0xff] }
0x1bb3   : > { %3622 = vadd.xlane.f32.xlu0 %v3621_v36 }
0x1c38   : > { %v3620_v5 = vpop.xlane.xlu0 %3619 }
0x1c39   : > { %v3624_v39 = vmul.f32 0.03125, %v3620_v5 }
0x1c3b   : > { %v3626_v40 = vsub.f32 %v3608_v0, %v3624_v39 }
0x1c3c   : > { %v3623_v6 = vpop.xlane.xlu0 %3622 }
0x1c3d   : > { %v3625_v11 = vmul.f32 0.03125, %v3623_v6  ;;  %v3628_v13 = vmul.f32 %v3626_v40, %v3626_v40 }
0x1c3f   : > { %v3627_v21 = vsub.f32 %v3609_v54, %v3625_v11  ;;  %v3630_v41 = vsel %vm1139_vm2, %v3628_v13, 0.0 }
0x1c40   : > { %3631 = vadd.xlane.f32.xlu1 %v3630_v41 }
0x1c41   : > { %v3629_v38 = vmul.f32 %v3627_v21, %v3627_v21 }
0x1c43   : > { %v3633_v20 = vsel %vm1139_vm2, %v3629_v38, 0.0 }
0x1c44   : > { %3634 = vadd.xlane.f32.xlu1 %v3633_v20 }
0x1cc9   : > { %v3632_v42 = vpop.xlane.xlu1 %3631 }
0x1cca   : > { %v3636_v12 = vmul.f32 0.03125, %v3632_v42 }
0x1ccc   : > { %v3638_v47 = vadd.f32 1e-05, %v3636_v12 }
0x1ccd   : > { %v3635_v8 = vpop.xlane.xlu1 %3634 }
0x1cce   : > { %4471 = vrsqrt.f32 %v3638_v47  ;;  %v3637_v44 = vmul.f32 0.03125, %v3635_v8 }
0x1cd0   : > { %v3639_v51 = vadd.f32 1e-05, %v3637_v44 }
0x1cd2   : > { %4473 = vrsqrt.f32 %v3639_v51 }
0x1cdb   : > { %v4472_v43 = vpop.eup %4471 }
0x1cdc   : > { %v3642_v46 = vmul.f32 %v4472_v43, %v3626_v40 }
0x1cde   : > { %v3650_v49 = vmul.f32 %v3975_v45, %v3642_v46 }
0x1cdf   : > { %v4474_v16 = vpop.eup %4473 }
0x1ce0   : > { %v3658_v52 = vadd.f32 %v3976_v48, %v3650_v49  ;;  %v3643_v55 = vmul.f32 %v4474_v16, %v3627_v21 }
0x1ce2   : > { %3660 = vst.msk [vmem:[%s5413_s25] sm:$0xff] %vm1139_vm2, %v3658_v52  ;;  %v3651_v56 = vmul.f32 %v3975_v45, %v3643_v55 }
0x1ce4   : > { %v3659_v3 = vadd.f32 %v3976_v48, %v3651_v56 }
0x1ce6   : > { %3661 = vst.msk [vmem:[%s5413_s25 + $0x8] sm:$0xff] %vm1139_vm2, %v3659_v3 }
0x1ce7 PF: > { %s5414_s4 = sld [smem:[#allocation3_spill]] }
0x1ced   : > { %s37_s27 = sadd.s32 1, %s5414_s4  }
0x1cee   : > { %p34_p6 = scmp.ge.s32.totalorder %s37_s27, 4  }
0x1cf0   :  { %36 = sbr.rel (!%p34_p6) target bundleno = 18 (0x12), region = 219 }

</bundles_post_ra>
